<compile_context>
chip_gen: v5e
topology: v5e:2x2
jax: 0.10.0
libtpu: 0.0.40
codegen_flags: <defaults>
</compile_context>

<pallas_src>
import functools

import jax
import jax.numpy as jnp
from jax import lax
from jax.experimental import pallas as pl
from jax.experimental.pallas import tpu as pltpu


# ----------------------------------------------------------------------------
# Fused kernel factory
# ----------------------------------------------------------------------------
def make_fused_kernel(*, T, Wout, OC, hc, C, depth, include_time, n_rest):
    """One grid step == one batch element."""
    TW = T * Wout
    dt = 1.0 / (T - 1) if T > 1 else 0.0           # signatory.Augment time: linspace(0,1,T)

    def tprod(a, b, wa):
        # per-row tensor (Kronecker) product: (N, wa) x (N, wb) -> (N, wa*wb),
        # last index fastest (signatory flattening convention).
        return jnp.concatenate([a[:, i:i + 1] * b for i in range(wa)], axis=1)

    def kernel(patch_ref, wconv_ref, bconv_ref, w1_ref, b1_ref, *rest_and_out):
        rest_refs = rest_and_out[:-1]
        out_ref = rest_and_out[-1]

        # ---- conv2d (kernel == stride) as VPU broadcast multiply-adds --------
        p = patch_ref[0]                                  # (hc, T*Wout)
        k2 = wconv_ref[...]                               # (OC, hc)
        conv = k2[:, 0:1] * p[0:1, :]
        for kk in range(1, hc):
            conv = conv + k2[:, kk:kk + 1] * p[kk:kk + 1, :]
        conv = conv + bconv_ref[...]                      # (OC, T*Wout)

        # ---- time-augment + basepoint increments + signature (Chen) ---------
        dims = [C ** k for k in range(1, depth + 1)]
        S = [jnp.zeros((OC, d), jnp.float32) for d in dims]   # value-carried state
        prev = None
        for t in range(T):                                 # fully unrolled (static T)
            cur = conv[:, t * Wout:(t + 1) * Wout]         # (OC, Wout)
            if t == 0:
                d_feat = cur                               # basepoint at zero
                tinc = 0.0                                 # time[0] == 0
            else:
                d_feat = cur - prev
                tinc = dt
            prev = cur
            if include_time:
                dlt = jnp.concatenate(
                    [jnp.full((OC, 1), tinc, jnp.float32), d_feat], axis=1)
            else:
                dlt = d_feat                               # (OC, C)

            # exp(dlt) levels: E_k = dlt^{(x)k} / k!
            E = [dlt]
            for k in range(2, depth + 1):
                E.append(tprod(dlt, E[-1], C) * (1.0 / k))

            # Chen: S_k <- S_k + E_k + sum_j S_j (x) E_{k-j}   (old S on RHS)
            newS = []
            for k in range(1, depth + 1):
                acc = S[k - 1] + E[k - 1]
                for j in range(1, k):
                    acc = acc + tprod(S[j - 1], E[k - j - 1], dims[j - 1])
                newS.append(acc)
            S = newS

        sig = jnp.concatenate(S, axis=1)                   # (OC, sig_channels)

        # ---- feedforward (+ log_softmax) -------------------------------------
        # first layer: feat (1, OC*sigc) @ W1 decomposed per out-channel to avoid
        # flattening the (OC, sigc) value across sublanes/lanes.
        hvec = b1_ref[...]                                 # (1, L0)
        for oc in range(OC):
            hvec = hvec + jnp.dot(sig[oc:oc + 1, :], w1_ref[oc],
                                  preferred_element_type=jnp.float32)
        if n_rest >= 1:
            hvec = 1.0 / (1.0 + jnp.exp(-hvec))            # sigmoid (EUP)
        # TODO(synk): Dropout is identity here (eval/inference mode).
        for i in range(n_rest):
            w = rest_refs[2 * i][...]
            b = rest_refs[2 * i + 1][...]
            hvec = jnp.dot(hvec, w, preferred_element_type=jnp.float32) + b
            if i < n_rest - 1:
                hvec = 1.0 / (1.0 + jnp.exp(-hvec))

        # log_softmax over the class axis
        m = jnp.max(hvec, axis=-1, keepdims=True)
        s = hvec - m
        lse = jnp.log(jnp.sum(jnp.exp(s), axis=-1, keepdims=True))
        out_ref[0] = (s - lse).astype(out_ref.dtype)

    return kernel


# ----------------------------------------------------------------------------
# Forward pass wrapper (single pallas_call; input-side layout plumbing only)
# ----------------------------------------------------------------------------
def cnn_sig_ff_forward(x, params, *, h, c, sig_depth, include_time=True):
    x = jnp.asarray(x, jnp.float32)
    B, _, H, W = x.shape
    OC = params["conv_w"].shape[0]
    T = (H - h) // h + 1
    Wout = (W - c) // c + 1                       # == self.channels
    C = Wout + int(include_time)
    sigc = sum(C ** k for k in range(1, sig_depth + 1))
    hc = h * c
    TW = T * Wout

    # patches[b, i*c+j, t*Wout+w] = x[b, 0, t*h+i, w*c+j]
    xt = x[:, 0, : T * h, : Wout * c]
    patches = (xt.reshape(B, T, h, Wout, c)
                 .transpose(0, 2, 4, 1, 3)
                 .reshape(B, hc, TW))
    wconv2 = params["conv_w"].reshape(OC, hc).astype(jnp.float32)
    bconv2 = params["conv_b"].reshape(OC, 1).astype(jnp.float32)

    lin = params["linear"]                        # list of (W (out,in), b (out,))
    w1, b1 = lin[0]
    L0 = w1.shape[0]
    w1_3d = w1.T.reshape(OC, sigc, L0).astype(jnp.float32)    # (OC, sigc, L0)
    b1_2d = b1.reshape(1, L0).astype(jnp.float32)
    rest = [(w.T.astype(jnp.float32), b.reshape(1, -1).astype(jnp.float32))
            for (w, b) in lin[1:]]
    out_dim = rest[-1][0].shape[1] if rest else L0

    kernel = make_fused_kernel(T=T, Wout=Wout, OC=OC, hc=hc, C=C,
                               depth=sig_depth, include_time=include_time,
                               n_rest=len(rest))

    in_specs = [
        pl.BlockSpec((1, hc, TW), lambda b: (b, 0, 0)),
        pl.BlockSpec((OC, hc), lambda b: (0, 0)),
        pl.BlockSpec((OC, 1), lambda b: (0, 0)),
        pl.BlockSpec((OC, sigc, L0), lambda b: (0, 0, 0)),
        pl.BlockSpec((1, L0), lambda b: (0, 0)),
    ]
    flat_rest = []
    for w, bb in rest:
        in_specs.append(pl.BlockSpec(w.shape, lambda b: (0, 0)))
        in_specs.append(pl.BlockSpec(bb.shape, lambda b: (0, 0)))
        flat_rest += [w, bb]

    # advisory cost estimate (tiny kernel; mostly a scheduling hint)
    flops = int(B * (2 * OC * TW * hc
                     + T * OC * 8 * sigc
                     + 2 * OC * sigc * L0
                     + 2 * sum(w.shape[0] * w.shape[1] for w, _ in rest)))
    transc = int(B * (L0 + sum(bb.shape[1] for _, bb in rest) + out_dim))
    bytes_acc = int(4 * (patches.size + wconv2.size + bconv2.size + w1_3d.size
                         + b1_2d.size + sum(w.size + bb.size for w, bb in rest)
                         + B * out_dim))

    out3 = pl.pallas_call(
        kernel,
        grid=(B,),
        in_specs=in_specs,
        out_specs=pl.BlockSpec((1, 1, out_dim), lambda b: (b, 0, 0)),
        out_shape=jax.ShapeDtypeStruct((B, 1, out_dim), jnp.float32),
        compiler_params=pltpu.CompilerParams(dimension_semantics=("parallel",)),
        cost_estimate=pl.CostEstimate(flops=flops, transcendentals=transc,
                                      bytes_accessed=bytes_acc),
    )(patches, wconv2, bconv2, w1_3d, b1_2d, *flat_rest)
    return out3.reshape(B, out_dim)


# ----------------------------------------------------------------------------
# Plain-JAX reference (same math, independent lowering) for a correctness check
# ----------------------------------------------------------------------------
def reference_forward(x, params, *, h, c, sig_depth, include_time=True):
    x = jnp.asarray(x, jnp.float32)
    B, _, H, W = x.shape
    OC = params["conv_w"].shape[0]
    T = (H - h) // h + 1
    Wout = (W - c) // c + 1
    conv = lax.conv_general_dilated(x, params["conv_w"], window_strides=(h, c),
                                    padding="VALID",
                                    dimension_numbers=("NCHW", "OIHW", "NCHW"))
    conv = conv + params["conv_b"].reshape(1, OC, 1, 1)
    conv = conv[:, :, :T, :Wout].reshape(B * OC, T, Wout)
    N = B * OC
    if include_time:
        time = jnp.linspace(0.0, 1.0, T, dtype=jnp.float32)
        time = jnp.broadcast_to(time[None, :, None], (N, T, 1))
        path = jnp.concatenate([time, conv], axis=-1)
    else:
        path = conv
    C = path.shape[-1]
    inc = jnp.concatenate([path[:, :1, :], path[:, 1:, :] - path[:, :-1, :]], axis=1)
    S = [jnp.zeros((N, C ** k), jnp.float32) for k in range(1, sig_depth + 1)]
    for t in range(T):
        dlt = inc[:, t, :]
        E = [dlt]
        for k in range(2, sig_depth + 1):
            E.append((E[-1][:, :, None] * dlt[:, None, :]).reshape(N, C ** k) / k)
        newS = []
        for k in range(1, sig_depth + 1):
            acc = S[k - 1] + E[k - 1]
            for j in range(1, k):
                acc = acc + (S[j - 1][:, :, None]
                             * E[k - j - 1][:, None, :]).reshape(N, C ** k)
            newS.append(acc)
        S = newS
    sig = jnp.concatenate(S, axis=1)
    feat = sig.reshape(B, -1)
    hvec = feat
    lin = params["linear"]
    for i, (w, b) in enumerate(lin):
        hvec = hvec @ w.T + b
        if i < len(lin) - 1:
            hvec = jax.nn.sigmoid(hvec)
    return jax.nn.log_softmax(hvec, axis=1)


# ----------------------------------------------------------------------------
# main
# ----------------------------------------------------------------------------
if __name__ == "__main__":
    # module hyper-parameters (small, consistent with CNNSigFF.__init__ defaults)
    B, H, W = 2, 16, 8          # batch, time length, in_channels (feature width)
    h, c = 1, 4                 # conv kernel (h, c); stride defaults to (h, c)
    OC = c                      # out_channels defaults to c
    sig_depth = 3
    layers = (32, 16)
    out_dim = 5
    include_time = True

    Wout = (W - c) // c + 1
    C = Wout + int(include_time)
    sigc = sum(C ** k for k in range(1, sig_depth + 1))

    key = jax.random.PRNGKey(0)
    keys = jax.random.split(key, 8)

    x = jax.random.normal(keys[0], (B, 1, H, W), jnp.float32)

    # deterministic kaiming_normal_-style init (std = sqrt(2/fan_in)), zero biases
    conv_w = jax.random.normal(keys[1], (OC, 1, h, c), jnp.float32) * (2.0 / (1 * h * c)) ** 0.5
    conv_b = jnp.zeros((OC,), jnp.float32)
    dims = [OC * sigc] + list(layers) + [out_dim]
    linear = []
    for i in range(len(dims) - 1):
        w = jax.random.normal(keys[2 + i], (dims[i + 1], dims[i]), jnp.float32) * (2.0 / dims[i]) ** 0.5
        b = jnp.zeros((dims[i + 1],), jnp.float32)
        linear.append((w, b))

    params = {"conv_w": conv_w, "conv_b": conv_b, "linear": linear}

    fwd = jax.jit(functools.partial(cnn_sig_ff_forward, h=h, c=c,
                                    sig_depth=sig_depth, include_time=include_time))
    out = jax.block_until_ready(fwd(x, params))
    assert out.shape == (B, out_dim)

    ref = jax.block_until_ready(
        reference_forward(x, params, h=h, c=c, sig_depth=sig_depth,
                          include_time=include_time))
    assert bool(jnp.allclose(out, ref, rtol=1e-3, atol=1e-4)), (
        float(jnp.max(jnp.abs(out - ref))))
    print("KERNEL_OK")
</pallas_src>

<mosaic_0001>
module attributes {stable_mosaic.version = 11 : i64} {
  func.func @kernel(%arg0: i32, %arg1: memref<1x4x32xf32, #tpu.memory_space<vmem>>, %arg2: memref<4x4xf32, #tpu.memory_space<vmem>>, %arg3: memref<4x1xf32, #tpu.memory_space<vmem>>, %arg4: memref<4x39x32xf32, #tpu.memory_space<vmem>>, %arg5: memref<1x32xf32, #tpu.memory_space<vmem>>, %arg6: memref<32x16xf32, #tpu.memory_space<vmem>>, %arg7: memref<1x16xf32, #tpu.memory_space<vmem>>, %arg8: memref<16x5xf32, #tpu.memory_space<vmem>>, %arg9: memref<1x5xf32, #tpu.memory_space<vmem>>, %arg10: memref<1x1x5xf32, #tpu.memory_space<vmem>>) attributes {dimension_semantics = [#tpu.dimension_semantics<parallel>], iteration_bounds = array<i64: 2>, scalar_prefetch = 0 : i64, scratch_operands = 0 : i64, tpu.core_type = #tpu.core_type<tc>, window_params = [{transform_indices = @transform_0, window_bounds = array<i64: 1, 4, 32>}, {pipeline_mode = #tpu.pipeline_mode<synchronous>, transform_indices = @transform_1, window_bounds = array<i64: 4, 4>}, {pipeline_mode = #tpu.pipeline_mode<synchronous>, transform_indices = @transform_2, window_bounds = array<i64: 4, 1>}, {pipeline_mode = #tpu.pipeline_mode<synchronous>, transform_indices = @transform_3, window_bounds = array<i64: 4, 39, 32>}, {pipeline_mode = #tpu.pipeline_mode<synchronous>, transform_indices = @transform_4, window_bounds = array<i64: 1, 32>}, {pipeline_mode = #tpu.pipeline_mode<synchronous>, transform_indices = @transform_5, window_bounds = array<i64: 32, 16>}, {pipeline_mode = #tpu.pipeline_mode<synchronous>, transform_indices = @transform_6, window_bounds = array<i64: 1, 16>}, {pipeline_mode = #tpu.pipeline_mode<synchronous>, transform_indices = @transform_7, window_bounds = array<i64: 16, 5>}, {pipeline_mode = #tpu.pipeline_mode<synchronous>, transform_indices = @transform_8, window_bounds = array<i64: 1, 5>}, {transform_indices = @transform_9, window_bounds = array<i64: 1, 1, 5>}]} {
    %c0 = arith.constant 0 : index
    %c0_0 = arith.constant 0 : index
    %c0_1 = arith.constant 0 : index
    %0 = vector.load %arg1[%c0, %c0_0, %c0_1] : memref<1x4x32xf32, #tpu.memory_space<vmem>>, vector<1x4x32xf32>
    %1 = vector.shape_cast %0 : vector<1x4x32xf32> to vector<4x32xf32>
    %c0_2 = arith.constant 0 : index
    %c0_3 = arith.constant 0 : index
    %2 = vector.load %arg2[%c0_2, %c0_3] : memref<4x4xf32, #tpu.memory_space<vmem>>, vector<4x4xf32>
    %3 = vector.extract_strided_slice %2 {offsets = [0, 0], sizes = [4, 1], strides = [1, 1]} : vector<4x4xf32> to vector<4x1xf32>
    %4 = vector.extract_strided_slice %1 {offsets = [0, 0], sizes = [1, 32], strides = [1, 1]} : vector<4x32xf32> to vector<1x32xf32>
    %5 = vector.broadcast %3 : vector<4x1xf32> to vector<4x32xf32>
    %6 = vector.broadcast %4 : vector<1x32xf32> to vector<4x32xf32>
    %7 = arith.mulf %5, %6 : vector<4x32xf32>
    %8 = vector.extract_strided_slice %2 {offsets = [0, 1], sizes = [4, 1], strides = [1, 1]} : vector<4x4xf32> to vector<4x1xf32>
    %9 = vector.extract_strided_slice %1 {offsets = [1, 0], sizes = [1, 32], strides = [1, 1]} : vector<4x32xf32> to vector<1x32xf32>
    %10 = vector.broadcast %8 : vector<4x1xf32> to vector<4x32xf32>
    %11 = vector.broadcast %9 : vector<1x32xf32> to vector<4x32xf32>
    %12 = arith.mulf %10, %11 : vector<4x32xf32>
    %13 = arith.addf %7, %12 : vector<4x32xf32>
    %14 = vector.extract_strided_slice %2 {offsets = [0, 2], sizes = [4, 1], strides = [1, 1]} : vector<4x4xf32> to vector<4x1xf32>
    %15 = vector.extract_strided_slice %1 {offsets = [2, 0], sizes = [1, 32], strides = [1, 1]} : vector<4x32xf32> to vector<1x32xf32>
    %16 = vector.broadcast %14 : vector<4x1xf32> to vector<4x32xf32>
    %17 = vector.broadcast %15 : vector<1x32xf32> to vector<4x32xf32>
    %18 = arith.mulf %16, %17 : vector<4x32xf32>
    %19 = arith.addf %13, %18 : vector<4x32xf32>
    %20 = vector.extract_strided_slice %2 {offsets = [0, 3], sizes = [4, 1], strides = [1, 1]} : vector<4x4xf32> to vector<4x1xf32>
    %21 = vector.extract_strided_slice %1 {offsets = [3, 0], sizes = [1, 32], strides = [1, 1]} : vector<4x32xf32> to vector<1x32xf32>
    %22 = vector.broadcast %20 : vector<4x1xf32> to vector<4x32xf32>
    %23 = vector.broadcast %21 : vector<1x32xf32> to vector<4x32xf32>
    %24 = arith.mulf %22, %23 : vector<4x32xf32>
    %25 = arith.addf %19, %24 : vector<4x32xf32>
    %c0_4 = arith.constant 0 : index
    %c0_5 = arith.constant 0 : index
    %26 = vector.load %arg3[%c0_4, %c0_5] : memref<4x1xf32, #tpu.memory_space<vmem>>, vector<4x1xf32>
    %27 = vector.broadcast %26 : vector<4x1xf32> to vector<4x32xf32>
    %28 = arith.addf %25, %27 : vector<4x32xf32>
    %cst = arith.constant 0.000000e+00 : f32
    %29 = vector.broadcast %cst : f32 to vector<4x3xf32>
    %cst_6 = arith.constant 0.000000e+00 : f32
    %30 = vector.broadcast %cst_6 : f32 to vector<4x9xf32>
    %cst_7 = arith.constant 0.000000e+00 : f32
    %31 = vector.broadcast %cst_7 : f32 to vector<4x27xf32>
    %32 = vector.extract_strided_slice %28 {offsets = [0, 0], sizes = [4, 2], strides = [1, 1]} : vector<4x32xf32> to vector<4x2xf32>
    %cst_8 = arith.constant 0.000000e+00 : f32
    %33 = vector.broadcast %cst_8 : f32 to vector<4x1xf32>
    %34 = tpu.concatenate %33, %32 in 1 : vector<4x1xf32>, vector<4x2xf32> -> vector<4x3xf32>
    %35 = vector.extract_strided_slice %34 {offsets = [0, 0], sizes = [4, 1], strides = [1, 1]} : vector<4x3xf32> to vector<4x1xf32>
    %36 = vector.broadcast %35 : vector<4x1xf32> to vector<4x3xf32>
    %37 = arith.mulf %36, %34 : vector<4x3xf32>
    %38 = vector.extract_strided_slice %34 {offsets = [0, 1], sizes = [4, 1], strides = [1, 1]} : vector<4x3xf32> to vector<4x1xf32>
    %39 = vector.broadcast %38 : vector<4x1xf32> to vector<4x3xf32>
    %40 = arith.mulf %39, %34 : vector<4x3xf32>
    %41 = vector.extract_strided_slice %34 {offsets = [0, 2], sizes = [4, 1], strides = [1, 1]} : vector<4x3xf32> to vector<4x1xf32>
    %42 = vector.broadcast %41 : vector<4x1xf32> to vector<4x3xf32>
    %43 = arith.mulf %42, %34 : vector<4x3xf32>
    %44 = tpu.concatenate %37, %40, %43 in 1 : vector<4x3xf32>, vector<4x3xf32>, vector<4x3xf32> -> vector<4x9xf32>
    %cst_9 = arith.constant 5.000000e-01 : f32
    %45 = vector.broadcast %cst_9 : f32 to vector<4x9xf32>
    %46 = arith.mulf %44, %45 : vector<4x9xf32>
    %47 = vector.extract_strided_slice %34 {offsets = [0, 0], sizes = [4, 1], strides = [1, 1]} : vector<4x3xf32> to vector<4x1xf32>
    %48 = vector.broadcast %47 : vector<4x1xf32> to vector<4x9xf32>
    %49 = arith.mulf %48, %46 : vector<4x9xf32>
    %50 = vector.extract_strided_slice %34 {offsets = [0, 1], sizes = [4, 1], strides = [1, 1]} : vector<4x3xf32> to vector<4x1xf32>
    %51 = vector.broadcast %50 : vector<4x1xf32> to vector<4x9xf32>
    %52 = arith.mulf %51, %46 : vector<4x9xf32>
    %53 = vector.extract_strided_slice %34 {offsets = [0, 2], sizes = [4, 1], strides = [1, 1]} : vector<4x3xf32> to vector<4x1xf32>
    %54 = vector.broadcast %53 : vector<4x1xf32> to vector<4x9xf32>
    %55 = arith.mulf %54, %46 : vector<4x9xf32>
    %56 = tpu.concatenate %49, %52, %55 in 1 : vector<4x9xf32>, vector<4x9xf32>, vector<4x9xf32> -> vector<4x27xf32>
    %cst_10 = arith.constant 0.333333343 : f32
    %57 = vector.broadcast %cst_10 : f32 to vector<4x27xf32>
    %58 = arith.mulf %56, %57 : vector<4x27xf32>
    %59 = arith.addf %29, %34 : vector<4x3xf32>
    %60 = arith.addf %30, %46 : vector<4x9xf32>
    %61 = vector.extract_strided_slice %29 {offsets = [0, 0], sizes = [4, 1], strides = [1, 1]} : vector<4x3xf32> to vector<4x1xf32>
    %62 = vector.broadcast %61 : vector<4x1xf32> to vector<4x3xf32>
    %63 = arith.mulf %62, %34 : vector<4x3xf32>
    %64 = vector.extract_strided_slice %29 {offsets = [0, 1], sizes = [4, 1], strides = [1, 1]} : vector<4x3xf32> to vector<4x1xf32>
    %65 = vector.broadcast %64 : vector<4x1xf32> to vector<4x3xf32>
    %66 = arith.mulf %65, %34 : vector<4x3xf32>
    %67 = vector.extract_strided_slice %29 {offsets = [0, 2], sizes = [4, 1], strides = [1, 1]} : vector<4x3xf32> to vector<4x1xf32>
    %68 = vector.broadcast %67 : vector<4x1xf32> to vector<4x3xf32>
    %69 = arith.mulf %68, %34 : vector<4x3xf32>
    %70 = tpu.concatenate %63, %66, %69 in 1 : vector<4x3xf32>, vector<4x3xf32>, vector<4x3xf32> -> vector<4x9xf32>
    %71 = arith.addf %60, %70 : vector<4x9xf32>
    %72 = arith.addf %31, %58 : vector<4x27xf32>
    %73 = vector.extract_strided_slice %29 {offsets = [0, 0], sizes = [4, 1], strides = [1, 1]} : vector<4x3xf32> to vector<4x1xf32>
    %74 = vector.broadcast %73 : vector<4x1xf32> to vector<4x9xf32>
    %75 = arith.mulf %74, %46 : vector<4x9xf32>
    %76 = vector.extract_strided_slice %29 {offsets = [0, 1], sizes = [4, 1], strides = [1, 1]} : vector<4x3xf32> to vector<4x1xf32>
    %77 = vector.broadcast %76 : vector<4x1xf32> to vector<4x9xf32>
    %78 = arith.mulf %77, %46 : vector<4x9xf32>
    %79 = vector.extract_strided_slice %29 {offsets = [0, 2], sizes = [4, 1], strides = [1, 1]} : vector<4x3xf32> to vector<4x1xf32>
    %80 = vector.broadcast %79 : vector<4x1xf32> to vector<4x9xf32>
    %81 = arith.mulf %80, %46 : vector<4x9xf32>
    %82 = tpu.concatenate %75, %78, %81 in 1 : vector<4x9xf32>, vector<4x9xf32>, vector<4x9xf32> -> vector<4x27xf32>
    %83 = arith.addf %72, %82 : vector<4x27xf32>
    %84 = vector.extract_strided_slice %30 {offsets = [0, 0], sizes = [4, 1], strides = [1, 1]} : vector<4x9xf32> to vector<4x1xf32>
    %85 = vector.broadcast %84 : vector<4x1xf32> to vector<4x3xf32>
    %86 = arith.mulf %85, %34 : vector<4x3xf32>
    %87 = vector.extract_strided_slice %30 {offsets = [0, 1], sizes = [4, 1], strides = [1, 1]} : vector<4x9xf32> to vector<4x1xf32>
    %88 = vector.broadcast %87 : vector<4x1xf32> to vector<4x3xf32>
    %89 = arith.mulf %88, %34 : vector<4x3xf32>
    %90 = vector.extract_strided_slice %30 {offsets = [0, 2], sizes = [4, 1], strides = [1, 1]} : vector<4x9xf32> to vector<4x1xf32>
    %91 = vector.broadcast %90 : vector<4x1xf32> to vector<4x3xf32>
    %92 = arith.mulf %91, %34 : vector<4x3xf32>
    %93 = vector.extract_strided_slice %30 {offsets = [0, 3], sizes = [4, 1], strides = [1, 1]} : vector<4x9xf32> to vector<4x1xf32>
    %94 = vector.broadcast %93 : vector<4x1xf32> to vector<4x3xf32>
    %95 = arith.mulf %94, %34 : vector<4x3xf32>
    %96 = vector.extract_strided_slice %30 {offsets = [0, 4], sizes = [4, 1], strides = [1, 1]} : vector<4x9xf32> to vector<4x1xf32>
    %97 = vector.broadcast %96 : vector<4x1xf32> to vector<4x3xf32>
    %98 = arith.mulf %97, %34 : vector<4x3xf32>
    %99 = vector.extract_strided_slice %30 {offsets = [0, 5], sizes = [4, 1], strides = [1, 1]} : vector<4x9xf32> to vector<4x1xf32>
    %100 = vector.broadcast %99 : vector<4x1xf32> to vector<4x3xf32>
    %101 = arith.mulf %100, %34 : vector<4x3xf32>
    %102 = vector.extract_strided_slice %30 {offsets = [0, 6], sizes = [4, 1], strides = [1, 1]} : vector<4x9xf32> to vector<4x1xf32>
    %103 = vector.broadcast %102 : vector<4x1xf32> to vector<4x3xf32>
    %104 = arith.mulf %103, %34 : vector<4x3xf32>
    %105 = vector.extract_strided_slice %30 {offsets = [0, 7], sizes = [4, 1], strides = [1, 1]} : vector<4x9xf32> to vector<4x1xf32>
    %106 = vector.broadcast %105 : vector<4x1xf32> to vector<4x3xf32>
    %107 = arith.mulf %106, %34 : vector<4x3xf32>
    %108 = vector.extract_strided_slice %30 {offsets = [0, 8], sizes = [4, 1], strides = [1, 1]} : vector<4x9xf32> to vector<4x1xf32>
    %109 = vector.broadcast %108 : vector<4x1xf32> to vector<4x3xf32>
    %110 = arith.mulf %109, %34 : vector<4x3xf32>
    %111 = tpu.concatenate %86, %89, %92, %95, %98, %101, %104, %107, %110 in 1 : vector<4x3xf32>, vector<4x3xf32>, vector<4x3xf32>, vector<4x3xf32>, vector<4x3xf32>, vector<4x3xf32>, vector<4x3xf32>, vector<4x3xf32>, vector<4x3xf32> -> vector<4x27xf32>
    %112 = arith.addf %83, %111 : vector<4x27xf32>
    %113 = vector.extract_strided_slice %28 {offsets = [0, 2], sizes = [4, 2], strides = [1, 1]} : vector<4x32xf32> to vector<4x2xf32>
    %114 = arith.subf %113, %32 : vector<4x2xf32>
    %cst_11 = arith.constant 0.0666666701 : f32
    %115 = vector.broadcast %cst_11 : f32 to vector<4x1xf32>
    %116 = tpu.concatenate %115, %114 in 1 : vector<4x1xf32>, vector<4x2xf32> -> vector<4x3xf32>
    %117 = vector.extract_strided_slice %116 {offsets = [0, 0], sizes = [4, 1], strides = [1, 1]} : vector<4x3xf32> to vector<4x1xf32>
    %118 = vector.broadcast %117 : vector<4x1xf32> to vector<4x3xf32>
    %119 = arith.mulf %118, %116 : vector<4x3xf32>
    %120 = vector.extract_strided_slice %116 {offsets = [0, 1], sizes = [4, 1], strides = [1, 1]} : vector<4x3xf32> to vector<4x1xf32>
    %121 = vector.broadcast %120 : vector<4x1xf32> to vector<4x3xf32>
    %122 = arith.mulf %121, %116 : vector<4x3xf32>
    %123 = vector.extract_strided_slice %116 {offsets = [0, 2], sizes = [4, 1], strides = [1, 1]} : vector<4x3xf32> to vector<4x1xf32>
    %124 = vector.broadcast %123 : vector<4x1xf32> to vector<4x3xf32>
    %125 = arith.mulf %124, %116 : vector<4x3xf32>
    %126 = tpu.concatenate %119, %122, %125 in 1 : vector<4x3xf32>, vector<4x3xf32>, vector<4x3xf32> -> vector<4x9xf32>
    %cst_12 = arith.constant 5.000000e-01 : f32
    %127 = vector.broadcast %cst_12 : f32 to vector<4x9xf32>
    %128 = arith.mulf %126, %127 : vector<4x9xf32>
    %129 = vector.extract_strided_slice %116 {offsets = [0, 0], sizes = [4, 1], strides = [1, 1]} : vector<4x3xf32> to vector<4x1xf32>
    %130 = vector.broadcast %129 : vector<4x1xf32> to vector<4x9xf32>
    %131 = arith.mulf %130, %128 : vector<4x9xf32>
    %132 = vector.extract_strided_slice %116 {offsets = [0, 1], sizes = [4, 1], strides = [1, 1]} : vector<4x3xf32> to vector<4x1xf32>
    %133 = vector.broadcast %132 : vector<4x1xf32> to vector<4x9xf32>
    %134 = arith.mulf %133, %128 : vector<4x9xf32>
    %135 = vector.extract_strided_slice %116 {offsets = [0, 2], sizes = [4, 1], strides = [1, 1]} : vector<4x3xf32> to vector<4x1xf32>
    %136 = vector.broadcast %135 : vector<4x1xf32> to vector<4x9xf32>
    %137 = arith.mulf %136, %128 : vector<4x9xf32>
    %138 = tpu.concatenate %131, %134, %137 in 1 : vector<4x9xf32>, vector<4x9xf32>, vector<4x9xf32> -> vector<4x27xf32>
    %cst_13 = arith.constant 0.333333343 : f32
    %139 = vector.broadcast %cst_13 : f32 to vector<4x27xf32>
    %140 = arith.mulf %138, %139 : vector<4x27xf32>
    %141 = arith.addf %59, %116 : vector<4x3xf32>
    %142 = arith.addf %71, %128 : vector<4x9xf32>
    %143 = vector.extract_strided_slice %59 {offsets = [0, 0], sizes = [4, 1], strides = [1, 1]} : vector<4x3xf32> to vector<4x1xf32>
    %144 = vector.broadcast %143 : vector<4x1xf32> to vector<4x3xf32>
    %145 = arith.mulf %144, %116 : vector<4x3xf32>
    %146 = vector.extract_strided_slice %59 {offsets = [0, 1], sizes = [4, 1], strides = [1, 1]} : vector<4x3xf32> to vector<4x1xf32>
    %147 = vector.broadcast %146 : vector<4x1xf32> to vector<4x3xf32>
    %148 = arith.mulf %147, %116 : vector<4x3xf32>
    %149 = vector.extract_strided_slice %59 {offsets = [0, 2], sizes = [4, 1], strides = [1, 1]} : vector<4x3xf32> to vector<4x1xf32>
    %150 = vector.broadcast %149 : vector<4x1xf32> to vector<4x3xf32>
    %151 = arith.mulf %150, %116 : vector<4x3xf32>
    %152 = tpu.concatenate %145, %148, %151 in 1 : vector<4x3xf32>, vector<4x3xf32>, vector<4x3xf32> -> vector<4x9xf32>
    %153 = arith.addf %142, %152 : vector<4x9xf32>
    %154 = arith.addf %112, %140 : vector<4x27xf32>
    %155 = vector.extract_strided_slice %59 {offsets = [0, 0], sizes = [4, 1], strides = [1, 1]} : vector<4x3xf32> to vector<4x1xf32>
    %156 = vector.broadcast %155 : vector<4x1xf32> to vector<4x9xf32>
    %157 = arith.mulf %156, %128 : vector<4x9xf32>
    %158 = vector.extract_strided_slice %59 {offsets = [0, 1], sizes = [4, 1], strides = [1, 1]} : vector<4x3xf32> to vector<4x1xf32>
    %159 = vector.broadcast %158 : vector<4x1xf32> to vector<4x9xf32>
    %160 = arith.mulf %159, %128 : vector<4x9xf32>
    %161 = vector.extract_strided_slice %59 {offsets = [0, 2], sizes = [4, 1], strides = [1, 1]} : vector<4x3xf32> to vector<4x1xf32>
    %162 = vector.broadcast %161 : vector<4x1xf32> to vector<4x9xf32>
    %163 = arith.mulf %162, %128 : vector<4x9xf32>
    %164 = tpu.concatenate %157, %160, %163 in 1 : vector<4x9xf32>, vector<4x9xf32>, vector<4x9xf32> -> vector<4x27xf32>
    %165 = arith.addf %154, %164 : vector<4x27xf32>
    %166 = vector.extract_strided_slice %71 {offsets = [0, 0], sizes = [4, 1], strides = [1, 1]} : vector<4x9xf32> to vector<4x1xf32>
    %167 = vector.broadcast %166 : vector<4x1xf32> to vector<4x3xf32>
    %168 = arith.mulf %167, %116 : vector<4x3xf32>
    %169 = vector.extract_strided_slice %71 {offsets = [0, 1], sizes = [4, 1], strides = [1, 1]} : vector<4x9xf32> to vector<4x1xf32>
    %170 = vector.broadcast %169 : vector<4x1xf32> to vector<4x3xf32>
    %171 = arith.mulf %170, %116 : vector<4x3xf32>
    %172 = vector.extract_strided_slice %71 {offsets = [0, 2], sizes = [4, 1], strides = [1, 1]} : vector<4x9xf32> to vector<4x1xf32>
    %173 = vector.broadcast %172 : vector<4x1xf32> to vector<4x3xf32>
    %174 = arith.mulf %173, %116 : vector<4x3xf32>
    %175 = vector.extract_strided_slice %71 {offsets = [0, 3], sizes = [4, 1], strides = [1, 1]} : vector<4x9xf32> to vector<4x1xf32>
    %176 = vector.broadcast %175 : vector<4x1xf32> to vector<4x3xf32>
    %177 = arith.mulf %176, %116 : vector<4x3xf32>
    %178 = vector.extract_strided_slice %71 {offsets = [0, 4], sizes = [4, 1], strides = [1, 1]} : vector<4x9xf32> to vector<4x1xf32>
    %179 = vector.broadcast %178 : vector<4x1xf32> to vector<4x3xf32>
    %180 = arith.mulf %179, %116 : vector<4x3xf32>
    %181 = vector.extract_strided_slice %71 {offsets = [0, 5], sizes = [4, 1], strides = [1, 1]} : vector<4x9xf32> to vector<4x1xf32>
    %182 = vector.broadcast %181 : vector<4x1xf32> to vector<4x3xf32>
    %183 = arith.mulf %182, %116 : vector<4x3xf32>
    %184 = vector.extract_strided_slice %71 {offsets = [0, 6], sizes = [4, 1], strides = [1, 1]} : vector<4x9xf32> to vector<4x1xf32>
    %185 = vector.broadcast %184 : vector<4x1xf32> to vector<4x3xf32>
    %186 = arith.mulf %185, %116 : vector<4x3xf32>
    %187 = vector.extract_strided_slice %71 {offsets = [0, 7], sizes = [4, 1], strides = [1, 1]} : vector<4x9xf32> to vector<4x1xf32>
    %188 = vector.broadcast %187 : vector<4x1xf32> to vector<4x3xf32>
    %189 = arith.mulf %188, %116 : vector<4x3xf32>
    %190 = vector.extract_strided_slice %71 {offsets = [0, 8], sizes = [4, 1], strides = [1, 1]} : vector<4x9xf32> to vector<4x1xf32>
    %191 = vector.broadcast %190 : vector<4x1xf32> to vector<4x3xf32>
    %192 = arith.mulf %191, %116 : vector<4x3xf32>
    %193 = tpu.concatenate %168, %171, %174, %177, %180, %183, %186, %189, %192 in 1 : vector<4x3xf32>, vector<4x3xf32>, vector<4x3xf32>, vector<4x3xf32>, vector<4x3xf32>, vector<4x3xf32>, vector<4x3xf32>, vector<4x3xf32>, vector<4x3xf32> -> vector<4x27xf32>
    %194 = arith.addf %165, %193 : vector<4x27xf32>
    %195 = vector.extract_strided_slice %28 {offsets = [0, 4], sizes = [4, 2], strides = [1, 1]} : vector<4x32xf32> to vector<4x2xf32>
    %196 = arith.subf %195, %113 : vector<4x2xf32>
    %cst_14 = arith.constant 0.0666666701 : f32
    %197 = vector.broadcast %cst_14 : f32 to vector<4x1xf32>
    %198 = tpu.concatenate %197, %196 in 1 : vector<4x1xf32>, vector<4x2xf32> -> vector<4x3xf32>
    %199 = vector.extract_strided_slice %198 {offsets = [0, 0], sizes = [4, 1], strides = [1, 1]} : vector<4x3xf32> to vector<4x1xf32>
    %200 = vector.broadcast %199 : vector<4x1xf32> to vector<4x3xf32>
    %201 = arith.mulf %200, %198 : vector<4x3xf32>
    %202 = vector.extract_strided_slice %198 {offsets = [0, 1], sizes = [4, 1], strides = [1, 1]} : vector<4x3xf32> to vector<4x1xf32>
    %203 = vector.broadcast %202 : vector<4x1xf32> to vector<4x3xf32>
    %204 = arith.mulf %203, %198 : vector<4x3xf32>
    %205 = vector.extract_strided_slice %198 {offsets = [0, 2], sizes = [4, 1], strides = [1, 1]} : vector<4x3xf32> to vector<4x1xf32>
    %206 = vector.broadcast %205 : vector<4x1xf32> to vector<4x3xf32>
    %207 = arith.mulf %206, %198 : vector<4x3xf32>
    %208 = tpu.concatenate %201, %204, %207 in 1 : vector<4x3xf32>, vector<4x3xf32>, vector<4x3xf32> -> vector<4x9xf32>
    %cst_15 = arith.constant 5.000000e-01 : f32
    %209 = vector.broadcast %cst_15 : f32 to vector<4x9xf32>
    %210 = arith.mulf %208, %209 : vector<4x9xf32>
    %211 = vector.extract_strided_slice %198 {offsets = [0, 0], sizes = [4, 1], strides = [1, 1]} : vector<4x3xf32> to vector<4x1xf32>
    %212 = vector.broadcast %211 : vector<4x1xf32> to vector<4x9xf32>
    %213 = arith.mulf %212, %210 : vector<4x9xf32>
    %214 = vector.extract_strided_slice %198 {offsets = [0, 1], sizes = [4, 1], strides = [1, 1]} : vector<4x3xf32> to vector<4x1xf32>
    %215 = vector.broadcast %214 : vector<4x1xf32> to vector<4x9xf32>
    %216 = arith.mulf %215, %210 : vector<4x9xf32>
    %217 = vector.extract_strided_slice %198 {offsets = [0, 2], sizes = [4, 1], strides = [1, 1]} : vector<4x3xf32> to vector<4x1xf32>
    %218 = vector.broadcast %217 : vector<4x1xf32> to vector<4x9xf32>
    %219 = arith.mulf %218, %210 : vector<4x9xf32>
    %220 = tpu.concatenate %213, %216, %219 in 1 : vector<4x9xf32>, vector<4x9xf32>, vector<4x9xf32> -> vector<4x27xf32>
    %cst_16 = arith.constant 0.333333343 : f32
    %221 = vector.broadcast %cst_16 : f32 to vector<4x27xf32>
    %222 = arith.mulf %220, %221 : vector<4x27xf32>
    %223 = arith.addf %141, %198 : vector<4x3xf32>
    %224 = arith.addf %153, %210 : vector<4x9xf32>
    %225 = vector.extract_strided_slice %141 {offsets = [0, 0], sizes = [4, 1], strides = [1, 1]} : vector<4x3xf32> to vector<4x1xf32>
    %226 = vector.broadcast %225 : vector<4x1xf32> to vector<4x3xf32>
    %227 = arith.mulf %226, %198 : vector<4x3xf32>
    %228 = vector.extract_strided_slice %141 {offsets = [0, 1], sizes = [4, 1], strides = [1, 1]} : vector<4x3xf32> to vector<4x1xf32>
    %229 = vector.broadcast %228 : vector<4x1xf32> to vector<4x3xf32>
    %230 = arith.mulf %229, %198 : vector<4x3xf32>
    %231 = vector.extract_strided_slice %141 {offsets = [0, 2], sizes = [4, 1], strides = [1, 1]} : vector<4x3xf32> to vector<4x1xf32>
    %232 = vector.broadcast %231 : vector<4x1xf32> to vector<4x3xf32>
    %233 = arith.mulf %232, %198 : vector<4x3xf32>
    %234 = tpu.concatenate %227, %230, %233 in 1 : vector<4x3xf32>, vector<4x3xf32>, vector<4x3xf32> -> vector<4x9xf32>
    %235 = arith.addf %224, %234 : vector<4x9xf32>
    %236 = arith.addf %194, %222 : vector<4x27xf32>
    %237 = vector.extract_strided_slice %141 {offsets = [0, 0], sizes = [4, 1], strides = [1, 1]} : vector<4x3xf32> to vector<4x1xf32>
    %238 = vector.broadcast %237 : vector<4x1xf32> to vector<4x9xf32>
    %239 = arith.mulf %238, %210 : vector<4x9xf32>
    %240 = vector.extract_strided_slice %141 {offsets = [0, 1], sizes = [4, 1], strides = [1, 1]} : vector<4x3xf32> to vector<4x1xf32>
    %241 = vector.broadcast %240 : vector<4x1xf32> to vector<4x9xf32>
    %242 = arith.mulf %241, %210 : vector<4x9xf32>
    %243 = vector.extract_strided_slice %141 {offsets = [0, 2], sizes = [4, 1], strides = [1, 1]} : vector<4x3xf32> to vector<4x1xf32>
    %244 = vector.broadcast %243 : vector<4x1xf32> to vector<4x9xf32>
    %245 = arith.mulf %244, %210 : vector<4x9xf32>
    %246 = tpu.concatenate %239, %242, %245 in 1 : vector<4x9xf32>, vector<4x9xf32>, vector<4x9xf32> -> vector<4x27xf32>
    %247 = arith.addf %236, %246 : vector<4x27xf32>
    %248 = vector.extract_strided_slice %153 {offsets = [0, 0], sizes = [4, 1], strides = [1, 1]} : vector<4x9xf32> to vector<4x1xf32>
    %249 = vector.broadcast %248 : vector<4x1xf32> to vector<4x3xf32>
    %250 = arith.mulf %249, %198 : vector<4x3xf32>
    %251 = vector.extract_strided_slice %153 {offsets = [0, 1], sizes = [4, 1], strides = [1, 1]} : vector<4x9xf32> to vector<4x1xf32>
    %252 = vector.broadcast %251 : vector<4x1xf32> to vector<4x3xf32>
    %253 = arith.mulf %252, %198 : vector<4x3xf32>
    %254 = vector.extract_strided_slice %153 {offsets = [0, 2], sizes = [4, 1], strides = [1, 1]} : vector<4x9xf32> to vector<4x1xf32>
    %255 = vector.broadcast %254 : vector<4x1xf32> to vector<4x3xf32>
    %256 = arith.mulf %255, %198 : vector<4x3xf32>
    %257 = vector.extract_strided_slice %153 {offsets = [0, 3], sizes = [4, 1], strides = [1, 1]} : vector<4x9xf32> to vector<4x1xf32>
    %258 = vector.broadcast %257 : vector<4x1xf32> to vector<4x3xf32>
    %259 = arith.mulf %258, %198 : vector<4x3xf32>
    %260 = vector.extract_strided_slice %153 {offsets = [0, 4], sizes = [4, 1], strides = [1, 1]} : vector<4x9xf32> to vector<4x1xf32>
    %261 = vector.broadcast %260 : vector<4x1xf32> to vector<4x3xf32>
    %262 = arith.mulf %261, %198 : vector<4x3xf32>
    %263 = vector.extract_strided_slice %153 {offsets = [0, 5], sizes = [4, 1], strides = [1, 1]} : vector<4x9xf32> to vector<4x1xf32>
    %264 = vector.broadcast %263 : vector<4x1xf32> to vector<4x3xf32>
    %265 = arith.mulf %264, %198 : vector<4x3xf32>
    %266 = vector.extract_strided_slice %153 {offsets = [0, 6], sizes = [4, 1], strides = [1, 1]} : vector<4x9xf32> to vector<4x1xf32>
    %267 = vector.broadcast %266 : vector<4x1xf32> to vector<4x3xf32>
    %268 = arith.mulf %267, %198 : vector<4x3xf32>
    %269 = vector.extract_strided_slice %153 {offsets = [0, 7], sizes = [4, 1], strides = [1, 1]} : vector<4x9xf32> to vector<4x1xf32>
    %270 = vector.broadcast %269 : vector<4x1xf32> to vector<4x3xf32>
    %271 = arith.mulf %270, %198 : vector<4x3xf32>
    %272 = vector.extract_strided_slice %153 {offsets = [0, 8], sizes = [4, 1], strides = [1, 1]} : vector<4x9xf32> to vector<4x1xf32>
    %273 = vector.broadcast %272 : vector<4x1xf32> to vector<4x3xf32>
    %274 = arith.mulf %273, %198 : vector<4x3xf32>
    %275 = tpu.concatenate %250, %253, %256, %259, %262, %265, %268, %271, %274 in 1 : vector<4x3xf32>, vector<4x3xf32>, vector<4x3xf32>, vector<4x3xf32>, vector<4x3xf32>, vector<4x3xf32>, vector<4x3xf32>, vector<4x3xf32>, vector<4x3xf32> -> vector<4x27xf32>
    %276 = arith.addf %247, %275 : vector<4x27xf32>
    %277 = vector.extract_strided_slice %28 {offsets = [0, 6], sizes = [4, 2], strides = [1, 1]} : vector<4x32xf32> to vector<4x2xf32>
    %278 = arith.subf %277, %195 : vector<4x2xf32>
    %cst_17 = arith.constant 0.0666666701 : f32
    %279 = vector.broadcast %cst_17 : f32 to vector<4x1xf32>
    %280 = tpu.concatenate %279, %278 in 1 : vector<4x1xf32>, vector<4x2xf32> -> vector<4x3xf32>
    %281 = vector.extract_strided_slice %280 {offsets = [0, 0], sizes = [4, 1], strides = [1, 1]} : vector<4x3xf32> to vector<4x1xf32>
    %282 = vector.broadcast %281 : vector<4x1xf32> to vector<4x3xf32>
    %283 = arith.mulf %282, %280 : vector<4x3xf32>
    %284 = vector.extract_strided_slice %280 {offsets = [0, 1], sizes = [4, 1], strides = [1, 1]} : vector<4x3xf32> to vector<4x1xf32>
    %285 = vector.broadcast %284 : vector<4x1xf32> to vector<4x3xf32>
    %286 = arith.mulf %285, %280 : vector<4x3xf32>
    %287 = vector.extract_strided_slice %280 {offsets = [0, 2], sizes = [4, 1], strides = [1, 1]} : vector<4x3xf32> to vector<4x1xf32>
    %288 = vector.broadcast %287 : vector<4x1xf32> to vector<4x3xf32>
    %289 = arith.mulf %288, %280 : vector<4x3xf32>
    %290 = tpu.concatenate %283, %286, %289 in 1 : vector<4x3xf32>, vector<4x3xf32>, vector<4x3xf32> -> vector<4x9xf32>
    %cst_18 = arith.constant 5.000000e-01 : f32
    %291 = vector.broadcast %cst_18 : f32 to vector<4x9xf32>
    %292 = arith.mulf %290, %291 : vector<4x9xf32>
    %293 = vector.extract_strided_slice %280 {offsets = [0, 0], sizes = [4, 1], strides = [1, 1]} : vector<4x3xf32> to vector<4x1xf32>
    %294 = vector.broadcast %293 : vector<4x1xf32> to vector<4x9xf32>
    %295 = arith.mulf %294, %292 : vector<4x9xf32>
    %296 = vector.extract_strided_slice %280 {offsets = [0, 1], sizes = [4, 1], strides = [1, 1]} : vector<4x3xf32> to vector<4x1xf32>
    %297 = vector.broadcast %296 : vector<4x1xf32> to vector<4x9xf32>
    %298 = arith.mulf %297, %292 : vector<4x9xf32>
    %299 = vector.extract_strided_slice %280 {offsets = [0, 2], sizes = [4, 1], strides = [1, 1]} : vector<4x3xf32> to vector<4x1xf32>
    %300 = vector.broadcast %299 : vector<4x1xf32> to vector<4x9xf32>
    %301 = arith.mulf %300, %292 : vector<4x9xf32>
    %302 = tpu.concatenate %295, %298, %301 in 1 : vector<4x9xf32>, vector<4x9xf32>, vector<4x9xf32> -> vector<4x27xf32>
    %cst_19 = arith.constant 0.333333343 : f32
    %303 = vector.broadcast %cst_19 : f32 to vector<4x27xf32>
    %304 = arith.mulf %302, %303 : vector<4x27xf32>
    %305 = arith.addf %223, %280 : vector<4x3xf32>
    %306 = arith.addf %235, %292 : vector<4x9xf32>
    %307 = vector.extract_strided_slice %223 {offsets = [0, 0], sizes = [4, 1], strides = [1, 1]} : vector<4x3xf32> to vector<4x1xf32>
    %308 = vector.broadcast %307 : vector<4x1xf32> to vector<4x3xf32>
    %309 = arith.mulf %308, %280 : vector<4x3xf32>
    %310 = vector.extract_strided_slice %223 {offsets = [0, 1], sizes = [4, 1], strides = [1, 1]} : vector<4x3xf32> to vector<4x1xf32>
    %311 = vector.broadcast %310 : vector<4x1xf32> to vector<4x3xf32>
    %312 = arith.mulf %311, %280 : vector<4x3xf32>
    %313 = vector.extract_strided_slice %223 {offsets = [0, 2], sizes = [4, 1], strides = [1, 1]} : vector<4x3xf32> to vector<4x1xf32>
    %314 = vector.broadcast %313 : vector<4x1xf32> to vector<4x3xf32>
    %315 = arith.mulf %314, %280 : vector<4x3xf32>
    %316 = tpu.concatenate %309, %312, %315 in 1 : vector<4x3xf32>, vector<4x3xf32>, vector<4x3xf32> -> vector<4x9xf32>
    %317 = arith.addf %306, %316 : vector<4x9xf32>
    %318 = arith.addf %276, %304 : vector<4x27xf32>
    %319 = vector.extract_strided_slice %223 {offsets = [0, 0], sizes = [4, 1], strides = [1, 1]} : vector<4x3xf32> to vector<4x1xf32>
    %320 = vector.broadcast %319 : vector<4x1xf32> to vector<4x9xf32>
    %321 = arith.mulf %320, %292 : vector<4x9xf32>
    %322 = vector.extract_strided_slice %223 {offsets = [0, 1], sizes = [4, 1], strides = [1, 1]} : vector<4x3xf32> to vector<4x1xf32>
    %323 = vector.broadcast %322 : vector<4x1xf32> to vector<4x9xf32>
    %324 = arith.mulf %323, %292 : vector<4x9xf32>
    %325 = vector.extract_strided_slice %223 {offsets = [0, 2], sizes = [4, 1], strides = [1, 1]} : vector<4x3xf32> to vector<4x1xf32>
    %326 = vector.broadcast %325 : vector<4x1xf32> to vector<4x9xf32>
    %327 = arith.mulf %326, %292 : vector<4x9xf32>
    %328 = tpu.concatenate %321, %324, %327 in 1 : vector<4x9xf32>, vector<4x9xf32>, vector<4x9xf32> -> vector<4x27xf32>
    %329 = arith.addf %318, %328 : vector<4x27xf32>
    %330 = vector.extract_strided_slice %235 {offsets = [0, 0], sizes = [4, 1], strides = [1, 1]} : vector<4x9xf32> to vector<4x1xf32>
    %331 = vector.broadcast %330 : vector<4x1xf32> to vector<4x3xf32>
    %332 = arith.mulf %331, %280 : vector<4x3xf32>
    %333 = vector.extract_strided_slice %235 {offsets = [0, 1], sizes = [4, 1], strides = [1, 1]} : vector<4x9xf32> to vector<4x1xf32>
    %334 = vector.broadcast %333 : vector<4x1xf32> to vector<4x3xf32>
    %335 = arith.mulf %334, %280 : vector<4x3xf32>
    %336 = vector.extract_strided_slice %235 {offsets = [0, 2], sizes = [4, 1], strides = [1, 1]} : vector<4x9xf32> to vector<4x1xf32>
    %337 = vector.broadcast %336 : vector<4x1xf32> to vector<4x3xf32>
    %338 = arith.mulf %337, %280 : vector<4x3xf32>
    %339 = vector.extract_strided_slice %235 {offsets = [0, 3], sizes = [4, 1], strides = [1, 1]} : vector<4x9xf32> to vector<4x1xf32>
    %340 = vector.broadcast %339 : vector<4x1xf32> to vector<4x3xf32>
    %341 = arith.mulf %340, %280 : vector<4x3xf32>
    %342 = vector.extract_strided_slice %235 {offsets = [0, 4], sizes = [4, 1], strides = [1, 1]} : vector<4x9xf32> to vector<4x1xf32>
    %343 = vector.broadcast %342 : vector<4x1xf32> to vector<4x3xf32>
    %344 = arith.mulf %343, %280 : vector<4x3xf32>
    %345 = vector.extract_strided_slice %235 {offsets = [0, 5], sizes = [4, 1], strides = [1, 1]} : vector<4x9xf32> to vector<4x1xf32>
    %346 = vector.broadcast %345 : vector<4x1xf32> to vector<4x3xf32>
    %347 = arith.mulf %346, %280 : vector<4x3xf32>
    %348 = vector.extract_strided_slice %235 {offsets = [0, 6], sizes = [4, 1], strides = [1, 1]} : vector<4x9xf32> to vector<4x1xf32>
    %349 = vector.broadcast %348 : vector<4x1xf32> to vector<4x3xf32>
    %350 = arith.mulf %349, %280 : vector<4x3xf32>
    %351 = vector.extract_strided_slice %235 {offsets = [0, 7], sizes = [4, 1], strides = [1, 1]} : vector<4x9xf32> to vector<4x1xf32>
    %352 = vector.broadcast %351 : vector<4x1xf32> to vector<4x3xf32>
    %353 = arith.mulf %352, %280 : vector<4x3xf32>
    %354 = vector.extract_strided_slice %235 {offsets = [0, 8], sizes = [4, 1], strides = [1, 1]} : vector<4x9xf32> to vector<4x1xf32>
    %355 = vector.broadcast %354 : vector<4x1xf32> to vector<4x3xf32>
    %356 = arith.mulf %355, %280 : vector<4x3xf32>
    %357 = tpu.concatenate %332, %335, %338, %341, %344, %347, %350, %353, %356 in 1 : vector<4x3xf32>, vector<4x3xf32>, vector<4x3xf32>, vector<4x3xf32>, vector<4x3xf32>, vector<4x3xf32>, vector<4x3xf32>, vector<4x3xf32>, vector<4x3xf32> -> vector<4x27xf32>
    %358 = arith.addf %329, %357 : vector<4x27xf32>
    %359 = vector.extract_strided_slice %28 {offsets = [0, 8], sizes = [4, 2], strides = [1, 1]} : vector<4x32xf32> to vector<4x2xf32>
    %360 = arith.subf %359, %277 : vector<4x2xf32>
    %cst_20 = arith.constant 0.0666666701 : f32
    %361 = vector.broadcast %cst_20 : f32 to vector<4x1xf32>
    %362 = tpu.concatenate %361, %360 in 1 : vector<4x1xf32>, vector<4x2xf32> -> vector<4x3xf32>
    %363 = vector.extract_strided_slice %362 {offsets = [0, 0], sizes = [4, 1], strides = [1, 1]} : vector<4x3xf32> to vector<4x1xf32>
    %364 = vector.broadcast %363 : vector<4x1xf32> to vector<4x3xf32>
    %365 = arith.mulf %364, %362 : vector<4x3xf32>
    %366 = vector.extract_strided_slice %362 {offsets = [0, 1], sizes = [4, 1], strides = [1, 1]} : vector<4x3xf32> to vector<4x1xf32>
    %367 = vector.broadcast %366 : vector<4x1xf32> to vector<4x3xf32>
    %368 = arith.mulf %367, %362 : vector<4x3xf32>
    %369 = vector.extract_strided_slice %362 {offsets = [0, 2], sizes = [4, 1], strides = [1, 1]} : vector<4x3xf32> to vector<4x1xf32>
    %370 = vector.broadcast %369 : vector<4x1xf32> to vector<4x3xf32>
    %371 = arith.mulf %370, %362 : vector<4x3xf32>
    %372 = tpu.concatenate %365, %368, %371 in 1 : vector<4x3xf32>, vector<4x3xf32>, vector<4x3xf32> -> vector<4x9xf32>
    %cst_21 = arith.constant 5.000000e-01 : f32
    %373 = vector.broadcast %cst_21 : f32 to vector<4x9xf32>
    %374 = arith.mulf %372, %373 : vector<4x9xf32>
    %375 = vector.extract_strided_slice %362 {offsets = [0, 0], sizes = [4, 1], strides = [1, 1]} : vector<4x3xf32> to vector<4x1xf32>
    %376 = vector.broadcast %375 : vector<4x1xf32> to vector<4x9xf32>
    %377 = arith.mulf %376, %374 : vector<4x9xf32>
    %378 = vector.extract_strided_slice %362 {offsets = [0, 1], sizes = [4, 1], strides = [1, 1]} : vector<4x3xf32> to vector<4x1xf32>
    %379 = vector.broadcast %378 : vector<4x1xf32> to vector<4x9xf32>
    %380 = arith.mulf %379, %374 : vector<4x9xf32>
    %381 = vector.extract_strided_slice %362 {offsets = [0, 2], sizes = [4, 1], strides = [1, 1]} : vector<4x3xf32> to vector<4x1xf32>
    %382 = vector.broadcast %381 : vector<4x1xf32> to vector<4x9xf32>
    %383 = arith.mulf %382, %374 : vector<4x9xf32>
    %384 = tpu.concatenate %377, %380, %383 in 1 : vector<4x9xf32>, vector<4x9xf32>, vector<4x9xf32> -> vector<4x27xf32>
    %cst_22 = arith.constant 0.333333343 : f32
    %385 = vector.broadcast %cst_22 : f32 to vector<4x27xf32>
    %386 = arith.mulf %384, %385 : vector<4x27xf32>
    %387 = arith.addf %305, %362 : vector<4x3xf32>
    %388 = arith.addf %317, %374 : vector<4x9xf32>
    %389 = vector.extract_strided_slice %305 {offsets = [0, 0], sizes = [4, 1], strides = [1, 1]} : vector<4x3xf32> to vector<4x1xf32>
    %390 = vector.broadcast %389 : vector<4x1xf32> to vector<4x3xf32>
    %391 = arith.mulf %390, %362 : vector<4x3xf32>
    %392 = vector.extract_strided_slice %305 {offsets = [0, 1], sizes = [4, 1], strides = [1, 1]} : vector<4x3xf32> to vector<4x1xf32>
    %393 = vector.broadcast %392 : vector<4x1xf32> to vector<4x3xf32>
    %394 = arith.mulf %393, %362 : vector<4x3xf32>
    %395 = vector.extract_strided_slice %305 {offsets = [0, 2], sizes = [4, 1], strides = [1, 1]} : vector<4x3xf32> to vector<4x1xf32>
    %396 = vector.broadcast %395 : vector<4x1xf32> to vector<4x3xf32>
    %397 = arith.mulf %396, %362 : vector<4x3xf32>
    %398 = tpu.concatenate %391, %394, %397 in 1 : vector<4x3xf32>, vector<4x3xf32>, vector<4x3xf32> -> vector<4x9xf32>
    %399 = arith.addf %388, %398 : vector<4x9xf32>
    %400 = arith.addf %358, %386 : vector<4x27xf32>
    %401 = vector.extract_strided_slice %305 {offsets = [0, 0], sizes = [4, 1], strides = [1, 1]} : vector<4x3xf32> to vector<4x1xf32>
    %402 = vector.broadcast %401 : vector<4x1xf32> to vector<4x9xf32>
    %403 = arith.mulf %402, %374 : vector<4x9xf32>
    %404 = vector.extract_strided_slice %305 {offsets = [0, 1], sizes = [4, 1], strides = [1, 1]} : vector<4x3xf32> to vector<4x1xf32>
    %405 = vector.broadcast %404 : vector<4x1xf32> to vector<4x9xf32>
    %406 = arith.mulf %405, %374 : vector<4x9xf32>
    %407 = vector.extract_strided_slice %305 {offsets = [0, 2], sizes = [4, 1], strides = [1, 1]} : vector<4x3xf32> to vector<4x1xf32>
    %408 = vector.broadcast %407 : vector<4x1xf32> to vector<4x9xf32>
    %409 = arith.mulf %408, %374 : vector<4x9xf32>
    %410 = tpu.concatenate %403, %406, %409 in 1 : vector<4x9xf32>, vector<4x9xf32>, vector<4x9xf32> -> vector<4x27xf32>
    %411 = arith.addf %400, %410 : vector<4x27xf32>
    %412 = vector.extract_strided_slice %317 {offsets = [0, 0], sizes = [4, 1], strides = [1, 1]} : vector<4x9xf32> to vector<4x1xf32>
    %413 = vector.broadcast %412 : vector<4x1xf32> to vector<4x3xf32>
    %414 = arith.mulf %413, %362 : vector<4x3xf32>
    %415 = vector.extract_strided_slice %317 {offsets = [0, 1], sizes = [4, 1], strides = [1, 1]} : vector<4x9xf32> to vector<4x1xf32>
    %416 = vector.broadcast %415 : vector<4x1xf32> to vector<4x3xf32>
    %417 = arith.mulf %416, %362 : vector<4x3xf32>
    %418 = vector.extract_strided_slice %317 {offsets = [0, 2], sizes = [4, 1], strides = [1, 1]} : vector<4x9xf32> to vector<4x1xf32>
    %419 = vector.broadcast %418 : vector<4x1xf32> to vector<4x3xf32>
    %420 = arith.mulf %419, %362 : vector<4x3xf32>
    %421 = vector.extract_strided_slice %317 {offsets = [0, 3], sizes = [4, 1], strides = [1, 1]} : vector<4x9xf32> to vector<4x1xf32>
    %422 = vector.broadcast %421 : vector<4x1xf32> to vector<4x3xf32>
    %423 = arith.mulf %422, %362 : vector<4x3xf32>
    %424 = vector.extract_strided_slice %317 {offsets = [0, 4], sizes = [4, 1], strides = [1, 1]} : vector<4x9xf32> to vector<4x1xf32>
    %425 = vector.broadcast %424 : vector<4x1xf32> to vector<4x3xf32>
    %426 = arith.mulf %425, %362 : vector<4x3xf32>
    %427 = vector.extract_strided_slice %317 {offsets = [0, 5], sizes = [4, 1], strides = [1, 1]} : vector<4x9xf32> to vector<4x1xf32>
    %428 = vector.broadcast %427 : vector<4x1xf32> to vector<4x3xf32>
    %429 = arith.mulf %428, %362 : vector<4x3xf32>
    %430 = vector.extract_strided_slice %317 {offsets = [0, 6], sizes = [4, 1], strides = [1, 1]} : vector<4x9xf32> to vector<4x1xf32>
    %431 = vector.broadcast %430 : vector<4x1xf32> to vector<4x3xf32>
    %432 = arith.mulf %431, %362 : vector<4x3xf32>
    %433 = vector.extract_strided_slice %317 {offsets = [0, 7], sizes = [4, 1], strides = [1, 1]} : vector<4x9xf32> to vector<4x1xf32>
    %434 = vector.broadcast %433 : vector<4x1xf32> to vector<4x3xf32>
    %435 = arith.mulf %434, %362 : vector<4x3xf32>
    %436 = vector.extract_strided_slice %317 {offsets = [0, 8], sizes = [4, 1], strides = [1, 1]} : vector<4x9xf32> to vector<4x1xf32>
    %437 = vector.broadcast %436 : vector<4x1xf32> to vector<4x3xf32>
    %438 = arith.mulf %437, %362 : vector<4x3xf32>
    %439 = tpu.concatenate %414, %417, %420, %423, %426, %429, %432, %435, %438 in 1 : vector<4x3xf32>, vector<4x3xf32>, vector<4x3xf32>, vector<4x3xf32>, vector<4x3xf32>, vector<4x3xf32>, vector<4x3xf32>, vector<4x3xf32>, vector<4x3xf32> -> vector<4x27xf32>
    %440 = arith.addf %411, %439 : vector<4x27xf32>
    %441 = vector.extract_strided_slice %28 {offsets = [0, 10], sizes = [4, 2], strides = [1, 1]} : vector<4x32xf32> to vector<4x2xf32>
    %442 = arith.subf %441, %359 : vector<4x2xf32>
    %cst_23 = arith.constant 0.0666666701 : f32
    %443 = vector.broadcast %cst_23 : f32 to vector<4x1xf32>
    %444 = tpu.concatenate %443, %442 in 1 : vector<4x1xf32>, vector<4x2xf32> -> vector<4x3xf32>
    %445 = vector.extract_strided_slice %444 {offsets = [0, 0], sizes = [4, 1], strides = [1, 1]} : vector<4x3xf32> to vector<4x1xf32>
    %446 = vector.broadcast %445 : vector<4x1xf32> to vector<4x3xf32>
    %447 = arith.mulf %446, %444 : vector<4x3xf32>
    %448 = vector.extract_strided_slice %444 {offsets = [0, 1], sizes = [4, 1], strides = [1, 1]} : vector<4x3xf32> to vector<4x1xf32>
    %449 = vector.broadcast %448 : vector<4x1xf32> to vector<4x3xf32>
    %450 = arith.mulf %449, %444 : vector<4x3xf32>
    %451 = vector.extract_strided_slice %444 {offsets = [0, 2], sizes = [4, 1], strides = [1, 1]} : vector<4x3xf32> to vector<4x1xf32>
    %452 = vector.broadcast %451 : vector<4x1xf32> to vector<4x3xf32>
    %453 = arith.mulf %452, %444 : vector<4x3xf32>
    %454 = tpu.concatenate %447, %450, %453 in 1 : vector<4x3xf32>, vector<4x3xf32>, vector<4x3xf32> -> vector<4x9xf32>
    %cst_24 = arith.constant 5.000000e-01 : f32
    %455 = vector.broadcast %cst_24 : f32 to vector<4x9xf32>
    %456 = arith.mulf %454, %455 : vector<4x9xf32>
    %457 = vector.extract_strided_slice %444 {offsets = [0, 0], sizes = [4, 1], strides = [1, 1]} : vector<4x3xf32> to vector<4x1xf32>
    %458 = vector.broadcast %457 : vector<4x1xf32> to vector<4x9xf32>
    %459 = arith.mulf %458, %456 : vector<4x9xf32>
    %460 = vector.extract_strided_slice %444 {offsets = [0, 1], sizes = [4, 1], strides = [1, 1]} : vector<4x3xf32> to vector<4x1xf32>
    %461 = vector.broadcast %460 : vector<4x1xf32> to vector<4x9xf32>
    %462 = arith.mulf %461, %456 : vector<4x9xf32>
    %463 = vector.extract_strided_slice %444 {offsets = [0, 2], sizes = [4, 1], strides = [1, 1]} : vector<4x3xf32> to vector<4x1xf32>
    %464 = vector.broadcast %463 : vector<4x1xf32> to vector<4x9xf32>
    %465 = arith.mulf %464, %456 : vector<4x9xf32>
    %466 = tpu.concatenate %459, %462, %465 in 1 : vector<4x9xf32>, vector<4x9xf32>, vector<4x9xf32> -> vector<4x27xf32>
    %cst_25 = arith.constant 0.333333343 : f32
    %467 = vector.broadcast %cst_25 : f32 to vector<4x27xf32>
    %468 = arith.mulf %466, %467 : vector<4x27xf32>
    %469 = arith.addf %387, %444 : vector<4x3xf32>
    %470 = arith.addf %399, %456 : vector<4x9xf32>
    %471 = vector.extract_strided_slice %387 {offsets = [0, 0], sizes = [4, 1], strides = [1, 1]} : vector<4x3xf32> to vector<4x1xf32>
    %472 = vector.broadcast %471 : vector<4x1xf32> to vector<4x3xf32>
    %473 = arith.mulf %472, %444 : vector<4x3xf32>
    %474 = vector.extract_strided_slice %387 {offsets = [0, 1], sizes = [4, 1], strides = [1, 1]} : vector<4x3xf32> to vector<4x1xf32>
    %475 = vector.broadcast %474 : vector<4x1xf32> to vector<4x3xf32>
    %476 = arith.mulf %475, %444 : vector<4x3xf32>
    %477 = vector.extract_strided_slice %387 {offsets = [0, 2], sizes = [4, 1], strides = [1, 1]} : vector<4x3xf32> to vector<4x1xf32>
    %478 = vector.broadcast %477 : vector<4x1xf32> to vector<4x3xf32>
    %479 = arith.mulf %478, %444 : vector<4x3xf32>
    %480 = tpu.concatenate %473, %476, %479 in 1 : vector<4x3xf32>, vector<4x3xf32>, vector<4x3xf32> -> vector<4x9xf32>
    %481 = arith.addf %470, %480 : vector<4x9xf32>
    %482 = arith.addf %440, %468 : vector<4x27xf32>
    %483 = vector.extract_strided_slice %387 {offsets = [0, 0], sizes = [4, 1], strides = [1, 1]} : vector<4x3xf32> to vector<4x1xf32>
    %484 = vector.broadcast %483 : vector<4x1xf32> to vector<4x9xf32>
    %485 = arith.mulf %484, %456 : vector<4x9xf32>
    %486 = vector.extract_strided_slice %387 {offsets = [0, 1], sizes = [4, 1], strides = [1, 1]} : vector<4x3xf32> to vector<4x1xf32>
    %487 = vector.broadcast %486 : vector<4x1xf32> to vector<4x9xf32>
    %488 = arith.mulf %487, %456 : vector<4x9xf32>
    %489 = vector.extract_strided_slice %387 {offsets = [0, 2], sizes = [4, 1], strides = [1, 1]} : vector<4x3xf32> to vector<4x1xf32>
    %490 = vector.broadcast %489 : vector<4x1xf32> to vector<4x9xf32>
    %491 = arith.mulf %490, %456 : vector<4x9xf32>
    %492 = tpu.concatenate %485, %488, %491 in 1 : vector<4x9xf32>, vector<4x9xf32>, vector<4x9xf32> -> vector<4x27xf32>
    %493 = arith.addf %482, %492 : vector<4x27xf32>
    %494 = vector.extract_strided_slice %399 {offsets = [0, 0], sizes = [4, 1], strides = [1, 1]} : vector<4x9xf32> to vector<4x1xf32>
    %495 = vector.broadcast %494 : vector<4x1xf32> to vector<4x3xf32>
    %496 = arith.mulf %495, %444 : vector<4x3xf32>
    %497 = vector.extract_strided_slice %399 {offsets = [0, 1], sizes = [4, 1], strides = [1, 1]} : vector<4x9xf32> to vector<4x1xf32>
    %498 = vector.broadcast %497 : vector<4x1xf32> to vector<4x3xf32>
    %499 = arith.mulf %498, %444 : vector<4x3xf32>
    %500 = vector.extract_strided_slice %399 {offsets = [0, 2], sizes = [4, 1], strides = [1, 1]} : vector<4x9xf32> to vector<4x1xf32>
    %501 = vector.broadcast %500 : vector<4x1xf32> to vector<4x3xf32>
    %502 = arith.mulf %501, %444 : vector<4x3xf32>
    %503 = vector.extract_strided_slice %399 {offsets = [0, 3], sizes = [4, 1], strides = [1, 1]} : vector<4x9xf32> to vector<4x1xf32>
    %504 = vector.broadcast %503 : vector<4x1xf32> to vector<4x3xf32>
    %505 = arith.mulf %504, %444 : vector<4x3xf32>
    %506 = vector.extract_strided_slice %399 {offsets = [0, 4], sizes = [4, 1], strides = [1, 1]} : vector<4x9xf32> to vector<4x1xf32>
    %507 = vector.broadcast %506 : vector<4x1xf32> to vector<4x3xf32>
    %508 = arith.mulf %507, %444 : vector<4x3xf32>
    %509 = vector.extract_strided_slice %399 {offsets = [0, 5], sizes = [4, 1], strides = [1, 1]} : vector<4x9xf32> to vector<4x1xf32>
    %510 = vector.broadcast %509 : vector<4x1xf32> to vector<4x3xf32>
    %511 = arith.mulf %510, %444 : vector<4x3xf32>
    %512 = vector.extract_strided_slice %399 {offsets = [0, 6], sizes = [4, 1], strides = [1, 1]} : vector<4x9xf32> to vector<4x1xf32>
    %513 = vector.broadcast %512 : vector<4x1xf32> to vector<4x3xf32>
    %514 = arith.mulf %513, %444 : vector<4x3xf32>
    %515 = vector.extract_strided_slice %399 {offsets = [0, 7], sizes = [4, 1], strides = [1, 1]} : vector<4x9xf32> to vector<4x1xf32>
    %516 = vector.broadcast %515 : vector<4x1xf32> to vector<4x3xf32>
    %517 = arith.mulf %516, %444 : vector<4x3xf32>
    %518 = vector.extract_strided_slice %399 {offsets = [0, 8], sizes = [4, 1], strides = [1, 1]} : vector<4x9xf32> to vector<4x1xf32>
    %519 = vector.broadcast %518 : vector<4x1xf32> to vector<4x3xf32>
    %520 = arith.mulf %519, %444 : vector<4x3xf32>
    %521 = tpu.concatenate %496, %499, %502, %505, %508, %511, %514, %517, %520 in 1 : vector<4x3xf32>, vector<4x3xf32>, vector<4x3xf32>, vector<4x3xf32>, vector<4x3xf32>, vector<4x3xf32>, vector<4x3xf32>, vector<4x3xf32>, vector<4x3xf32> -> vector<4x27xf32>
    %522 = arith.addf %493, %521 : vector<4x27xf32>
    %523 = vector.extract_strided_slice %28 {offsets = [0, 12], sizes = [4, 2], strides = [1, 1]} : vector<4x32xf32> to vector<4x2xf32>
    %524 = arith.subf %523, %441 : vector<4x2xf32>
    %cst_26 = arith.constant 0.0666666701 : f32
    %525 = vector.broadcast %cst_26 : f32 to vector<4x1xf32>
    %526 = tpu.concatenate %525, %524 in 1 : vector<4x1xf32>, vector<4x2xf32> -> vector<4x3xf32>
    %527 = vector.extract_strided_slice %526 {offsets = [0, 0], sizes = [4, 1], strides = [1, 1]} : vector<4x3xf32> to vector<4x1xf32>
    %528 = vector.broadcast %527 : vector<4x1xf32> to vector<4x3xf32>
    %529 = arith.mulf %528, %526 : vector<4x3xf32>
    %530 = vector.extract_strided_slice %526 {offsets = [0, 1], sizes = [4, 1], strides = [1, 1]} : vector<4x3xf32> to vector<4x1xf32>
    %531 = vector.broadcast %530 : vector<4x1xf32> to vector<4x3xf32>
    %532 = arith.mulf %531, %526 : vector<4x3xf32>
    %533 = vector.extract_strided_slice %526 {offsets = [0, 2], sizes = [4, 1], strides = [1, 1]} : vector<4x3xf32> to vector<4x1xf32>
    %534 = vector.broadcast %533 : vector<4x1xf32> to vector<4x3xf32>
    %535 = arith.mulf %534, %526 : vector<4x3xf32>
    %536 = tpu.concatenate %529, %532, %535 in 1 : vector<4x3xf32>, vector<4x3xf32>, vector<4x3xf32> -> vector<4x9xf32>
    %cst_27 = arith.constant 5.000000e-01 : f32
    %537 = vector.broadcast %cst_27 : f32 to vector<4x9xf32>
    %538 = arith.mulf %536, %537 : vector<4x9xf32>
    %539 = vector.extract_strided_slice %526 {offsets = [0, 0], sizes = [4, 1], strides = [1, 1]} : vector<4x3xf32> to vector<4x1xf32>
    %540 = vector.broadcast %539 : vector<4x1xf32> to vector<4x9xf32>
    %541 = arith.mulf %540, %538 : vector<4x9xf32>
    %542 = vector.extract_strided_slice %526 {offsets = [0, 1], sizes = [4, 1], strides = [1, 1]} : vector<4x3xf32> to vector<4x1xf32>
    %543 = vector.broadcast %542 : vector<4x1xf32> to vector<4x9xf32>
    %544 = arith.mulf %543, %538 : vector<4x9xf32>
    %545 = vector.extract_strided_slice %526 {offsets = [0, 2], sizes = [4, 1], strides = [1, 1]} : vector<4x3xf32> to vector<4x1xf32>
    %546 = vector.broadcast %545 : vector<4x1xf32> to vector<4x9xf32>
    %547 = arith.mulf %546, %538 : vector<4x9xf32>
    %548 = tpu.concatenate %541, %544, %547 in 1 : vector<4x9xf32>, vector<4x9xf32>, vector<4x9xf32> -> vector<4x27xf32>
    %cst_28 = arith.constant 0.333333343 : f32
    %549 = vector.broadcast %cst_28 : f32 to vector<4x27xf32>
    %550 = arith.mulf %548, %549 : vector<4x27xf32>
    %551 = arith.addf %469, %526 : vector<4x3xf32>
    %552 = arith.addf %481, %538 : vector<4x9xf32>
    %553 = vector.extract_strided_slice %469 {offsets = [0, 0], sizes = [4, 1], strides = [1, 1]} : vector<4x3xf32> to vector<4x1xf32>
    %554 = vector.broadcast %553 : vector<4x1xf32> to vector<4x3xf32>
    %555 = arith.mulf %554, %526 : vector<4x3xf32>
    %556 = vector.extract_strided_slice %469 {offsets = [0, 1], sizes = [4, 1], strides = [1, 1]} : vector<4x3xf32> to vector<4x1xf32>
    %557 = vector.broadcast %556 : vector<4x1xf32> to vector<4x3xf32>
    %558 = arith.mulf %557, %526 : vector<4x3xf32>
    %559 = vector.extract_strided_slice %469 {offsets = [0, 2], sizes = [4, 1], strides = [1, 1]} : vector<4x3xf32> to vector<4x1xf32>
    %560 = vector.broadcast %559 : vector<4x1xf32> to vector<4x3xf32>
    %561 = arith.mulf %560, %526 : vector<4x3xf32>
    %562 = tpu.concatenate %555, %558, %561 in 1 : vector<4x3xf32>, vector<4x3xf32>, vector<4x3xf32> -> vector<4x9xf32>
    %563 = arith.addf %552, %562 : vector<4x9xf32>
    %564 = arith.addf %522, %550 : vector<4x27xf32>
    %565 = vector.extract_strided_slice %469 {offsets = [0, 0], sizes = [4, 1], strides = [1, 1]} : vector<4x3xf32> to vector<4x1xf32>
    %566 = vector.broadcast %565 : vector<4x1xf32> to vector<4x9xf32>
    %567 = arith.mulf %566, %538 : vector<4x9xf32>
    %568 = vector.extract_strided_slice %469 {offsets = [0, 1], sizes = [4, 1], strides = [1, 1]} : vector<4x3xf32> to vector<4x1xf32>
    %569 = vector.broadcast %568 : vector<4x1xf32> to vector<4x9xf32>
    %570 = arith.mulf %569, %538 : vector<4x9xf32>
    %571 = vector.extract_strided_slice %469 {offsets = [0, 2], sizes = [4, 1], strides = [1, 1]} : vector<4x3xf32> to vector<4x1xf32>
    %572 = vector.broadcast %571 : vector<4x1xf32> to vector<4x9xf32>
    %573 = arith.mulf %572, %538 : vector<4x9xf32>
    %574 = tpu.concatenate %567, %570, %573 in 1 : vector<4x9xf32>, vector<4x9xf32>, vector<4x9xf32> -> vector<4x27xf32>
    %575 = arith.addf %564, %574 : vector<4x27xf32>
    %576 = vector.extract_strided_slice %481 {offsets = [0, 0], sizes = [4, 1], strides = [1, 1]} : vector<4x9xf32> to vector<4x1xf32>
    %577 = vector.broadcast %576 : vector<4x1xf32> to vector<4x3xf32>
    %578 = arith.mulf %577, %526 : vector<4x3xf32>
    %579 = vector.extract_strided_slice %481 {offsets = [0, 1], sizes = [4, 1], strides = [1, 1]} : vector<4x9xf32> to vector<4x1xf32>
    %580 = vector.broadcast %579 : vector<4x1xf32> to vector<4x3xf32>
    %581 = arith.mulf %580, %526 : vector<4x3xf32>
    %582 = vector.extract_strided_slice %481 {offsets = [0, 2], sizes = [4, 1], strides = [1, 1]} : vector<4x9xf32> to vector<4x1xf32>
    %583 = vector.broadcast %582 : vector<4x1xf32> to vector<4x3xf32>
    %584 = arith.mulf %583, %526 : vector<4x3xf32>
    %585 = vector.extract_strided_slice %481 {offsets = [0, 3], sizes = [4, 1], strides = [1, 1]} : vector<4x9xf32> to vector<4x1xf32>
    %586 = vector.broadcast %585 : vector<4x1xf32> to vector<4x3xf32>
    %587 = arith.mulf %586, %526 : vector<4x3xf32>
    %588 = vector.extract_strided_slice %481 {offsets = [0, 4], sizes = [4, 1], strides = [1, 1]} : vector<4x9xf32> to vector<4x1xf32>
    %589 = vector.broadcast %588 : vector<4x1xf32> to vector<4x3xf32>
    %590 = arith.mulf %589, %526 : vector<4x3xf32>
    %591 = vector.extract_strided_slice %481 {offsets = [0, 5], sizes = [4, 1], strides = [1, 1]} : vector<4x9xf32> to vector<4x1xf32>
    %592 = vector.broadcast %591 : vector<4x1xf32> to vector<4x3xf32>
    %593 = arith.mulf %592, %526 : vector<4x3xf32>
    %594 = vector.extract_strided_slice %481 {offsets = [0, 6], sizes = [4, 1], strides = [1, 1]} : vector<4x9xf32> to vector<4x1xf32>
    %595 = vector.broadcast %594 : vector<4x1xf32> to vector<4x3xf32>
    %596 = arith.mulf %595, %526 : vector<4x3xf32>
    %597 = vector.extract_strided_slice %481 {offsets = [0, 7], sizes = [4, 1], strides = [1, 1]} : vector<4x9xf32> to vector<4x1xf32>
    %598 = vector.broadcast %597 : vector<4x1xf32> to vector<4x3xf32>
    %599 = arith.mulf %598, %526 : vector<4x3xf32>
    %600 = vector.extract_strided_slice %481 {offsets = [0, 8], sizes = [4, 1], strides = [1, 1]} : vector<4x9xf32> to vector<4x1xf32>
    %601 = vector.broadcast %600 : vector<4x1xf32> to vector<4x3xf32>
    %602 = arith.mulf %601, %526 : vector<4x3xf32>
    %603 = tpu.concatenate %578, %581, %584, %587, %590, %593, %596, %599, %602 in 1 : vector<4x3xf32>, vector<4x3xf32>, vector<4x3xf32>, vector<4x3xf32>, vector<4x3xf32>, vector<4x3xf32>, vector<4x3xf32>, vector<4x3xf32>, vector<4x3xf32> -> vector<4x27xf32>
    %604 = arith.addf %575, %603 : vector<4x27xf32>
    %605 = vector.extract_strided_slice %28 {offsets = [0, 14], sizes = [4, 2], strides = [1, 1]} : vector<4x32xf32> to vector<4x2xf32>
    %606 = arith.subf %605, %523 : vector<4x2xf32>
    %cst_29 = arith.constant 0.0666666701 : f32
    %607 = vector.broadcast %cst_29 : f32 to vector<4x1xf32>
    %608 = tpu.concatenate %607, %606 in 1 : vector<4x1xf32>, vector<4x2xf32> -> vector<4x3xf32>
    %609 = vector.extract_strided_slice %608 {offsets = [0, 0], sizes = [4, 1], strides = [1, 1]} : vector<4x3xf32> to vector<4x1xf32>
    %610 = vector.broadcast %609 : vector<4x1xf32> to vector<4x3xf32>
    %611 = arith.mulf %610, %608 : vector<4x3xf32>
    %612 = vector.extract_strided_slice %608 {offsets = [0, 1], sizes = [4, 1], strides = [1, 1]} : vector<4x3xf32> to vector<4x1xf32>
    %613 = vector.broadcast %612 : vector<4x1xf32> to vector<4x3xf32>
    %614 = arith.mulf %613, %608 : vector<4x3xf32>
    %615 = vector.extract_strided_slice %608 {offsets = [0, 2], sizes = [4, 1], strides = [1, 1]} : vector<4x3xf32> to vector<4x1xf32>
    %616 = vector.broadcast %615 : vector<4x1xf32> to vector<4x3xf32>
    %617 = arith.mulf %616, %608 : vector<4x3xf32>
    %618 = tpu.concatenate %611, %614, %617 in 1 : vector<4x3xf32>, vector<4x3xf32>, vector<4x3xf32> -> vector<4x9xf32>
    %cst_30 = arith.constant 5.000000e-01 : f32
    %619 = vector.broadcast %cst_30 : f32 to vector<4x9xf32>
    %620 = arith.mulf %618, %619 : vector<4x9xf32>
    %621 = vector.extract_strided_slice %608 {offsets = [0, 0], sizes = [4, 1], strides = [1, 1]} : vector<4x3xf32> to vector<4x1xf32>
    %622 = vector.broadcast %621 : vector<4x1xf32> to vector<4x9xf32>
    %623 = arith.mulf %622, %620 : vector<4x9xf32>
    %624 = vector.extract_strided_slice %608 {offsets = [0, 1], sizes = [4, 1], strides = [1, 1]} : vector<4x3xf32> to vector<4x1xf32>
    %625 = vector.broadcast %624 : vector<4x1xf32> to vector<4x9xf32>
    %626 = arith.mulf %625, %620 : vector<4x9xf32>
    %627 = vector.extract_strided_slice %608 {offsets = [0, 2], sizes = [4, 1], strides = [1, 1]} : vector<4x3xf32> to vector<4x1xf32>
    %628 = vector.broadcast %627 : vector<4x1xf32> to vector<4x9xf32>
    %629 = arith.mulf %628, %620 : vector<4x9xf32>
    %630 = tpu.concatenate %623, %626, %629 in 1 : vector<4x9xf32>, vector<4x9xf32>, vector<4x9xf32> -> vector<4x27xf32>
    %cst_31 = arith.constant 0.333333343 : f32
    %631 = vector.broadcast %cst_31 : f32 to vector<4x27xf32>
    %632 = arith.mulf %630, %631 : vector<4x27xf32>
    %633 = arith.addf %551, %608 : vector<4x3xf32>
    %634 = arith.addf %563, %620 : vector<4x9xf32>
    %635 = vector.extract_strided_slice %551 {offsets = [0, 0], sizes = [4, 1], strides = [1, 1]} : vector<4x3xf32> to vector<4x1xf32>
    %636 = vector.broadcast %635 : vector<4x1xf32> to vector<4x3xf32>
    %637 = arith.mulf %636, %608 : vector<4x3xf32>
    %638 = vector.extract_strided_slice %551 {offsets = [0, 1], sizes = [4, 1], strides = [1, 1]} : vector<4x3xf32> to vector<4x1xf32>
    %639 = vector.broadcast %638 : vector<4x1xf32> to vector<4x3xf32>
    %640 = arith.mulf %639, %608 : vector<4x3xf32>
    %641 = vector.extract_strided_slice %551 {offsets = [0, 2], sizes = [4, 1], strides = [1, 1]} : vector<4x3xf32> to vector<4x1xf32>
    %642 = vector.broadcast %641 : vector<4x1xf32> to vector<4x3xf32>
    %643 = arith.mulf %642, %608 : vector<4x3xf32>
    %644 = tpu.concatenate %637, %640, %643 in 1 : vector<4x3xf32>, vector<4x3xf32>, vector<4x3xf32> -> vector<4x9xf32>
    %645 = arith.addf %634, %644 : vector<4x9xf32>
    %646 = arith.addf %604, %632 : vector<4x27xf32>
    %647 = vector.extract_strided_slice %551 {offsets = [0, 0], sizes = [4, 1], strides = [1, 1]} : vector<4x3xf32> to vector<4x1xf32>
    %648 = vector.broadcast %647 : vector<4x1xf32> to vector<4x9xf32>
    %649 = arith.mulf %648, %620 : vector<4x9xf32>
    %650 = vector.extract_strided_slice %551 {offsets = [0, 1], sizes = [4, 1], strides = [1, 1]} : vector<4x3xf32> to vector<4x1xf32>
    %651 = vector.broadcast %650 : vector<4x1xf32> to vector<4x9xf32>
    %652 = arith.mulf %651, %620 : vector<4x9xf32>
    %653 = vector.extract_strided_slice %551 {offsets = [0, 2], sizes = [4, 1], strides = [1, 1]} : vector<4x3xf32> to vector<4x1xf32>
    %654 = vector.broadcast %653 : vector<4x1xf32> to vector<4x9xf32>
    %655 = arith.mulf %654, %620 : vector<4x9xf32>
    %656 = tpu.concatenate %649, %652, %655 in 1 : vector<4x9xf32>, vector<4x9xf32>, vector<4x9xf32> -> vector<4x27xf32>
    %657 = arith.addf %646, %656 : vector<4x27xf32>
    %658 = vector.extract_strided_slice %563 {offsets = [0, 0], sizes = [4, 1], strides = [1, 1]} : vector<4x9xf32> to vector<4x1xf32>
    %659 = vector.broadcast %658 : vector<4x1xf32> to vector<4x3xf32>
    %660 = arith.mulf %659, %608 : vector<4x3xf32>
    %661 = vector.extract_strided_slice %563 {offsets = [0, 1], sizes = [4, 1], strides = [1, 1]} : vector<4x9xf32> to vector<4x1xf32>
    %662 = vector.broadcast %661 : vector<4x1xf32> to vector<4x3xf32>
    %663 = arith.mulf %662, %608 : vector<4x3xf32>
    %664 = vector.extract_strided_slice %563 {offsets = [0, 2], sizes = [4, 1], strides = [1, 1]} : vector<4x9xf32> to vector<4x1xf32>
    %665 = vector.broadcast %664 : vector<4x1xf32> to vector<4x3xf32>
    %666 = arith.mulf %665, %608 : vector<4x3xf32>
    %667 = vector.extract_strided_slice %563 {offsets = [0, 3], sizes = [4, 1], strides = [1, 1]} : vector<4x9xf32> to vector<4x1xf32>
    %668 = vector.broadcast %667 : vector<4x1xf32> to vector<4x3xf32>
    %669 = arith.mulf %668, %608 : vector<4x3xf32>
    %670 = vector.extract_strided_slice %563 {offsets = [0, 4], sizes = [4, 1], strides = [1, 1]} : vector<4x9xf32> to vector<4x1xf32>
    %671 = vector.broadcast %670 : vector<4x1xf32> to vector<4x3xf32>
    %672 = arith.mulf %671, %608 : vector<4x3xf32>
    %673 = vector.extract_strided_slice %563 {offsets = [0, 5], sizes = [4, 1], strides = [1, 1]} : vector<4x9xf32> to vector<4x1xf32>
    %674 = vector.broadcast %673 : vector<4x1xf32> to vector<4x3xf32>
    %675 = arith.mulf %674, %608 : vector<4x3xf32>
    %676 = vector.extract_strided_slice %563 {offsets = [0, 6], sizes = [4, 1], strides = [1, 1]} : vector<4x9xf32> to vector<4x1xf32>
    %677 = vector.broadcast %676 : vector<4x1xf32> to vector<4x3xf32>
    %678 = arith.mulf %677, %608 : vector<4x3xf32>
    %679 = vector.extract_strided_slice %563 {offsets = [0, 7], sizes = [4, 1], strides = [1, 1]} : vector<4x9xf32> to vector<4x1xf32>
    %680 = vector.broadcast %679 : vector<4x1xf32> to vector<4x3xf32>
    %681 = arith.mulf %680, %608 : vector<4x3xf32>
    %682 = vector.extract_strided_slice %563 {offsets = [0, 8], sizes = [4, 1], strides = [1, 1]} : vector<4x9xf32> to vector<4x1xf32>
    %683 = vector.broadcast %682 : vector<4x1xf32> to vector<4x3xf32>
    %684 = arith.mulf %683, %608 : vector<4x3xf32>
    %685 = tpu.concatenate %660, %663, %666, %669, %672, %675, %678, %681, %684 in 1 : vector<4x3xf32>, vector<4x3xf32>, vector<4x3xf32>, vector<4x3xf32>, vector<4x3xf32>, vector<4x3xf32>, vector<4x3xf32>, vector<4x3xf32>, vector<4x3xf32> -> vector<4x27xf32>
    %686 = arith.addf %657, %685 : vector<4x27xf32>
    %687 = vector.extract_strided_slice %28 {offsets = [0, 16], sizes = [4, 2], strides = [1, 1]} : vector<4x32xf32> to vector<4x2xf32>
    %688 = arith.subf %687, %605 : vector<4x2xf32>
    %cst_32 = arith.constant 0.0666666701 : f32
    %689 = vector.broadcast %cst_32 : f32 to vector<4x1xf32>
    %690 = tpu.concatenate %689, %688 in 1 : vector<4x1xf32>, vector<4x2xf32> -> vector<4x3xf32>
    %691 = vector.extract_strided_slice %690 {offsets = [0, 0], sizes = [4, 1], strides = [1, 1]} : vector<4x3xf32> to vector<4x1xf32>
    %692 = vector.broadcast %691 : vector<4x1xf32> to vector<4x3xf32>
    %693 = arith.mulf %692, %690 : vector<4x3xf32>
    %694 = vector.extract_strided_slice %690 {offsets = [0, 1], sizes = [4, 1], strides = [1, 1]} : vector<4x3xf32> to vector<4x1xf32>
    %695 = vector.broadcast %694 : vector<4x1xf32> to vector<4x3xf32>
    %696 = arith.mulf %695, %690 : vector<4x3xf32>
    %697 = vector.extract_strided_slice %690 {offsets = [0, 2], sizes = [4, 1], strides = [1, 1]} : vector<4x3xf32> to vector<4x1xf32>
    %698 = vector.broadcast %697 : vector<4x1xf32> to vector<4x3xf32>
    %699 = arith.mulf %698, %690 : vector<4x3xf32>
    %700 = tpu.concatenate %693, %696, %699 in 1 : vector<4x3xf32>, vector<4x3xf32>, vector<4x3xf32> -> vector<4x9xf32>
    %cst_33 = arith.constant 5.000000e-01 : f32
    %701 = vector.broadcast %cst_33 : f32 to vector<4x9xf32>
    %702 = arith.mulf %700, %701 : vector<4x9xf32>
    %703 = vector.extract_strided_slice %690 {offsets = [0, 0], sizes = [4, 1], strides = [1, 1]} : vector<4x3xf32> to vector<4x1xf32>
    %704 = vector.broadcast %703 : vector<4x1xf32> to vector<4x9xf32>
    %705 = arith.mulf %704, %702 : vector<4x9xf32>
    %706 = vector.extract_strided_slice %690 {offsets = [0, 1], sizes = [4, 1], strides = [1, 1]} : vector<4x3xf32> to vector<4x1xf32>
    %707 = vector.broadcast %706 : vector<4x1xf32> to vector<4x9xf32>
    %708 = arith.mulf %707, %702 : vector<4x9xf32>
    %709 = vector.extract_strided_slice %690 {offsets = [0, 2], sizes = [4, 1], strides = [1, 1]} : vector<4x3xf32> to vector<4x1xf32>
    %710 = vector.broadcast %709 : vector<4x1xf32> to vector<4x9xf32>
    %711 = arith.mulf %710, %702 : vector<4x9xf32>
    %712 = tpu.concatenate %705, %708, %711 in 1 : vector<4x9xf32>, vector<4x9xf32>, vector<4x9xf32> -> vector<4x27xf32>
    %cst_34 = arith.constant 0.333333343 : f32
    %713 = vector.broadcast %cst_34 : f32 to vector<4x27xf32>
    %714 = arith.mulf %712, %713 : vector<4x27xf32>
    %715 = arith.addf %633, %690 : vector<4x3xf32>
    %716 = arith.addf %645, %702 : vector<4x9xf32>
    %717 = vector.extract_strided_slice %633 {offsets = [0, 0], sizes = [4, 1], strides = [1, 1]} : vector<4x3xf32> to vector<4x1xf32>
    %718 = vector.broadcast %717 : vector<4x1xf32> to vector<4x3xf32>
    %719 = arith.mulf %718, %690 : vector<4x3xf32>
    %720 = vector.extract_strided_slice %633 {offsets = [0, 1], sizes = [4, 1], strides = [1, 1]} : vector<4x3xf32> to vector<4x1xf32>
    %721 = vector.broadcast %720 : vector<4x1xf32> to vector<4x3xf32>
    %722 = arith.mulf %721, %690 : vector<4x3xf32>
    %723 = vector.extract_strided_slice %633 {offsets = [0, 2], sizes = [4, 1], strides = [1, 1]} : vector<4x3xf32> to vector<4x1xf32>
    %724 = vector.broadcast %723 : vector<4x1xf32> to vector<4x3xf32>
    %725 = arith.mulf %724, %690 : vector<4x3xf32>
    %726 = tpu.concatenate %719, %722, %725 in 1 : vector<4x3xf32>, vector<4x3xf32>, vector<4x3xf32> -> vector<4x9xf32>
    %727 = arith.addf %716, %726 : vector<4x9xf32>
    %728 = arith.addf %686, %714 : vector<4x27xf32>
    %729 = vector.extract_strided_slice %633 {offsets = [0, 0], sizes = [4, 1], strides = [1, 1]} : vector<4x3xf32> to vector<4x1xf32>
    %730 = vector.broadcast %729 : vector<4x1xf32> to vector<4x9xf32>
    %731 = arith.mulf %730, %702 : vector<4x9xf32>
    %732 = vector.extract_strided_slice %633 {offsets = [0, 1], sizes = [4, 1], strides = [1, 1]} : vector<4x3xf32> to vector<4x1xf32>
    %733 = vector.broadcast %732 : vector<4x1xf32> to vector<4x9xf32>
    %734 = arith.mulf %733, %702 : vector<4x9xf32>
    %735 = vector.extract_strided_slice %633 {offsets = [0, 2], sizes = [4, 1], strides = [1, 1]} : vector<4x3xf32> to vector<4x1xf32>
    %736 = vector.broadcast %735 : vector<4x1xf32> to vector<4x9xf32>
    %737 = arith.mulf %736, %702 : vector<4x9xf32>
    %738 = tpu.concatenate %731, %734, %737 in 1 : vector<4x9xf32>, vector<4x9xf32>, vector<4x9xf32> -> vector<4x27xf32>
    %739 = arith.addf %728, %738 : vector<4x27xf32>
    %740 = vector.extract_strided_slice %645 {offsets = [0, 0], sizes = [4, 1], strides = [1, 1]} : vector<4x9xf32> to vector<4x1xf32>
    %741 = vector.broadcast %740 : vector<4x1xf32> to vector<4x3xf32>
    %742 = arith.mulf %741, %690 : vector<4x3xf32>
    %743 = vector.extract_strided_slice %645 {offsets = [0, 1], sizes = [4, 1], strides = [1, 1]} : vector<4x9xf32> to vector<4x1xf32>
    %744 = vector.broadcast %743 : vector<4x1xf32> to vector<4x3xf32>
    %745 = arith.mulf %744, %690 : vector<4x3xf32>
    %746 = vector.extract_strided_slice %645 {offsets = [0, 2], sizes = [4, 1], strides = [1, 1]} : vector<4x9xf32> to vector<4x1xf32>
    %747 = vector.broadcast %746 : vector<4x1xf32> to vector<4x3xf32>
    %748 = arith.mulf %747, %690 : vector<4x3xf32>
    %749 = vector.extract_strided_slice %645 {offsets = [0, 3], sizes = [4, 1], strides = [1, 1]} : vector<4x9xf32> to vector<4x1xf32>
    %750 = vector.broadcast %749 : vector<4x1xf32> to vector<4x3xf32>
    %751 = arith.mulf %750, %690 : vector<4x3xf32>
    %752 = vector.extract_strided_slice %645 {offsets = [0, 4], sizes = [4, 1], strides = [1, 1]} : vector<4x9xf32> to vector<4x1xf32>
    %753 = vector.broadcast %752 : vector<4x1xf32> to vector<4x3xf32>
    %754 = arith.mulf %753, %690 : vector<4x3xf32>
    %755 = vector.extract_strided_slice %645 {offsets = [0, 5], sizes = [4, 1], strides = [1, 1]} : vector<4x9xf32> to vector<4x1xf32>
    %756 = vector.broadcast %755 : vector<4x1xf32> to vector<4x3xf32>
    %757 = arith.mulf %756, %690 : vector<4x3xf32>
    %758 = vector.extract_strided_slice %645 {offsets = [0, 6], sizes = [4, 1], strides = [1, 1]} : vector<4x9xf32> to vector<4x1xf32>
    %759 = vector.broadcast %758 : vector<4x1xf32> to vector<4x3xf32>
    %760 = arith.mulf %759, %690 : vector<4x3xf32>
    %761 = vector.extract_strided_slice %645 {offsets = [0, 7], sizes = [4, 1], strides = [1, 1]} : vector<4x9xf32> to vector<4x1xf32>
    %762 = vector.broadcast %761 : vector<4x1xf32> to vector<4x3xf32>
    %763 = arith.mulf %762, %690 : vector<4x3xf32>
    %764 = vector.extract_strided_slice %645 {offsets = [0, 8], sizes = [4, 1], strides = [1, 1]} : vector<4x9xf32> to vector<4x1xf32>
    %765 = vector.broadcast %764 : vector<4x1xf32> to vector<4x3xf32>
    %766 = arith.mulf %765, %690 : vector<4x3xf32>
    %767 = tpu.concatenate %742, %745, %748, %751, %754, %757, %760, %763, %766 in 1 : vector<4x3xf32>, vector<4x3xf32>, vector<4x3xf32>, vector<4x3xf32>, vector<4x3xf32>, vector<4x3xf32>, vector<4x3xf32>, vector<4x3xf32>, vector<4x3xf32> -> vector<4x27xf32>
    %768 = arith.addf %739, %767 : vector<4x27xf32>
    %769 = vector.extract_strided_slice %28 {offsets = [0, 18], sizes = [4, 2], strides = [1, 1]} : vector<4x32xf32> to vector<4x2xf32>
    %770 = arith.subf %769, %687 : vector<4x2xf32>
    %cst_35 = arith.constant 0.0666666701 : f32
    %771 = vector.broadcast %cst_35 : f32 to vector<4x1xf32>
    %772 = tpu.concatenate %771, %770 in 1 : vector<4x1xf32>, vector<4x2xf32> -> vector<4x3xf32>
    %773 = vector.extract_strided_slice %772 {offsets = [0, 0], sizes = [4, 1], strides = [1, 1]} : vector<4x3xf32> to vector<4x1xf32>
    %774 = vector.broadcast %773 : vector<4x1xf32> to vector<4x3xf32>
    %775 = arith.mulf %774, %772 : vector<4x3xf32>
    %776 = vector.extract_strided_slice %772 {offsets = [0, 1], sizes = [4, 1], strides = [1, 1]} : vector<4x3xf32> to vector<4x1xf32>
    %777 = vector.broadcast %776 : vector<4x1xf32> to vector<4x3xf32>
    %778 = arith.mulf %777, %772 : vector<4x3xf32>
    %779 = vector.extract_strided_slice %772 {offsets = [0, 2], sizes = [4, 1], strides = [1, 1]} : vector<4x3xf32> to vector<4x1xf32>
    %780 = vector.broadcast %779 : vector<4x1xf32> to vector<4x3xf32>
    %781 = arith.mulf %780, %772 : vector<4x3xf32>
    %782 = tpu.concatenate %775, %778, %781 in 1 : vector<4x3xf32>, vector<4x3xf32>, vector<4x3xf32> -> vector<4x9xf32>
    %cst_36 = arith.constant 5.000000e-01 : f32
    %783 = vector.broadcast %cst_36 : f32 to vector<4x9xf32>
    %784 = arith.mulf %782, %783 : vector<4x9xf32>
    %785 = vector.extract_strided_slice %772 {offsets = [0, 0], sizes = [4, 1], strides = [1, 1]} : vector<4x3xf32> to vector<4x1xf32>
    %786 = vector.broadcast %785 : vector<4x1xf32> to vector<4x9xf32>
    %787 = arith.mulf %786, %784 : vector<4x9xf32>
    %788 = vector.extract_strided_slice %772 {offsets = [0, 1], sizes = [4, 1], strides = [1, 1]} : vector<4x3xf32> to vector<4x1xf32>
    %789 = vector.broadcast %788 : vector<4x1xf32> to vector<4x9xf32>
    %790 = arith.mulf %789, %784 : vector<4x9xf32>
    %791 = vector.extract_strided_slice %772 {offsets = [0, 2], sizes = [4, 1], strides = [1, 1]} : vector<4x3xf32> to vector<4x1xf32>
    %792 = vector.broadcast %791 : vector<4x1xf32> to vector<4x9xf32>
    %793 = arith.mulf %792, %784 : vector<4x9xf32>
    %794 = tpu.concatenate %787, %790, %793 in 1 : vector<4x9xf32>, vector<4x9xf32>, vector<4x9xf32> -> vector<4x27xf32>
    %cst_37 = arith.constant 0.333333343 : f32
    %795 = vector.broadcast %cst_37 : f32 to vector<4x27xf32>
    %796 = arith.mulf %794, %795 : vector<4x27xf32>
    %797 = arith.addf %715, %772 : vector<4x3xf32>
    %798 = arith.addf %727, %784 : vector<4x9xf32>
    %799 = vector.extract_strided_slice %715 {offsets = [0, 0], sizes = [4, 1], strides = [1, 1]} : vector<4x3xf32> to vector<4x1xf32>
    %800 = vector.broadcast %799 : vector<4x1xf32> to vector<4x3xf32>
    %801 = arith.mulf %800, %772 : vector<4x3xf32>
    %802 = vector.extract_strided_slice %715 {offsets = [0, 1], sizes = [4, 1], strides = [1, 1]} : vector<4x3xf32> to vector<4x1xf32>
    %803 = vector.broadcast %802 : vector<4x1xf32> to vector<4x3xf32>
    %804 = arith.mulf %803, %772 : vector<4x3xf32>
    %805 = vector.extract_strided_slice %715 {offsets = [0, 2], sizes = [4, 1], strides = [1, 1]} : vector<4x3xf32> to vector<4x1xf32>
    %806 = vector.broadcast %805 : vector<4x1xf32> to vector<4x3xf32>
    %807 = arith.mulf %806, %772 : vector<4x3xf32>
    %808 = tpu.concatenate %801, %804, %807 in 1 : vector<4x3xf32>, vector<4x3xf32>, vector<4x3xf32> -> vector<4x9xf32>
    %809 = arith.addf %798, %808 : vector<4x9xf32>
    %810 = arith.addf %768, %796 : vector<4x27xf32>
    %811 = vector.extract_strided_slice %715 {offsets = [0, 0], sizes = [4, 1], strides = [1, 1]} : vector<4x3xf32> to vector<4x1xf32>
    %812 = vector.broadcast %811 : vector<4x1xf32> to vector<4x9xf32>
    %813 = arith.mulf %812, %784 : vector<4x9xf32>
    %814 = vector.extract_strided_slice %715 {offsets = [0, 1], sizes = [4, 1], strides = [1, 1]} : vector<4x3xf32> to vector<4x1xf32>
    %815 = vector.broadcast %814 : vector<4x1xf32> to vector<4x9xf32>
    %816 = arith.mulf %815, %784 : vector<4x9xf32>
    %817 = vector.extract_strided_slice %715 {offsets = [0, 2], sizes = [4, 1], strides = [1, 1]} : vector<4x3xf32> to vector<4x1xf32>
    %818 = vector.broadcast %817 : vector<4x1xf32> to vector<4x9xf32>
    %819 = arith.mulf %818, %784 : vector<4x9xf32>
    %820 = tpu.concatenate %813, %816, %819 in 1 : vector<4x9xf32>, vector<4x9xf32>, vector<4x9xf32> -> vector<4x27xf32>
    %821 = arith.addf %810, %820 : vector<4x27xf32>
    %822 = vector.extract_strided_slice %727 {offsets = [0, 0], sizes = [4, 1], strides = [1, 1]} : vector<4x9xf32> to vector<4x1xf32>
    %823 = vector.broadcast %822 : vector<4x1xf32> to vector<4x3xf32>
    %824 = arith.mulf %823, %772 : vector<4x3xf32>
    %825 = vector.extract_strided_slice %727 {offsets = [0, 1], sizes = [4, 1], strides = [1, 1]} : vector<4x9xf32> to vector<4x1xf32>
    %826 = vector.broadcast %825 : vector<4x1xf32> to vector<4x3xf32>
    %827 = arith.mulf %826, %772 : vector<4x3xf32>
    %828 = vector.extract_strided_slice %727 {offsets = [0, 2], sizes = [4, 1], strides = [1, 1]} : vector<4x9xf32> to vector<4x1xf32>
    %829 = vector.broadcast %828 : vector<4x1xf32> to vector<4x3xf32>
    %830 = arith.mulf %829, %772 : vector<4x3xf32>
    %831 = vector.extract_strided_slice %727 {offsets = [0, 3], sizes = [4, 1], strides = [1, 1]} : vector<4x9xf32> to vector<4x1xf32>
    %832 = vector.broadcast %831 : vector<4x1xf32> to vector<4x3xf32>
    %833 = arith.mulf %832, %772 : vector<4x3xf32>
    %834 = vector.extract_strided_slice %727 {offsets = [0, 4], sizes = [4, 1], strides = [1, 1]} : vector<4x9xf32> to vector<4x1xf32>
    %835 = vector.broadcast %834 : vector<4x1xf32> to vector<4x3xf32>
    %836 = arith.mulf %835, %772 : vector<4x3xf32>
    %837 = vector.extract_strided_slice %727 {offsets = [0, 5], sizes = [4, 1], strides = [1, 1]} : vector<4x9xf32> to vector<4x1xf32>
    %838 = vector.broadcast %837 : vector<4x1xf32> to vector<4x3xf32>
    %839 = arith.mulf %838, %772 : vector<4x3xf32>
    %840 = vector.extract_strided_slice %727 {offsets = [0, 6], sizes = [4, 1], strides = [1, 1]} : vector<4x9xf32> to vector<4x1xf32>
    %841 = vector.broadcast %840 : vector<4x1xf32> to vector<4x3xf32>
    %842 = arith.mulf %841, %772 : vector<4x3xf32>
    %843 = vector.extract_strided_slice %727 {offsets = [0, 7], sizes = [4, 1], strides = [1, 1]} : vector<4x9xf32> to vector<4x1xf32>
    %844 = vector.broadcast %843 : vector<4x1xf32> to vector<4x3xf32>
    %845 = arith.mulf %844, %772 : vector<4x3xf32>
    %846 = vector.extract_strided_slice %727 {offsets = [0, 8], sizes = [4, 1], strides = [1, 1]} : vector<4x9xf32> to vector<4x1xf32>
    %847 = vector.broadcast %846 : vector<4x1xf32> to vector<4x3xf32>
    %848 = arith.mulf %847, %772 : vector<4x3xf32>
    %849 = tpu.concatenate %824, %827, %830, %833, %836, %839, %842, %845, %848 in 1 : vector<4x3xf32>, vector<4x3xf32>, vector<4x3xf32>, vector<4x3xf32>, vector<4x3xf32>, vector<4x3xf32>, vector<4x3xf32>, vector<4x3xf32>, vector<4x3xf32> -> vector<4x27xf32>
    %850 = arith.addf %821, %849 : vector<4x27xf32>
    %851 = vector.extract_strided_slice %28 {offsets = [0, 20], sizes = [4, 2], strides = [1, 1]} : vector<4x32xf32> to vector<4x2xf32>
    %852 = arith.subf %851, %769 : vector<4x2xf32>
    %cst_38 = arith.constant 0.0666666701 : f32
    %853 = vector.broadcast %cst_38 : f32 to vector<4x1xf32>
    %854 = tpu.concatenate %853, %852 in 1 : vector<4x1xf32>, vector<4x2xf32> -> vector<4x3xf32>
    %855 = vector.extract_strided_slice %854 {offsets = [0, 0], sizes = [4, 1], strides = [1, 1]} : vector<4x3xf32> to vector<4x1xf32>
    %856 = vector.broadcast %855 : vector<4x1xf32> to vector<4x3xf32>
    %857 = arith.mulf %856, %854 : vector<4x3xf32>
    %858 = vector.extract_strided_slice %854 {offsets = [0, 1], sizes = [4, 1], strides = [1, 1]} : vector<4x3xf32> to vector<4x1xf32>
    %859 = vector.broadcast %858 : vector<4x1xf32> to vector<4x3xf32>
    %860 = arith.mulf %859, %854 : vector<4x3xf32>
    %861 = vector.extract_strided_slice %854 {offsets = [0, 2], sizes = [4, 1], strides = [1, 1]} : vector<4x3xf32> to vector<4x1xf32>
    %862 = vector.broadcast %861 : vector<4x1xf32> to vector<4x3xf32>
    %863 = arith.mulf %862, %854 : vector<4x3xf32>
    %864 = tpu.concatenate %857, %860, %863 in 1 : vector<4x3xf32>, vector<4x3xf32>, vector<4x3xf32> -> vector<4x9xf32>
    %cst_39 = arith.constant 5.000000e-01 : f32
    %865 = vector.broadcast %cst_39 : f32 to vector<4x9xf32>
    %866 = arith.mulf %864, %865 : vector<4x9xf32>
    %867 = vector.extract_strided_slice %854 {offsets = [0, 0], sizes = [4, 1], strides = [1, 1]} : vector<4x3xf32> to vector<4x1xf32>
    %868 = vector.broadcast %867 : vector<4x1xf32> to vector<4x9xf32>
    %869 = arith.mulf %868, %866 : vector<4x9xf32>
    %870 = vector.extract_strided_slice %854 {offsets = [0, 1], sizes = [4, 1], strides = [1, 1]} : vector<4x3xf32> to vector<4x1xf32>
    %871 = vector.broadcast %870 : vector<4x1xf32> to vector<4x9xf32>
    %872 = arith.mulf %871, %866 : vector<4x9xf32>
    %873 = vector.extract_strided_slice %854 {offsets = [0, 2], sizes = [4, 1], strides = [1, 1]} : vector<4x3xf32> to vector<4x1xf32>
    %874 = vector.broadcast %873 : vector<4x1xf32> to vector<4x9xf32>
    %875 = arith.mulf %874, %866 : vector<4x9xf32>
    %876 = tpu.concatenate %869, %872, %875 in 1 : vector<4x9xf32>, vector<4x9xf32>, vector<4x9xf32> -> vector<4x27xf32>
    %cst_40 = arith.constant 0.333333343 : f32
    %877 = vector.broadcast %cst_40 : f32 to vector<4x27xf32>
    %878 = arith.mulf %876, %877 : vector<4x27xf32>
    %879 = arith.addf %797, %854 : vector<4x3xf32>
    %880 = arith.addf %809, %866 : vector<4x9xf32>
    %881 = vector.extract_strided_slice %797 {offsets = [0, 0], sizes = [4, 1], strides = [1, 1]} : vector<4x3xf32> to vector<4x1xf32>
    %882 = vector.broadcast %881 : vector<4x1xf32> to vector<4x3xf32>
    %883 = arith.mulf %882, %854 : vector<4x3xf32>
    %884 = vector.extract_strided_slice %797 {offsets = [0, 1], sizes = [4, 1], strides = [1, 1]} : vector<4x3xf32> to vector<4x1xf32>
    %885 = vector.broadcast %884 : vector<4x1xf32> to vector<4x3xf32>
    %886 = arith.mulf %885, %854 : vector<4x3xf32>
    %887 = vector.extract_strided_slice %797 {offsets = [0, 2], sizes = [4, 1], strides = [1, 1]} : vector<4x3xf32> to vector<4x1xf32>
    %888 = vector.broadcast %887 : vector<4x1xf32> to vector<4x3xf32>
    %889 = arith.mulf %888, %854 : vector<4x3xf32>
    %890 = tpu.concatenate %883, %886, %889 in 1 : vector<4x3xf32>, vector<4x3xf32>, vector<4x3xf32> -> vector<4x9xf32>
    %891 = arith.addf %880, %890 : vector<4x9xf32>
    %892 = arith.addf %850, %878 : vector<4x27xf32>
    %893 = vector.extract_strided_slice %797 {offsets = [0, 0], sizes = [4, 1], strides = [1, 1]} : vector<4x3xf32> to vector<4x1xf32>
    %894 = vector.broadcast %893 : vector<4x1xf32> to vector<4x9xf32>
    %895 = arith.mulf %894, %866 : vector<4x9xf32>
    %896 = vector.extract_strided_slice %797 {offsets = [0, 1], sizes = [4, 1], strides = [1, 1]} : vector<4x3xf32> to vector<4x1xf32>
    %897 = vector.broadcast %896 : vector<4x1xf32> to vector<4x9xf32>
    %898 = arith.mulf %897, %866 : vector<4x9xf32>
    %899 = vector.extract_strided_slice %797 {offsets = [0, 2], sizes = [4, 1], strides = [1, 1]} : vector<4x3xf32> to vector<4x1xf32>
    %900 = vector.broadcast %899 : vector<4x1xf32> to vector<4x9xf32>
    %901 = arith.mulf %900, %866 : vector<4x9xf32>
    %902 = tpu.concatenate %895, %898, %901 in 1 : vector<4x9xf32>, vector<4x9xf32>, vector<4x9xf32> -> vector<4x27xf32>
    %903 = arith.addf %892, %902 : vector<4x27xf32>
    %904 = vector.extract_strided_slice %809 {offsets = [0, 0], sizes = [4, 1], strides = [1, 1]} : vector<4x9xf32> to vector<4x1xf32>
    %905 = vector.broadcast %904 : vector<4x1xf32> to vector<4x3xf32>
    %906 = arith.mulf %905, %854 : vector<4x3xf32>
    %907 = vector.extract_strided_slice %809 {offsets = [0, 1], sizes = [4, 1], strides = [1, 1]} : vector<4x9xf32> to vector<4x1xf32>
    %908 = vector.broadcast %907 : vector<4x1xf32> to vector<4x3xf32>
    %909 = arith.mulf %908, %854 : vector<4x3xf32>
    %910 = vector.extract_strided_slice %809 {offsets = [0, 2], sizes = [4, 1], strides = [1, 1]} : vector<4x9xf32> to vector<4x1xf32>
    %911 = vector.broadcast %910 : vector<4x1xf32> to vector<4x3xf32>
    %912 = arith.mulf %911, %854 : vector<4x3xf32>
    %913 = vector.extract_strided_slice %809 {offsets = [0, 3], sizes = [4, 1], strides = [1, 1]} : vector<4x9xf32> to vector<4x1xf32>
    %914 = vector.broadcast %913 : vector<4x1xf32> to vector<4x3xf32>
    %915 = arith.mulf %914, %854 : vector<4x3xf32>
    %916 = vector.extract_strided_slice %809 {offsets = [0, 4], sizes = [4, 1], strides = [1, 1]} : vector<4x9xf32> to vector<4x1xf32>
    %917 = vector.broadcast %916 : vector<4x1xf32> to vector<4x3xf32>
    %918 = arith.mulf %917, %854 : vector<4x3xf32>
    %919 = vector.extract_strided_slice %809 {offsets = [0, 5], sizes = [4, 1], strides = [1, 1]} : vector<4x9xf32> to vector<4x1xf32>
    %920 = vector.broadcast %919 : vector<4x1xf32> to vector<4x3xf32>
    %921 = arith.mulf %920, %854 : vector<4x3xf32>
    %922 = vector.extract_strided_slice %809 {offsets = [0, 6], sizes = [4, 1], strides = [1, 1]} : vector<4x9xf32> to vector<4x1xf32>
    %923 = vector.broadcast %922 : vector<4x1xf32> to vector<4x3xf32>
    %924 = arith.mulf %923, %854 : vector<4x3xf32>
    %925 = vector.extract_strided_slice %809 {offsets = [0, 7], sizes = [4, 1], strides = [1, 1]} : vector<4x9xf32> to vector<4x1xf32>
    %926 = vector.broadcast %925 : vector<4x1xf32> to vector<4x3xf32>
    %927 = arith.mulf %926, %854 : vector<4x3xf32>
    %928 = vector.extract_strided_slice %809 {offsets = [0, 8], sizes = [4, 1], strides = [1, 1]} : vector<4x9xf32> to vector<4x1xf32>
    %929 = vector.broadcast %928 : vector<4x1xf32> to vector<4x3xf32>
    %930 = arith.mulf %929, %854 : vector<4x3xf32>
    %931 = tpu.concatenate %906, %909, %912, %915, %918, %921, %924, %927, %930 in 1 : vector<4x3xf32>, vector<4x3xf32>, vector<4x3xf32>, vector<4x3xf32>, vector<4x3xf32>, vector<4x3xf32>, vector<4x3xf32>, vector<4x3xf32>, vector<4x3xf32> -> vector<4x27xf32>
    %932 = arith.addf %903, %931 : vector<4x27xf32>
    %933 = vector.extract_strided_slice %28 {offsets = [0, 22], sizes = [4, 2], strides = [1, 1]} : vector<4x32xf32> to vector<4x2xf32>
    %934 = arith.subf %933, %851 : vector<4x2xf32>
    %cst_41 = arith.constant 0.0666666701 : f32
    %935 = vector.broadcast %cst_41 : f32 to vector<4x1xf32>
    %936 = tpu.concatenate %935, %934 in 1 : vector<4x1xf32>, vector<4x2xf32> -> vector<4x3xf32>
    %937 = vector.extract_strided_slice %936 {offsets = [0, 0], sizes = [4, 1], strides = [1, 1]} : vector<4x3xf32> to vector<4x1xf32>
    %938 = vector.broadcast %937 : vector<4x1xf32> to vector<4x3xf32>
    %939 = arith.mulf %938, %936 : vector<4x3xf32>
    %940 = vector.extract_strided_slice %936 {offsets = [0, 1], sizes = [4, 1], strides = [1, 1]} : vector<4x3xf32> to vector<4x1xf32>
    %941 = vector.broadcast %940 : vector<4x1xf32> to vector<4x3xf32>
    %942 = arith.mulf %941, %936 : vector<4x3xf32>
    %943 = vector.extract_strided_slice %936 {offsets = [0, 2], sizes = [4, 1], strides = [1, 1]} : vector<4x3xf32> to vector<4x1xf32>
    %944 = vector.broadcast %943 : vector<4x1xf32> to vector<4x3xf32>
    %945 = arith.mulf %944, %936 : vector<4x3xf32>
    %946 = tpu.concatenate %939, %942, %945 in 1 : vector<4x3xf32>, vector<4x3xf32>, vector<4x3xf32> -> vector<4x9xf32>
    %cst_42 = arith.constant 5.000000e-01 : f32
    %947 = vector.broadcast %cst_42 : f32 to vector<4x9xf32>
    %948 = arith.mulf %946, %947 : vector<4x9xf32>
    %949 = vector.extract_strided_slice %936 {offsets = [0, 0], sizes = [4, 1], strides = [1, 1]} : vector<4x3xf32> to vector<4x1xf32>
    %950 = vector.broadcast %949 : vector<4x1xf32> to vector<4x9xf32>
    %951 = arith.mulf %950, %948 : vector<4x9xf32>
    %952 = vector.extract_strided_slice %936 {offsets = [0, 1], sizes = [4, 1], strides = [1, 1]} : vector<4x3xf32> to vector<4x1xf32>
    %953 = vector.broadcast %952 : vector<4x1xf32> to vector<4x9xf32>
    %954 = arith.mulf %953, %948 : vector<4x9xf32>
    %955 = vector.extract_strided_slice %936 {offsets = [0, 2], sizes = [4, 1], strides = [1, 1]} : vector<4x3xf32> to vector<4x1xf32>
    %956 = vector.broadcast %955 : vector<4x1xf32> to vector<4x9xf32>
    %957 = arith.mulf %956, %948 : vector<4x9xf32>
    %958 = tpu.concatenate %951, %954, %957 in 1 : vector<4x9xf32>, vector<4x9xf32>, vector<4x9xf32> -> vector<4x27xf32>
    %cst_43 = arith.constant 0.333333343 : f32
    %959 = vector.broadcast %cst_43 : f32 to vector<4x27xf32>
    %960 = arith.mulf %958, %959 : vector<4x27xf32>
    %961 = arith.addf %879, %936 : vector<4x3xf32>
    %962 = arith.addf %891, %948 : vector<4x9xf32>
    %963 = vector.extract_strided_slice %879 {offsets = [0, 0], sizes = [4, 1], strides = [1, 1]} : vector<4x3xf32> to vector<4x1xf32>
    %964 = vector.broadcast %963 : vector<4x1xf32> to vector<4x3xf32>
    %965 = arith.mulf %964, %936 : vector<4x3xf32>
    %966 = vector.extract_strided_slice %879 {offsets = [0, 1], sizes = [4, 1], strides = [1, 1]} : vector<4x3xf32> to vector<4x1xf32>
    %967 = vector.broadcast %966 : vector<4x1xf32> to vector<4x3xf32>
    %968 = arith.mulf %967, %936 : vector<4x3xf32>
    %969 = vector.extract_strided_slice %879 {offsets = [0, 2], sizes = [4, 1], strides = [1, 1]} : vector<4x3xf32> to vector<4x1xf32>
    %970 = vector.broadcast %969 : vector<4x1xf32> to vector<4x3xf32>
    %971 = arith.mulf %970, %936 : vector<4x3xf32>
    %972 = tpu.concatenate %965, %968, %971 in 1 : vector<4x3xf32>, vector<4x3xf32>, vector<4x3xf32> -> vector<4x9xf32>
    %973 = arith.addf %962, %972 : vector<4x9xf32>
    %974 = arith.addf %932, %960 : vector<4x27xf32>
    %975 = vector.extract_strided_slice %879 {offsets = [0, 0], sizes = [4, 1], strides = [1, 1]} : vector<4x3xf32> to vector<4x1xf32>
    %976 = vector.broadcast %975 : vector<4x1xf32> to vector<4x9xf32>
    %977 = arith.mulf %976, %948 : vector<4x9xf32>
    %978 = vector.extract_strided_slice %879 {offsets = [0, 1], sizes = [4, 1], strides = [1, 1]} : vector<4x3xf32> to vector<4x1xf32>
    %979 = vector.broadcast %978 : vector<4x1xf32> to vector<4x9xf32>
    %980 = arith.mulf %979, %948 : vector<4x9xf32>
    %981 = vector.extract_strided_slice %879 {offsets = [0, 2], sizes = [4, 1], strides = [1, 1]} : vector<4x3xf32> to vector<4x1xf32>
    %982 = vector.broadcast %981 : vector<4x1xf32> to vector<4x9xf32>
    %983 = arith.mulf %982, %948 : vector<4x9xf32>
    %984 = tpu.concatenate %977, %980, %983 in 1 : vector<4x9xf32>, vector<4x9xf32>, vector<4x9xf32> -> vector<4x27xf32>
    %985 = arith.addf %974, %984 : vector<4x27xf32>
    %986 = vector.extract_strided_slice %891 {offsets = [0, 0], sizes = [4, 1], strides = [1, 1]} : vector<4x9xf32> to vector<4x1xf32>
    %987 = vector.broadcast %986 : vector<4x1xf32> to vector<4x3xf32>
    %988 = arith.mulf %987, %936 : vector<4x3xf32>
    %989 = vector.extract_strided_slice %891 {offsets = [0, 1], sizes = [4, 1], strides = [1, 1]} : vector<4x9xf32> to vector<4x1xf32>
    %990 = vector.broadcast %989 : vector<4x1xf32> to vector<4x3xf32>
    %991 = arith.mulf %990, %936 : vector<4x3xf32>
    %992 = vector.extract_strided_slice %891 {offsets = [0, 2], sizes = [4, 1], strides = [1, 1]} : vector<4x9xf32> to vector<4x1xf32>
    %993 = vector.broadcast %992 : vector<4x1xf32> to vector<4x3xf32>
    %994 = arith.mulf %993, %936 : vector<4x3xf32>
    %995 = vector.extract_strided_slice %891 {offsets = [0, 3], sizes = [4, 1], strides = [1, 1]} : vector<4x9xf32> to vector<4x1xf32>
    %996 = vector.broadcast %995 : vector<4x1xf32> to vector<4x3xf32>
    %997 = arith.mulf %996, %936 : vector<4x3xf32>
    %998 = vector.extract_strided_slice %891 {offsets = [0, 4], sizes = [4, 1], strides = [1, 1]} : vector<4x9xf32> to vector<4x1xf32>
    %999 = vector.broadcast %998 : vector<4x1xf32> to vector<4x3xf32>
    %1000 = arith.mulf %999, %936 : vector<4x3xf32>
    %1001 = vector.extract_strided_slice %891 {offsets = [0, 5], sizes = [4, 1], strides = [1, 1]} : vector<4x9xf32> to vector<4x1xf32>
    %1002 = vector.broadcast %1001 : vector<4x1xf32> to vector<4x3xf32>
    %1003 = arith.mulf %1002, %936 : vector<4x3xf32>
    %1004 = vector.extract_strided_slice %891 {offsets = [0, 6], sizes = [4, 1], strides = [1, 1]} : vector<4x9xf32> to vector<4x1xf32>
    %1005 = vector.broadcast %1004 : vector<4x1xf32> to vector<4x3xf32>
    %1006 = arith.mulf %1005, %936 : vector<4x3xf32>
    %1007 = vector.extract_strided_slice %891 {offsets = [0, 7], sizes = [4, 1], strides = [1, 1]} : vector<4x9xf32> to vector<4x1xf32>
    %1008 = vector.broadcast %1007 : vector<4x1xf32> to vector<4x3xf32>
    %1009 = arith.mulf %1008, %936 : vector<4x3xf32>
    %1010 = vector.extract_strided_slice %891 {offsets = [0, 8], sizes = [4, 1], strides = [1, 1]} : vector<4x9xf32> to vector<4x1xf32>
    %1011 = vector.broadcast %1010 : vector<4x1xf32> to vector<4x3xf32>
    %1012 = arith.mulf %1011, %936 : vector<4x3xf32>
    %1013 = tpu.concatenate %988, %991, %994, %997, %1000, %1003, %1006, %1009, %1012 in 1 : vector<4x3xf32>, vector<4x3xf32>, vector<4x3xf32>, vector<4x3xf32>, vector<4x3xf32>, vector<4x3xf32>, vector<4x3xf32>, vector<4x3xf32>, vector<4x3xf32> -> vector<4x27xf32>
    %1014 = arith.addf %985, %1013 : vector<4x27xf32>
    %1015 = vector.extract_strided_slice %28 {offsets = [0, 24], sizes = [4, 2], strides = [1, 1]} : vector<4x32xf32> to vector<4x2xf32>
    %1016 = arith.subf %1015, %933 : vector<4x2xf32>
    %cst_44 = arith.constant 0.0666666701 : f32
    %1017 = vector.broadcast %cst_44 : f32 to vector<4x1xf32>
    %1018 = tpu.concatenate %1017, %1016 in 1 : vector<4x1xf32>, vector<4x2xf32> -> vector<4x3xf32>
    %1019 = vector.extract_strided_slice %1018 {offsets = [0, 0], sizes = [4, 1], strides = [1, 1]} : vector<4x3xf32> to vector<4x1xf32>
    %1020 = vector.broadcast %1019 : vector<4x1xf32> to vector<4x3xf32>
    %1021 = arith.mulf %1020, %1018 : vector<4x3xf32>
    %1022 = vector.extract_strided_slice %1018 {offsets = [0, 1], sizes = [4, 1], strides = [1, 1]} : vector<4x3xf32> to vector<4x1xf32>
    %1023 = vector.broadcast %1022 : vector<4x1xf32> to vector<4x3xf32>
    %1024 = arith.mulf %1023, %1018 : vector<4x3xf32>
    %1025 = vector.extract_strided_slice %1018 {offsets = [0, 2], sizes = [4, 1], strides = [1, 1]} : vector<4x3xf32> to vector<4x1xf32>
    %1026 = vector.broadcast %1025 : vector<4x1xf32> to vector<4x3xf32>
    %1027 = arith.mulf %1026, %1018 : vector<4x3xf32>
    %1028 = tpu.concatenate %1021, %1024, %1027 in 1 : vector<4x3xf32>, vector<4x3xf32>, vector<4x3xf32> -> vector<4x9xf32>
    %cst_45 = arith.constant 5.000000e-01 : f32
    %1029 = vector.broadcast %cst_45 : f32 to vector<4x9xf32>
    %1030 = arith.mulf %1028, %1029 : vector<4x9xf32>
    %1031 = vector.extract_strided_slice %1018 {offsets = [0, 0], sizes = [4, 1], strides = [1, 1]} : vector<4x3xf32> to vector<4x1xf32>
    %1032 = vector.broadcast %1031 : vector<4x1xf32> to vector<4x9xf32>
    %1033 = arith.mulf %1032, %1030 : vector<4x9xf32>
    %1034 = vector.extract_strided_slice %1018 {offsets = [0, 1], sizes = [4, 1], strides = [1, 1]} : vector<4x3xf32> to vector<4x1xf32>
    %1035 = vector.broadcast %1034 : vector<4x1xf32> to vector<4x9xf32>
    %1036 = arith.mulf %1035, %1030 : vector<4x9xf32>
    %1037 = vector.extract_strided_slice %1018 {offsets = [0, 2], sizes = [4, 1], strides = [1, 1]} : vector<4x3xf32> to vector<4x1xf32>
    %1038 = vector.broadcast %1037 : vector<4x1xf32> to vector<4x9xf32>
    %1039 = arith.mulf %1038, %1030 : vector<4x9xf32>
    %1040 = tpu.concatenate %1033, %1036, %1039 in 1 : vector<4x9xf32>, vector<4x9xf32>, vector<4x9xf32> -> vector<4x27xf32>
    %cst_46 = arith.constant 0.333333343 : f32
    %1041 = vector.broadcast %cst_46 : f32 to vector<4x27xf32>
    %1042 = arith.mulf %1040, %1041 : vector<4x27xf32>
    %1043 = arith.addf %961, %1018 : vector<4x3xf32>
    %1044 = arith.addf %973, %1030 : vector<4x9xf32>
    %1045 = vector.extract_strided_slice %961 {offsets = [0, 0], sizes = [4, 1], strides = [1, 1]} : vector<4x3xf32> to vector<4x1xf32>
    %1046 = vector.broadcast %1045 : vector<4x1xf32> to vector<4x3xf32>
    %1047 = arith.mulf %1046, %1018 : vector<4x3xf32>
    %1048 = vector.extract_strided_slice %961 {offsets = [0, 1], sizes = [4, 1], strides = [1, 1]} : vector<4x3xf32> to vector<4x1xf32>
    %1049 = vector.broadcast %1048 : vector<4x1xf32> to vector<4x3xf32>
    %1050 = arith.mulf %1049, %1018 : vector<4x3xf32>
    %1051 = vector.extract_strided_slice %961 {offsets = [0, 2], sizes = [4, 1], strides = [1, 1]} : vector<4x3xf32> to vector<4x1xf32>
    %1052 = vector.broadcast %1051 : vector<4x1xf32> to vector<4x3xf32>
    %1053 = arith.mulf %1052, %1018 : vector<4x3xf32>
    %1054 = tpu.concatenate %1047, %1050, %1053 in 1 : vector<4x3xf32>, vector<4x3xf32>, vector<4x3xf32> -> vector<4x9xf32>
    %1055 = arith.addf %1044, %1054 : vector<4x9xf32>
    %1056 = arith.addf %1014, %1042 : vector<4x27xf32>
    %1057 = vector.extract_strided_slice %961 {offsets = [0, 0], sizes = [4, 1], strides = [1, 1]} : vector<4x3xf32> to vector<4x1xf32>
    %1058 = vector.broadcast %1057 : vector<4x1xf32> to vector<4x9xf32>
    %1059 = arith.mulf %1058, %1030 : vector<4x9xf32>
    %1060 = vector.extract_strided_slice %961 {offsets = [0, 1], sizes = [4, 1], strides = [1, 1]} : vector<4x3xf32> to vector<4x1xf32>
    %1061 = vector.broadcast %1060 : vector<4x1xf32> to vector<4x9xf32>
    %1062 = arith.mulf %1061, %1030 : vector<4x9xf32>
    %1063 = vector.extract_strided_slice %961 {offsets = [0, 2], sizes = [4, 1], strides = [1, 1]} : vector<4x3xf32> to vector<4x1xf32>
    %1064 = vector.broadcast %1063 : vector<4x1xf32> to vector<4x9xf32>
    %1065 = arith.mulf %1064, %1030 : vector<4x9xf32>
    %1066 = tpu.concatenate %1059, %1062, %1065 in 1 : vector<4x9xf32>, vector<4x9xf32>, vector<4x9xf32> -> vector<4x27xf32>
    %1067 = arith.addf %1056, %1066 : vector<4x27xf32>
    %1068 = vector.extract_strided_slice %973 {offsets = [0, 0], sizes = [4, 1], strides = [1, 1]} : vector<4x9xf32> to vector<4x1xf32>
    %1069 = vector.broadcast %1068 : vector<4x1xf32> to vector<4x3xf32>
    %1070 = arith.mulf %1069, %1018 : vector<4x3xf32>
    %1071 = vector.extract_strided_slice %973 {offsets = [0, 1], sizes = [4, 1], strides = [1, 1]} : vector<4x9xf32> to vector<4x1xf32>
    %1072 = vector.broadcast %1071 : vector<4x1xf32> to vector<4x3xf32>
    %1073 = arith.mulf %1072, %1018 : vector<4x3xf32>
    %1074 = vector.extract_strided_slice %973 {offsets = [0, 2], sizes = [4, 1], strides = [1, 1]} : vector<4x9xf32> to vector<4x1xf32>
    %1075 = vector.broadcast %1074 : vector<4x1xf32> to vector<4x3xf32>
    %1076 = arith.mulf %1075, %1018 : vector<4x3xf32>
    %1077 = vector.extract_strided_slice %973 {offsets = [0, 3], sizes = [4, 1], strides = [1, 1]} : vector<4x9xf32> to vector<4x1xf32>
    %1078 = vector.broadcast %1077 : vector<4x1xf32> to vector<4x3xf32>
    %1079 = arith.mulf %1078, %1018 : vector<4x3xf32>
    %1080 = vector.extract_strided_slice %973 {offsets = [0, 4], sizes = [4, 1], strides = [1, 1]} : vector<4x9xf32> to vector<4x1xf32>
    %1081 = vector.broadcast %1080 : vector<4x1xf32> to vector<4x3xf32>
    %1082 = arith.mulf %1081, %1018 : vector<4x3xf32>
    %1083 = vector.extract_strided_slice %973 {offsets = [0, 5], sizes = [4, 1], strides = [1, 1]} : vector<4x9xf32> to vector<4x1xf32>
    %1084 = vector.broadcast %1083 : vector<4x1xf32> to vector<4x3xf32>
    %1085 = arith.mulf %1084, %1018 : vector<4x3xf32>
    %1086 = vector.extract_strided_slice %973 {offsets = [0, 6], sizes = [4, 1], strides = [1, 1]} : vector<4x9xf32> to vector<4x1xf32>
    %1087 = vector.broadcast %1086 : vector<4x1xf32> to vector<4x3xf32>
    %1088 = arith.mulf %1087, %1018 : vector<4x3xf32>
    %1089 = vector.extract_strided_slice %973 {offsets = [0, 7], sizes = [4, 1], strides = [1, 1]} : vector<4x9xf32> to vector<4x1xf32>
    %1090 = vector.broadcast %1089 : vector<4x1xf32> to vector<4x3xf32>
    %1091 = arith.mulf %1090, %1018 : vector<4x3xf32>
    %1092 = vector.extract_strided_slice %973 {offsets = [0, 8], sizes = [4, 1], strides = [1, 1]} : vector<4x9xf32> to vector<4x1xf32>
    %1093 = vector.broadcast %1092 : vector<4x1xf32> to vector<4x3xf32>
    %1094 = arith.mulf %1093, %1018 : vector<4x3xf32>
    %1095 = tpu.concatenate %1070, %1073, %1076, %1079, %1082, %1085, %1088, %1091, %1094 in 1 : vector<4x3xf32>, vector<4x3xf32>, vector<4x3xf32>, vector<4x3xf32>, vector<4x3xf32>, vector<4x3xf32>, vector<4x3xf32>, vector<4x3xf32>, vector<4x3xf32> -> vector<4x27xf32>
    %1096 = arith.addf %1067, %1095 : vector<4x27xf32>
    %1097 = vector.extract_strided_slice %28 {offsets = [0, 26], sizes = [4, 2], strides = [1, 1]} : vector<4x32xf32> to vector<4x2xf32>
    %1098 = arith.subf %1097, %1015 : vector<4x2xf32>
    %cst_47 = arith.constant 0.0666666701 : f32
    %1099 = vector.broadcast %cst_47 : f32 to vector<4x1xf32>
    %1100 = tpu.concatenate %1099, %1098 in 1 : vector<4x1xf32>, vector<4x2xf32> -> vector<4x3xf32>
    %1101 = vector.extract_strided_slice %1100 {offsets = [0, 0], sizes = [4, 1], strides = [1, 1]} : vector<4x3xf32> to vector<4x1xf32>
    %1102 = vector.broadcast %1101 : vector<4x1xf32> to vector<4x3xf32>
    %1103 = arith.mulf %1102, %1100 : vector<4x3xf32>
    %1104 = vector.extract_strided_slice %1100 {offsets = [0, 1], sizes = [4, 1], strides = [1, 1]} : vector<4x3xf32> to vector<4x1xf32>
    %1105 = vector.broadcast %1104 : vector<4x1xf32> to vector<4x3xf32>
    %1106 = arith.mulf %1105, %1100 : vector<4x3xf32>
    %1107 = vector.extract_strided_slice %1100 {offsets = [0, 2], sizes = [4, 1], strides = [1, 1]} : vector<4x3xf32> to vector<4x1xf32>
    %1108 = vector.broadcast %1107 : vector<4x1xf32> to vector<4x3xf32>
    %1109 = arith.mulf %1108, %1100 : vector<4x3xf32>
    %1110 = tpu.concatenate %1103, %1106, %1109 in 1 : vector<4x3xf32>, vector<4x3xf32>, vector<4x3xf32> -> vector<4x9xf32>
    %cst_48 = arith.constant 5.000000e-01 : f32
    %1111 = vector.broadcast %cst_48 : f32 to vector<4x9xf32>
    %1112 = arith.mulf %1110, %1111 : vector<4x9xf32>
    %1113 = vector.extract_strided_slice %1100 {offsets = [0, 0], sizes = [4, 1], strides = [1, 1]} : vector<4x3xf32> to vector<4x1xf32>
    %1114 = vector.broadcast %1113 : vector<4x1xf32> to vector<4x9xf32>
    %1115 = arith.mulf %1114, %1112 : vector<4x9xf32>
    %1116 = vector.extract_strided_slice %1100 {offsets = [0, 1], sizes = [4, 1], strides = [1, 1]} : vector<4x3xf32> to vector<4x1xf32>
    %1117 = vector.broadcast %1116 : vector<4x1xf32> to vector<4x9xf32>
    %1118 = arith.mulf %1117, %1112 : vector<4x9xf32>
    %1119 = vector.extract_strided_slice %1100 {offsets = [0, 2], sizes = [4, 1], strides = [1, 1]} : vector<4x3xf32> to vector<4x1xf32>
    %1120 = vector.broadcast %1119 : vector<4x1xf32> to vector<4x9xf32>
    %1121 = arith.mulf %1120, %1112 : vector<4x9xf32>
    %1122 = tpu.concatenate %1115, %1118, %1121 in 1 : vector<4x9xf32>, vector<4x9xf32>, vector<4x9xf32> -> vector<4x27xf32>
    %cst_49 = arith.constant 0.333333343 : f32
    %1123 = vector.broadcast %cst_49 : f32 to vector<4x27xf32>
    %1124 = arith.mulf %1122, %1123 : vector<4x27xf32>
    %1125 = arith.addf %1043, %1100 : vector<4x3xf32>
    %1126 = arith.addf %1055, %1112 : vector<4x9xf32>
    %1127 = vector.extract_strided_slice %1043 {offsets = [0, 0], sizes = [4, 1], strides = [1, 1]} : vector<4x3xf32> to vector<4x1xf32>
    %1128 = vector.broadcast %1127 : vector<4x1xf32> to vector<4x3xf32>
    %1129 = arith.mulf %1128, %1100 : vector<4x3xf32>
    %1130 = vector.extract_strided_slice %1043 {offsets = [0, 1], sizes = [4, 1], strides = [1, 1]} : vector<4x3xf32> to vector<4x1xf32>
    %1131 = vector.broadcast %1130 : vector<4x1xf32> to vector<4x3xf32>
    %1132 = arith.mulf %1131, %1100 : vector<4x3xf32>
    %1133 = vector.extract_strided_slice %1043 {offsets = [0, 2], sizes = [4, 1], strides = [1, 1]} : vector<4x3xf32> to vector<4x1xf32>
    %1134 = vector.broadcast %1133 : vector<4x1xf32> to vector<4x3xf32>
    %1135 = arith.mulf %1134, %1100 : vector<4x3xf32>
    %1136 = tpu.concatenate %1129, %1132, %1135 in 1 : vector<4x3xf32>, vector<4x3xf32>, vector<4x3xf32> -> vector<4x9xf32>
    %1137 = arith.addf %1126, %1136 : vector<4x9xf32>
    %1138 = arith.addf %1096, %1124 : vector<4x27xf32>
    %1139 = vector.extract_strided_slice %1043 {offsets = [0, 0], sizes = [4, 1], strides = [1, 1]} : vector<4x3xf32> to vector<4x1xf32>
    %1140 = vector.broadcast %1139 : vector<4x1xf32> to vector<4x9xf32>
    %1141 = arith.mulf %1140, %1112 : vector<4x9xf32>
    %1142 = vector.extract_strided_slice %1043 {offsets = [0, 1], sizes = [4, 1], strides = [1, 1]} : vector<4x3xf32> to vector<4x1xf32>
    %1143 = vector.broadcast %1142 : vector<4x1xf32> to vector<4x9xf32>
    %1144 = arith.mulf %1143, %1112 : vector<4x9xf32>
    %1145 = vector.extract_strided_slice %1043 {offsets = [0, 2], sizes = [4, 1], strides = [1, 1]} : vector<4x3xf32> to vector<4x1xf32>
    %1146 = vector.broadcast %1145 : vector<4x1xf32> to vector<4x9xf32>
    %1147 = arith.mulf %1146, %1112 : vector<4x9xf32>
    %1148 = tpu.concatenate %1141, %1144, %1147 in 1 : vector<4x9xf32>, vector<4x9xf32>, vector<4x9xf32> -> vector<4x27xf32>
    %1149 = arith.addf %1138, %1148 : vector<4x27xf32>
    %1150 = vector.extract_strided_slice %1055 {offsets = [0, 0], sizes = [4, 1], strides = [1, 1]} : vector<4x9xf32> to vector<4x1xf32>
    %1151 = vector.broadcast %1150 : vector<4x1xf32> to vector<4x3xf32>
    %1152 = arith.mulf %1151, %1100 : vector<4x3xf32>
    %1153 = vector.extract_strided_slice %1055 {offsets = [0, 1], sizes = [4, 1], strides = [1, 1]} : vector<4x9xf32> to vector<4x1xf32>
    %1154 = vector.broadcast %1153 : vector<4x1xf32> to vector<4x3xf32>
    %1155 = arith.mulf %1154, %1100 : vector<4x3xf32>
    %1156 = vector.extract_strided_slice %1055 {offsets = [0, 2], sizes = [4, 1], strides = [1, 1]} : vector<4x9xf32> to vector<4x1xf32>
    %1157 = vector.broadcast %1156 : vector<4x1xf32> to vector<4x3xf32>
    %1158 = arith.mulf %1157, %1100 : vector<4x3xf32>
    %1159 = vector.extract_strided_slice %1055 {offsets = [0, 3], sizes = [4, 1], strides = [1, 1]} : vector<4x9xf32> to vector<4x1xf32>
    %1160 = vector.broadcast %1159 : vector<4x1xf32> to vector<4x3xf32>
    %1161 = arith.mulf %1160, %1100 : vector<4x3xf32>
    %1162 = vector.extract_strided_slice %1055 {offsets = [0, 4], sizes = [4, 1], strides = [1, 1]} : vector<4x9xf32> to vector<4x1xf32>
    %1163 = vector.broadcast %1162 : vector<4x1xf32> to vector<4x3xf32>
    %1164 = arith.mulf %1163, %1100 : vector<4x3xf32>
    %1165 = vector.extract_strided_slice %1055 {offsets = [0, 5], sizes = [4, 1], strides = [1, 1]} : vector<4x9xf32> to vector<4x1xf32>
    %1166 = vector.broadcast %1165 : vector<4x1xf32> to vector<4x3xf32>
    %1167 = arith.mulf %1166, %1100 : vector<4x3xf32>
    %1168 = vector.extract_strided_slice %1055 {offsets = [0, 6], sizes = [4, 1], strides = [1, 1]} : vector<4x9xf32> to vector<4x1xf32>
    %1169 = vector.broadcast %1168 : vector<4x1xf32> to vector<4x3xf32>
    %1170 = arith.mulf %1169, %1100 : vector<4x3xf32>
    %1171 = vector.extract_strided_slice %1055 {offsets = [0, 7], sizes = [4, 1], strides = [1, 1]} : vector<4x9xf32> to vector<4x1xf32>
    %1172 = vector.broadcast %1171 : vector<4x1xf32> to vector<4x3xf32>
    %1173 = arith.mulf %1172, %1100 : vector<4x3xf32>
    %1174 = vector.extract_strided_slice %1055 {offsets = [0, 8], sizes = [4, 1], strides = [1, 1]} : vector<4x9xf32> to vector<4x1xf32>
    %1175 = vector.broadcast %1174 : vector<4x1xf32> to vector<4x3xf32>
    %1176 = arith.mulf %1175, %1100 : vector<4x3xf32>
    %1177 = tpu.concatenate %1152, %1155, %1158, %1161, %1164, %1167, %1170, %1173, %1176 in 1 : vector<4x3xf32>, vector<4x3xf32>, vector<4x3xf32>, vector<4x3xf32>, vector<4x3xf32>, vector<4x3xf32>, vector<4x3xf32>, vector<4x3xf32>, vector<4x3xf32> -> vector<4x27xf32>
    %1178 = arith.addf %1149, %1177 : vector<4x27xf32>
    %1179 = vector.extract_strided_slice %28 {offsets = [0, 28], sizes = [4, 2], strides = [1, 1]} : vector<4x32xf32> to vector<4x2xf32>
    %1180 = arith.subf %1179, %1097 : vector<4x2xf32>
    %cst_50 = arith.constant 0.0666666701 : f32
    %1181 = vector.broadcast %cst_50 : f32 to vector<4x1xf32>
    %1182 = tpu.concatenate %1181, %1180 in 1 : vector<4x1xf32>, vector<4x2xf32> -> vector<4x3xf32>
    %1183 = vector.extract_strided_slice %1182 {offsets = [0, 0], sizes = [4, 1], strides = [1, 1]} : vector<4x3xf32> to vector<4x1xf32>
    %1184 = vector.broadcast %1183 : vector<4x1xf32> to vector<4x3xf32>
    %1185 = arith.mulf %1184, %1182 : vector<4x3xf32>
    %1186 = vector.extract_strided_slice %1182 {offsets = [0, 1], sizes = [4, 1], strides = [1, 1]} : vector<4x3xf32> to vector<4x1xf32>
    %1187 = vector.broadcast %1186 : vector<4x1xf32> to vector<4x3xf32>
    %1188 = arith.mulf %1187, %1182 : vector<4x3xf32>
    %1189 = vector.extract_strided_slice %1182 {offsets = [0, 2], sizes = [4, 1], strides = [1, 1]} : vector<4x3xf32> to vector<4x1xf32>
    %1190 = vector.broadcast %1189 : vector<4x1xf32> to vector<4x3xf32>
    %1191 = arith.mulf %1190, %1182 : vector<4x3xf32>
    %1192 = tpu.concatenate %1185, %1188, %1191 in 1 : vector<4x3xf32>, vector<4x3xf32>, vector<4x3xf32> -> vector<4x9xf32>
    %cst_51 = arith.constant 5.000000e-01 : f32
    %1193 = vector.broadcast %cst_51 : f32 to vector<4x9xf32>
    %1194 = arith.mulf %1192, %1193 : vector<4x9xf32>
    %1195 = vector.extract_strided_slice %1182 {offsets = [0, 0], sizes = [4, 1], strides = [1, 1]} : vector<4x3xf32> to vector<4x1xf32>
    %1196 = vector.broadcast %1195 : vector<4x1xf32> to vector<4x9xf32>
    %1197 = arith.mulf %1196, %1194 : vector<4x9xf32>
    %1198 = vector.extract_strided_slice %1182 {offsets = [0, 1], sizes = [4, 1], strides = [1, 1]} : vector<4x3xf32> to vector<4x1xf32>
    %1199 = vector.broadcast %1198 : vector<4x1xf32> to vector<4x9xf32>
    %1200 = arith.mulf %1199, %1194 : vector<4x9xf32>
    %1201 = vector.extract_strided_slice %1182 {offsets = [0, 2], sizes = [4, 1], strides = [1, 1]} : vector<4x3xf32> to vector<4x1xf32>
    %1202 = vector.broadcast %1201 : vector<4x1xf32> to vector<4x9xf32>
    %1203 = arith.mulf %1202, %1194 : vector<4x9xf32>
    %1204 = tpu.concatenate %1197, %1200, %1203 in 1 : vector<4x9xf32>, vector<4x9xf32>, vector<4x9xf32> -> vector<4x27xf32>
    %cst_52 = arith.constant 0.333333343 : f32
    %1205 = vector.broadcast %cst_52 : f32 to vector<4x27xf32>
    %1206 = arith.mulf %1204, %1205 : vector<4x27xf32>
    %1207 = arith.addf %1125, %1182 : vector<4x3xf32>
    %1208 = arith.addf %1137, %1194 : vector<4x9xf32>
    %1209 = vector.extract_strided_slice %1125 {offsets = [0, 0], sizes = [4, 1], strides = [1, 1]} : vector<4x3xf32> to vector<4x1xf32>
    %1210 = vector.broadcast %1209 : vector<4x1xf32> to vector<4x3xf32>
    %1211 = arith.mulf %1210, %1182 : vector<4x3xf32>
    %1212 = vector.extract_strided_slice %1125 {offsets = [0, 1], sizes = [4, 1], strides = [1, 1]} : vector<4x3xf32> to vector<4x1xf32>
    %1213 = vector.broadcast %1212 : vector<4x1xf32> to vector<4x3xf32>
    %1214 = arith.mulf %1213, %1182 : vector<4x3xf32>
    %1215 = vector.extract_strided_slice %1125 {offsets = [0, 2], sizes = [4, 1], strides = [1, 1]} : vector<4x3xf32> to vector<4x1xf32>
    %1216 = vector.broadcast %1215 : vector<4x1xf32> to vector<4x3xf32>
    %1217 = arith.mulf %1216, %1182 : vector<4x3xf32>
    %1218 = tpu.concatenate %1211, %1214, %1217 in 1 : vector<4x3xf32>, vector<4x3xf32>, vector<4x3xf32> -> vector<4x9xf32>
    %1219 = arith.addf %1208, %1218 : vector<4x9xf32>
    %1220 = arith.addf %1178, %1206 : vector<4x27xf32>
    %1221 = vector.extract_strided_slice %1125 {offsets = [0, 0], sizes = [4, 1], strides = [1, 1]} : vector<4x3xf32> to vector<4x1xf32>
    %1222 = vector.broadcast %1221 : vector<4x1xf32> to vector<4x9xf32>
    %1223 = arith.mulf %1222, %1194 : vector<4x9xf32>
    %1224 = vector.extract_strided_slice %1125 {offsets = [0, 1], sizes = [4, 1], strides = [1, 1]} : vector<4x3xf32> to vector<4x1xf32>
    %1225 = vector.broadcast %1224 : vector<4x1xf32> to vector<4x9xf32>
    %1226 = arith.mulf %1225, %1194 : vector<4x9xf32>
    %1227 = vector.extract_strided_slice %1125 {offsets = [0, 2], sizes = [4, 1], strides = [1, 1]} : vector<4x3xf32> to vector<4x1xf32>
    %1228 = vector.broadcast %1227 : vector<4x1xf32> to vector<4x9xf32>
    %1229 = arith.mulf %1228, %1194 : vector<4x9xf32>
    %1230 = tpu.concatenate %1223, %1226, %1229 in 1 : vector<4x9xf32>, vector<4x9xf32>, vector<4x9xf32> -> vector<4x27xf32>
    %1231 = arith.addf %1220, %1230 : vector<4x27xf32>
    %1232 = vector.extract_strided_slice %1137 {offsets = [0, 0], sizes = [4, 1], strides = [1, 1]} : vector<4x9xf32> to vector<4x1xf32>
    %1233 = vector.broadcast %1232 : vector<4x1xf32> to vector<4x3xf32>
    %1234 = arith.mulf %1233, %1182 : vector<4x3xf32>
    %1235 = vector.extract_strided_slice %1137 {offsets = [0, 1], sizes = [4, 1], strides = [1, 1]} : vector<4x9xf32> to vector<4x1xf32>
    %1236 = vector.broadcast %1235 : vector<4x1xf32> to vector<4x3xf32>
    %1237 = arith.mulf %1236, %1182 : vector<4x3xf32>
    %1238 = vector.extract_strided_slice %1137 {offsets = [0, 2], sizes = [4, 1], strides = [1, 1]} : vector<4x9xf32> to vector<4x1xf32>
    %1239 = vector.broadcast %1238 : vector<4x1xf32> to vector<4x3xf32>
    %1240 = arith.mulf %1239, %1182 : vector<4x3xf32>
    %1241 = vector.extract_strided_slice %1137 {offsets = [0, 3], sizes = [4, 1], strides = [1, 1]} : vector<4x9xf32> to vector<4x1xf32>
    %1242 = vector.broadcast %1241 : vector<4x1xf32> to vector<4x3xf32>
    %1243 = arith.mulf %1242, %1182 : vector<4x3xf32>
    %1244 = vector.extract_strided_slice %1137 {offsets = [0, 4], sizes = [4, 1], strides = [1, 1]} : vector<4x9xf32> to vector<4x1xf32>
    %1245 = vector.broadcast %1244 : vector<4x1xf32> to vector<4x3xf32>
    %1246 = arith.mulf %1245, %1182 : vector<4x3xf32>
    %1247 = vector.extract_strided_slice %1137 {offsets = [0, 5], sizes = [4, 1], strides = [1, 1]} : vector<4x9xf32> to vector<4x1xf32>
    %1248 = vector.broadcast %1247 : vector<4x1xf32> to vector<4x3xf32>
    %1249 = arith.mulf %1248, %1182 : vector<4x3xf32>
    %1250 = vector.extract_strided_slice %1137 {offsets = [0, 6], sizes = [4, 1], strides = [1, 1]} : vector<4x9xf32> to vector<4x1xf32>
    %1251 = vector.broadcast %1250 : vector<4x1xf32> to vector<4x3xf32>
    %1252 = arith.mulf %1251, %1182 : vector<4x3xf32>
    %1253 = vector.extract_strided_slice %1137 {offsets = [0, 7], sizes = [4, 1], strides = [1, 1]} : vector<4x9xf32> to vector<4x1xf32>
    %1254 = vector.broadcast %1253 : vector<4x1xf32> to vector<4x3xf32>
    %1255 = arith.mulf %1254, %1182 : vector<4x3xf32>
    %1256 = vector.extract_strided_slice %1137 {offsets = [0, 8], sizes = [4, 1], strides = [1, 1]} : vector<4x9xf32> to vector<4x1xf32>
    %1257 = vector.broadcast %1256 : vector<4x1xf32> to vector<4x3xf32>
    %1258 = arith.mulf %1257, %1182 : vector<4x3xf32>
    %1259 = tpu.concatenate %1234, %1237, %1240, %1243, %1246, %1249, %1252, %1255, %1258 in 1 : vector<4x3xf32>, vector<4x3xf32>, vector<4x3xf32>, vector<4x3xf32>, vector<4x3xf32>, vector<4x3xf32>, vector<4x3xf32>, vector<4x3xf32>, vector<4x3xf32> -> vector<4x27xf32>
    %1260 = arith.addf %1231, %1259 : vector<4x27xf32>
    %1261 = vector.extract_strided_slice %28 {offsets = [0, 30], sizes = [4, 2], strides = [1, 1]} : vector<4x32xf32> to vector<4x2xf32>
    %1262 = arith.subf %1261, %1179 : vector<4x2xf32>
    %cst_53 = arith.constant 0.0666666701 : f32
    %1263 = vector.broadcast %cst_53 : f32 to vector<4x1xf32>
    %1264 = tpu.concatenate %1263, %1262 in 1 : vector<4x1xf32>, vector<4x2xf32> -> vector<4x3xf32>
    %1265 = vector.extract_strided_slice %1264 {offsets = [0, 0], sizes = [4, 1], strides = [1, 1]} : vector<4x3xf32> to vector<4x1xf32>
    %1266 = vector.broadcast %1265 : vector<4x1xf32> to vector<4x3xf32>
    %1267 = arith.mulf %1266, %1264 : vector<4x3xf32>
    %1268 = vector.extract_strided_slice %1264 {offsets = [0, 1], sizes = [4, 1], strides = [1, 1]} : vector<4x3xf32> to vector<4x1xf32>
    %1269 = vector.broadcast %1268 : vector<4x1xf32> to vector<4x3xf32>
    %1270 = arith.mulf %1269, %1264 : vector<4x3xf32>
    %1271 = vector.extract_strided_slice %1264 {offsets = [0, 2], sizes = [4, 1], strides = [1, 1]} : vector<4x3xf32> to vector<4x1xf32>
    %1272 = vector.broadcast %1271 : vector<4x1xf32> to vector<4x3xf32>
    %1273 = arith.mulf %1272, %1264 : vector<4x3xf32>
    %1274 = tpu.concatenate %1267, %1270, %1273 in 1 : vector<4x3xf32>, vector<4x3xf32>, vector<4x3xf32> -> vector<4x9xf32>
    %cst_54 = arith.constant 5.000000e-01 : f32
    %1275 = vector.broadcast %cst_54 : f32 to vector<4x9xf32>
    %1276 = arith.mulf %1274, %1275 : vector<4x9xf32>
    %1277 = vector.extract_strided_slice %1264 {offsets = [0, 0], sizes = [4, 1], strides = [1, 1]} : vector<4x3xf32> to vector<4x1xf32>
    %1278 = vector.broadcast %1277 : vector<4x1xf32> to vector<4x9xf32>
    %1279 = arith.mulf %1278, %1276 : vector<4x9xf32>
    %1280 = vector.extract_strided_slice %1264 {offsets = [0, 1], sizes = [4, 1], strides = [1, 1]} : vector<4x3xf32> to vector<4x1xf32>
    %1281 = vector.broadcast %1280 : vector<4x1xf32> to vector<4x9xf32>
    %1282 = arith.mulf %1281, %1276 : vector<4x9xf32>
    %1283 = vector.extract_strided_slice %1264 {offsets = [0, 2], sizes = [4, 1], strides = [1, 1]} : vector<4x3xf32> to vector<4x1xf32>
    %1284 = vector.broadcast %1283 : vector<4x1xf32> to vector<4x9xf32>
    %1285 = arith.mulf %1284, %1276 : vector<4x9xf32>
    %1286 = tpu.concatenate %1279, %1282, %1285 in 1 : vector<4x9xf32>, vector<4x9xf32>, vector<4x9xf32> -> vector<4x27xf32>
    %cst_55 = arith.constant 0.333333343 : f32
    %1287 = vector.broadcast %cst_55 : f32 to vector<4x27xf32>
    %1288 = arith.mulf %1286, %1287 : vector<4x27xf32>
    %1289 = arith.addf %1207, %1264 : vector<4x3xf32>
    %1290 = arith.addf %1219, %1276 : vector<4x9xf32>
    %1291 = vector.extract_strided_slice %1207 {offsets = [0, 0], sizes = [4, 1], strides = [1, 1]} : vector<4x3xf32> to vector<4x1xf32>
    %1292 = vector.broadcast %1291 : vector<4x1xf32> to vector<4x3xf32>
    %1293 = arith.mulf %1292, %1264 : vector<4x3xf32>
    %1294 = vector.extract_strided_slice %1207 {offsets = [0, 1], sizes = [4, 1], strides = [1, 1]} : vector<4x3xf32> to vector<4x1xf32>
    %1295 = vector.broadcast %1294 : vector<4x1xf32> to vector<4x3xf32>
    %1296 = arith.mulf %1295, %1264 : vector<4x3xf32>
    %1297 = vector.extract_strided_slice %1207 {offsets = [0, 2], sizes = [4, 1], strides = [1, 1]} : vector<4x3xf32> to vector<4x1xf32>
    %1298 = vector.broadcast %1297 : vector<4x1xf32> to vector<4x3xf32>
    %1299 = arith.mulf %1298, %1264 : vector<4x3xf32>
    %1300 = tpu.concatenate %1293, %1296, %1299 in 1 : vector<4x3xf32>, vector<4x3xf32>, vector<4x3xf32> -> vector<4x9xf32>
    %1301 = arith.addf %1290, %1300 : vector<4x9xf32>
    %1302 = arith.addf %1260, %1288 : vector<4x27xf32>
    %1303 = vector.extract_strided_slice %1207 {offsets = [0, 0], sizes = [4, 1], strides = [1, 1]} : vector<4x3xf32> to vector<4x1xf32>
    %1304 = vector.broadcast %1303 : vector<4x1xf32> to vector<4x9xf32>
    %1305 = arith.mulf %1304, %1276 : vector<4x9xf32>
    %1306 = vector.extract_strided_slice %1207 {offsets = [0, 1], sizes = [4, 1], strides = [1, 1]} : vector<4x3xf32> to vector<4x1xf32>
    %1307 = vector.broadcast %1306 : vector<4x1xf32> to vector<4x9xf32>
    %1308 = arith.mulf %1307, %1276 : vector<4x9xf32>
    %1309 = vector.extract_strided_slice %1207 {offsets = [0, 2], sizes = [4, 1], strides = [1, 1]} : vector<4x3xf32> to vector<4x1xf32>
    %1310 = vector.broadcast %1309 : vector<4x1xf32> to vector<4x9xf32>
    %1311 = arith.mulf %1310, %1276 : vector<4x9xf32>
    %1312 = tpu.concatenate %1305, %1308, %1311 in 1 : vector<4x9xf32>, vector<4x9xf32>, vector<4x9xf32> -> vector<4x27xf32>
    %1313 = arith.addf %1302, %1312 : vector<4x27xf32>
    %1314 = vector.extract_strided_slice %1219 {offsets = [0, 0], sizes = [4, 1], strides = [1, 1]} : vector<4x9xf32> to vector<4x1xf32>
    %1315 = vector.broadcast %1314 : vector<4x1xf32> to vector<4x3xf32>
    %1316 = arith.mulf %1315, %1264 : vector<4x3xf32>
    %1317 = vector.extract_strided_slice %1219 {offsets = [0, 1], sizes = [4, 1], strides = [1, 1]} : vector<4x9xf32> to vector<4x1xf32>
    %1318 = vector.broadcast %1317 : vector<4x1xf32> to vector<4x3xf32>
    %1319 = arith.mulf %1318, %1264 : vector<4x3xf32>
    %1320 = vector.extract_strided_slice %1219 {offsets = [0, 2], sizes = [4, 1], strides = [1, 1]} : vector<4x9xf32> to vector<4x1xf32>
    %1321 = vector.broadcast %1320 : vector<4x1xf32> to vector<4x3xf32>
    %1322 = arith.mulf %1321, %1264 : vector<4x3xf32>
    %1323 = vector.extract_strided_slice %1219 {offsets = [0, 3], sizes = [4, 1], strides = [1, 1]} : vector<4x9xf32> to vector<4x1xf32>
    %1324 = vector.broadcast %1323 : vector<4x1xf32> to vector<4x3xf32>
    %1325 = arith.mulf %1324, %1264 : vector<4x3xf32>
    %1326 = vector.extract_strided_slice %1219 {offsets = [0, 4], sizes = [4, 1], strides = [1, 1]} : vector<4x9xf32> to vector<4x1xf32>
    %1327 = vector.broadcast %1326 : vector<4x1xf32> to vector<4x3xf32>
    %1328 = arith.mulf %1327, %1264 : vector<4x3xf32>
    %1329 = vector.extract_strided_slice %1219 {offsets = [0, 5], sizes = [4, 1], strides = [1, 1]} : vector<4x9xf32> to vector<4x1xf32>
    %1330 = vector.broadcast %1329 : vector<4x1xf32> to vector<4x3xf32>
    %1331 = arith.mulf %1330, %1264 : vector<4x3xf32>
    %1332 = vector.extract_strided_slice %1219 {offsets = [0, 6], sizes = [4, 1], strides = [1, 1]} : vector<4x9xf32> to vector<4x1xf32>
    %1333 = vector.broadcast %1332 : vector<4x1xf32> to vector<4x3xf32>
    %1334 = arith.mulf %1333, %1264 : vector<4x3xf32>
    %1335 = vector.extract_strided_slice %1219 {offsets = [0, 7], sizes = [4, 1], strides = [1, 1]} : vector<4x9xf32> to vector<4x1xf32>
    %1336 = vector.broadcast %1335 : vector<4x1xf32> to vector<4x3xf32>
    %1337 = arith.mulf %1336, %1264 : vector<4x3xf32>
    %1338 = vector.extract_strided_slice %1219 {offsets = [0, 8], sizes = [4, 1], strides = [1, 1]} : vector<4x9xf32> to vector<4x1xf32>
    %1339 = vector.broadcast %1338 : vector<4x1xf32> to vector<4x3xf32>
    %1340 = arith.mulf %1339, %1264 : vector<4x3xf32>
    %1341 = tpu.concatenate %1316, %1319, %1322, %1325, %1328, %1331, %1334, %1337, %1340 in 1 : vector<4x3xf32>, vector<4x3xf32>, vector<4x3xf32>, vector<4x3xf32>, vector<4x3xf32>, vector<4x3xf32>, vector<4x3xf32>, vector<4x3xf32>, vector<4x3xf32> -> vector<4x27xf32>
    %1342 = arith.addf %1313, %1341 : vector<4x27xf32>
    %1343 = tpu.concatenate %1289, %1301, %1342 in 1 : vector<4x3xf32>, vector<4x9xf32>, vector<4x27xf32> -> vector<4x39xf32>
    %c0_56 = arith.constant 0 : index
    %c0_57 = arith.constant 0 : index
    %1344 = vector.load %arg5[%c0_56, %c0_57] : memref<1x32xf32, #tpu.memory_space<vmem>>, vector<1x32xf32>
    %1345 = vector.extract_strided_slice %1343 {offsets = [0, 0], sizes = [1, 39], strides = [1, 1]} : vector<4x39xf32> to vector<1x39xf32>
    %c0_58 = arith.constant 0 : index
    %c0_59 = arith.constant 0 : index
    %c0_60 = arith.constant 0 : index
    %1346 = vector.load %arg4[%c0_58, %c0_59, %c0_60] : memref<4x39x32xf32, #tpu.memory_space<vmem>>, vector<1x39x32xf32>
    %1347 = vector.shape_cast %1346 : vector<1x39x32xf32> to vector<39x32xf32>
    %cst_61 = arith.constant dense<0.000000e+00> : vector<1x32xf32>
    %1348 = tpu.matmul %1345, %1347, %cst_61 {dimension_numbers = #tpu.dot_dimension_numbers<[1], [0], [0], [1], [0, 0, 1, 1], [], []>} : vector<1x39xf32>, vector<39x32xf32>, vector<1x32xf32> -> vector<1x32xf32>
    %1349 = arith.addf %1344, %1348 : vector<1x32xf32>
    %1350 = vector.extract_strided_slice %1343 {offsets = [1, 0], sizes = [1, 39], strides = [1, 1]} : vector<4x39xf32> to vector<1x39xf32>
    %c1 = arith.constant 1 : index
    %c0_62 = arith.constant 0 : index
    %c0_63 = arith.constant 0 : index
    %1351 = vector.load %arg4[%c1, %c0_62, %c0_63] : memref<4x39x32xf32, #tpu.memory_space<vmem>>, vector<1x39x32xf32>
    %1352 = vector.shape_cast %1351 : vector<1x39x32xf32> to vector<39x32xf32>
    %cst_64 = arith.constant dense<0.000000e+00> : vector<1x32xf32>
    %1353 = tpu.matmul %1350, %1352, %cst_64 {dimension_numbers = #tpu.dot_dimension_numbers<[1], [0], [0], [1], [0, 0, 1, 1], [], []>} : vector<1x39xf32>, vector<39x32xf32>, vector<1x32xf32> -> vector<1x32xf32>
    %1354 = arith.addf %1349, %1353 : vector<1x32xf32>
    %1355 = vector.extract_strided_slice %1343 {offsets = [2, 0], sizes = [1, 39], strides = [1, 1]} : vector<4x39xf32> to vector<1x39xf32>
    %c2 = arith.constant 2 : index
    %c0_65 = arith.constant 0 : index
    %c0_66 = arith.constant 0 : index
    %1356 = vector.load %arg4[%c2, %c0_65, %c0_66] : memref<4x39x32xf32, #tpu.memory_space<vmem>>, vector<1x39x32xf32>
    %1357 = vector.shape_cast %1356 : vector<1x39x32xf32> to vector<39x32xf32>
    %cst_67 = arith.constant dense<0.000000e+00> : vector<1x32xf32>
    %1358 = tpu.matmul %1355, %1357, %cst_67 {dimension_numbers = #tpu.dot_dimension_numbers<[1], [0], [0], [1], [0, 0, 1, 1], [], []>} : vector<1x39xf32>, vector<39x32xf32>, vector<1x32xf32> -> vector<1x32xf32>
    %1359 = arith.addf %1354, %1358 : vector<1x32xf32>
    %1360 = vector.extract_strided_slice %1343 {offsets = [3, 0], sizes = [1, 39], strides = [1, 1]} : vector<4x39xf32> to vector<1x39xf32>
    %c3 = arith.constant 3 : index
    %c0_68 = arith.constant 0 : index
    %c0_69 = arith.constant 0 : index
    %1361 = vector.load %arg4[%c3, %c0_68, %c0_69] : memref<4x39x32xf32, #tpu.memory_space<vmem>>, vector<1x39x32xf32>
    %1362 = vector.shape_cast %1361 : vector<1x39x32xf32> to vector<39x32xf32>
    %cst_70 = arith.constant dense<0.000000e+00> : vector<1x32xf32>
    %1363 = tpu.matmul %1360, %1362, %cst_70 {dimension_numbers = #tpu.dot_dimension_numbers<[1], [0], [0], [1], [0, 0, 1, 1], [], []>} : vector<1x39xf32>, vector<39x32xf32>, vector<1x32xf32> -> vector<1x32xf32>
    %1364 = arith.addf %1359, %1363 : vector<1x32xf32>
    %cst_71 = arith.constant 0.000000e+00 : f32
    %1365 = vector.broadcast %cst_71 : f32 to vector<1x32xf32>
    %1366 = arith.subf %1365, %1364 : vector<1x32xf32>
    %1367 = math.exp %1366 : vector<1x32xf32>
    %cst_72 = arith.constant 1.000000e+00 : f32
    %1368 = vector.broadcast %cst_72 : f32 to vector<1x32xf32>
    %1369 = arith.addf %1368, %1367 : vector<1x32xf32>
    %cst_73 = arith.constant 1.000000e+00 : f32
    %1370 = vector.broadcast %cst_73 : f32 to vector<1x32xf32>
    %1371 = arith.divf %1370, %1369 : vector<1x32xf32>
    %c0_74 = arith.constant 0 : index
    %c0_75 = arith.constant 0 : index
    %1372 = vector.load %arg6[%c0_74, %c0_75] : memref<32x16xf32, #tpu.memory_space<vmem>>, vector<32x16xf32>
    %c0_76 = arith.constant 0 : index
    %c0_77 = arith.constant 0 : index
    %1373 = vector.load %arg7[%c0_76, %c0_77] : memref<1x16xf32, #tpu.memory_space<vmem>>, vector<1x16xf32>
    %cst_78 = arith.constant dense<0.000000e+00> : vector<1x16xf32>
    %1374 = tpu.matmul %1371, %1372, %cst_78 {dimension_numbers = #tpu.dot_dimension_numbers<[1], [0], [0], [1], [0, 0, 1, 1], [], []>} : vector<1x32xf32>, vector<32x16xf32>, vector<1x16xf32> -> vector<1x16xf32>
    %1375 = arith.addf %1374, %1373 : vector<1x16xf32>
    %cst_79 = arith.constant 0.000000e+00 : f32
    %1376 = vector.broadcast %cst_79 : f32 to vector<1x16xf32>
    %1377 = arith.subf %1376, %1375 : vector<1x16xf32>
    %1378 = math.exp %1377 : vector<1x16xf32>
    %cst_80 = arith.constant 1.000000e+00 : f32
    %1379 = vector.broadcast %cst_80 : f32 to vector<1x16xf32>
    %1380 = arith.addf %1379, %1378 : vector<1x16xf32>
    %cst_81 = arith.constant 1.000000e+00 : f32
    %1381 = vector.broadcast %cst_81 : f32 to vector<1x16xf32>
    %1382 = arith.divf %1381, %1380 : vector<1x16xf32>
    %c0_82 = arith.constant 0 : index
    %c0_83 = arith.constant 0 : index
    %1383 = vector.load %arg8[%c0_82, %c0_83] : memref<16x5xf32, #tpu.memory_space<vmem>>, vector<16x5xf32>
    %c0_84 = arith.constant 0 : index
    %c0_85 = arith.constant 0 : index
    %1384 = vector.load %arg9[%c0_84, %c0_85] : memref<1x5xf32, #tpu.memory_space<vmem>>, vector<1x5xf32>
    %cst_86 = arith.constant dense<0.000000e+00> : vector<1x5xf32>
    %1385 = tpu.matmul %1382, %1383, %cst_86 {dimension_numbers = #tpu.dot_dimension_numbers<[1], [0], [0], [1], [0, 0, 1, 1], [], []>} : vector<1x16xf32>, vector<16x5xf32>, vector<1x5xf32> -> vector<1x5xf32>
    %1386 = arith.addf %1385, %1384 : vector<1x5xf32>
    %cst_87 = arith.constant dense<0xFF800000> : vector<1xf32>
    %1387 = vector.multi_reduction <maximumf>, %1386, %cst_87 [1] : vector<1x5xf32> to vector<1xf32>
    %1388 = vector.shape_cast %1387 : vector<1xf32> to vector<1x1xf32>
    %1389 = vector.broadcast %1388 : vector<1x1xf32> to vector<1x5xf32>
    %1390 = arith.subf %1386, %1389 : vector<1x5xf32>
    %1391 = math.exp %1390 : vector<1x5xf32>
    %cst_88 = arith.constant dense<0.000000e+00> : vector<1xf32>
    %1392 = vector.multi_reduction <add>, %1391, %cst_88 [1] : vector<1x5xf32> to vector<1xf32>
    %1393 = vector.shape_cast %1392 : vector<1xf32> to vector<1x1xf32>
    %1394 = math.log %1393 : vector<1x1xf32>
    %1395 = vector.broadcast %1394 : vector<1x1xf32> to vector<1x5xf32>
    %1396 = arith.subf %1390, %1395 : vector<1x5xf32>
    %c0_89 = arith.constant 0 : index
    %c0_90 = arith.constant 0 : index
    %c0_91 = arith.constant 0 : index
    %1397 = vector.load %arg10[%c0_89, %c0_90, %c0_91] : memref<1x1x5xf32, #tpu.memory_space<vmem>>, vector<1x1x5xf32>
    %1398 = vector.shape_cast %1397 : vector<1x1x5xf32> to vector<1x5xf32>
    %1399 = vector.shape_cast %1396 : vector<1x5xf32> to vector<1x1x5xf32>
    tpu.vector_store %arg10[%c0_89, %c0_90, %c0_91], %1399 {strides = array<i32>} : memref<1x1x5xf32, #tpu.memory_space<vmem>>, vector<1x1x5xf32>,
    return
  }
  func.func @transform_0(%arg0: i32) -> (i32, i32, i32) {
    %c0_i32 = arith.constant 0 : i32
    %c0_i32_0 = arith.constant 0 : i32
    %c0_i32_1 = arith.constant 0 : i32
    return %arg0, %c0_i32, %c0_i32_0 : i32, i32, i32
  }
  func.func @transform_1(%arg0: i32) -> (i32, i32) {
    %c0_i32 = arith.constant 0 : i32
    %c0_i32_0 = arith.constant 0 : i32
    %c0_i32_1 = arith.constant 0 : i32
    return %c0_i32, %c0_i32_0 : i32, i32
  }
  func.func @transform_2(%arg0: i32) -> (i32, i32) {
    %c0_i32 = arith.constant 0 : i32
    %c0_i32_0 = arith.constant 0 : i32
    %c0_i32_1 = arith.constant 0 : i32
    return %c0_i32, %c0_i32_0 : i32, i32
  }
  func.func @transform_3(%arg0: i32) -> (i32, i32, i32) {
    %c0_i32 = arith.constant 0 : i32
    %c0_i32_0 = arith.constant 0 : i32
    %c0_i32_1 = arith.constant 0 : i32
    %c0_i32_2 = arith.constant 0 : i32
    return %c0_i32, %c0_i32_0, %c0_i32_1 : i32, i32, i32
  }
  func.func @transform_4(%arg0: i32) -> (i32, i32) {
    %c0_i32 = arith.constant 0 : i32
    %c0_i32_0 = arith.constant 0 : i32
    %c0_i32_1 = arith.constant 0 : i32
    return %c0_i32, %c0_i32_0 : i32, i32
  }
  func.func @transform_5(%arg0: i32) -> (i32, i32) {
    %c0_i32 = arith.constant 0 : i32
    %c0_i32_0 = arith.constant 0 : i32
    %c0_i32_1 = arith.constant 0 : i32
    return %c0_i32, %c0_i32_0 : i32, i32
  }
  func.func @transform_6(%arg0: i32) -> (i32, i32) {
    %c0_i32 = arith.constant 0 : i32
    %c0_i32_0 = arith.constant 0 : i32
    %c0_i32_1 = arith.constant 0 : i32
    return %c0_i32, %c0_i32_0 : i32, i32
  }
  func.func @transform_7(%arg0: i32) -> (i32, i32) {
    %c0_i32 = arith.constant 0 : i32
    %c0_i32_0 = arith.constant 0 : i32
    %c0_i32_1 = arith.constant 0 : i32
    return %c0_i32, %c0_i32_0 : i32, i32
  }
  func.func @transform_8(%arg0: i32) -> (i32, i32) {
    %c0_i32 = arith.constant 0 : i32
    %c0_i32_0 = arith.constant 0 : i32
    %c0_i32_1 = arith.constant 0 : i32
    return %c0_i32, %c0_i32_0 : i32, i32
  }
  func.func @transform_9(%arg0: i32) -> (i32, i32, i32) {
    %c0_i32 = arith.constant 0 : i32
    %c0_i32_0 = arith.constant 0 : i32
    %c0_i32_1 = arith.constant 0 : i32
    return %arg0, %c0_i32, %c0_i32_0 : i32, i32, i32
  }
}

</mosaic_0001>

<bundles_post_ra>
// kernel: cnn_sig_ff_forward.1
= control target key start
LH: loop header
LB: loop body
LE: loop exit
PB: predicated region body
PF: predicated region fallthrough
CT: control target
= control target key end

     0   :  { %14 = vsyncpa [#allocation3], 0  ;;  %s6395_s0 = inlined_call_operand.vmem [shape: f32[2,4,32], index: 0, kind: input, shape index: {}]   ;;  %s6396_s1 = inlined_call_operand.vmem [shape: f32[4,4], index: 1, kind: input, shape index: {}]   ;;  %s6397_s2 = inlined_call_operand.vmem [shape: f32[4,1], index: 2, kind: input, shape index: {}]   ;;  %s6398_s3 = inlined_call_operand.vmem [shape: f32[4,39,32], index: 3, kind: input, shape index: {}]   ;;  %s6399_s4 = inlined_call_operand.vmem [shape: f32[1,32], index: 4, kind: input, shape index: {}]   ;;  %s6400_s5 = inlined_call_operand.vmem [shape: f32[32,16], index: 5, kind: input, shape index: {}]   ;;  %s6401_s6 = inlined_call_operand.vmem [shape: f32[1,16], index: 6, kind: input, shape index: {}]   ;;  %s6402_s7 = inlined_call_operand.vmem [shape: f32[16,5], index: 7, kind: input, shape index: {}]   ;;  %s6403_s8 = inlined_call_operand.vmem [shape: f32[1,5], index: 8, kind: input, shape index: {}]   ;;  %s6404_s9 = inlined_call_operand.hbm [shape: f32[2,1,5], index: 9, kind: output, shape index: {}]  }
   0x1   :  { %16 = vsyncpa [#allocation3 + $0x1], 0  ;;  %s3875_s30 = smov 0   ;;  %s3877_s10 = smov 0  }
   0x2   :  { %s3879_s11 = smov 0   ;;  %s3881_s12 = smov 0  }
   0x3 LB: > { %s3896_s13 = sadd.s32 4294967295, %s3789_s12   ;;  %s3434_s14 = sadd.s32 4294967294, %s3789_s12   ;;  %s3789_s12 = sphi %s3881_s12, %s6685_s12   ;;  %s3785_s11 = sphi %s3879_s11, %s6684_s11   ;;  %s3781_s10 = sphi %s3877_s10, %s6683_s10   ;;  %s3777_s30 = sphi %s3875_s30, %s6682_s30  }
   0x4   : > { %s3900_s15 = sadd.s32 1, %s3789_s12   ;;  %s223_s16 = sadd.s32 1, %s3785_s11 }
   0x5   : > { %s220_s17 = ssub.s32 %s3789_s12, %s3900_s15  ;;  %p233_p0 = scmp.ne.s32.totalorder %s3785_s11, %s3781_s10 }
   0x6   : > { %p221_p1 = scmp.eq.s32.totalorder %s220_s17, 0  ;;  %p234_p2 = scmp.eq.s32.totalorder %s3896_s13, 1 }
   0x7   : > { %p239_p3 = scmp.ne.s32.totalorder %s3781_s10, %s3777_s30  ;;  %p240_p4 = scmp.eq.s32.totalorder %s3434_s14, 1 }
   0x8   : > { %s3911_s18 = scalar_select %p221_p1, %s3785_s11, %s223_s16  }
   0x9   : > { %p3913_p5 = por %p234_p2, %p233_p0  ;;  %p3917_p6 = por %p240_p4, %p239_p3 }
   0xa   : > { %p3437_p7 = scmp.ge.s32.totalorder %s3789_s12, 1  ;;  %p289_p8 = scmp.lt.s32.totalorder %s3789_s12, 3 }
   0xc   : > { %p290_p9 = pnand %p3437_p7, %p289_p8 }
   0xe   : > { %293 = sbr.rel (%p290_p9) target bundleno = 4226 (0x1082), region = 56 }
  0x13   : > { %v328_v0 = vld [vmem:[%s6396_s1] sm:$0xf]  ;;  %v6411_v1 = vmov 0   ;;  %v6407_v2 = vmov 2   ;;  %v6413_v4 = vmov 1   ;;  %v6415_v5 = vmov 3  }
  0x14   : > { %3539 = vset.pattern.permute.xlu0 %v6411_v1  ;;  %3541 = vset.pattern.permute.xlu1 %v6407_v2  ;;  %v357_v3 = vld [vmem:[%s6397_s2] sm:$0xf]  ;;  %p323_p10 = scmp.lt.s32.totalorder %s3896_s13, 1  ;;  %s3795_s14 = smov 2   ;;  %vm368_vm0 = vcmask 7168   ;;  %vm394_vm1 = vcmask 23552  }
  0x15   : > { %331 = vperm.xlu0 %3539, %v328_v0   ;;  %344 = vperm.xlu1 %3541, %v328_v0   ;;  %s3796_s16 = smov 1   ;;  %s3797_s17 = smov 3   ;;  %vm396_vm2 = vcmask 48128   ;;  %vm410_vm3 = vcmask 72704   ;;  %vm459_vm4 = vcmask 97280   ;;  %vm412_vm5 = vcmask 146432  }
  0x16   : > { %3543 = vset.pattern.permute.xlu2 %v6411_v1  ;;  %s324_s25 = scalar_select %p323_p10, %s3896_s13, 1  ;;  %vm461_vm6 = vcmask 121856   ;;  %vm464_vm7 = vcmask 171008   ;;  %vm466_vm8 = vcmask 195584   ;;  %vm3134_vm9 = vcmask 1046528  }
  0x17   : > { %360 = vperm.xlu2 %3543, %v357_v3   ;;  %s3798_s21 = smov 6   ;;  %s3799_s22 = smov 127   ;;  %vm3130_vm10 = vcmask 318464   ;;  %vm3282_vm14 = vcmask 261120  }
  0x18   : > { %s3438_s26 = sshll.u32 %s324_s25, 2  ;;  %s3800_s23 = smov 15  }
  0x19   : > { %s326_s29 = scalar_lea.vmem %s6395_s0, %s3438_s26  ;;  %s3801_s24 = smov 9  }
  0x1a   : > { %v327_v8 = vld [vmem:[%s326_s29] sm:$0xf]  ;;  %s3802_s25 = smov 125   ;;  %s6405_s26 = smov 24  }
  0x1b   : > { %v334_v9 = vperm.slane %v327_v8, 0  ;;  %v340_v10 = vperm.slane %v327_v8, 1  ;;  %v347_v11 = vperm.slane %v327_v8, 2  ;;  %v354_v12 = vperm.slane %v327_v8, 3  ;;  %s3804_s27 = smov 18   ;;  %s3805_s28 = smov 123  }
  0x1c   : > { %s3806_s29 = smov 121  }
  0x1d   : > { %3540 = vset.pattern.permute.xlu0 %v6413_v4  ;;  %3542 = vset.pattern.permute.xlu1 %v6415_v5 }
  0x1e   : > { %337 = vperm.xlu0 %3540, %v328_v0   ;;  %351 = vperm.xlu1 %3542, %v328_v0  }
  0x1f   : > { %3545 = vset.pattern.permute.xlu2 %v6413_v4 }
  0x26   : > { %3544 = vset.pattern.permute.xlu1 %v6411_v1  ;;  %3546 = vset.pattern.permute.xlu0 %v6407_v2 }
  0x71   : > { %v361_v21 = vpop.permute.xlu2 %360 }
  0x87   : > { %v332_v6 = vpop.permute.xlu0 %331  ;;  %v345_v7 = vpop.permute.xlu1 %344 }
  0x88   : > { %v335_v15 = vmul.f32 %v334_v9, %v332_v6  ;;  %v348_v17 = vmul.f32 %v347_v11, %v345_v7 }
  0x90   : > { %v338_v13 = vpop.permute.xlu0 %337  ;;  %v352_v14 = vpop.permute.xlu1 %351 }
  0x91   : > { %v341_v16 = vmul.f32 %v340_v10, %v338_v13  ;;  %v355_v19 = vmul.f32 %v354_v12, %v352_v14 }
  0x93   : > { %v342_v18 = vadd.f32 %v341_v16, %v335_v15 }
  0x95   : > { %v349_v20 = vadd.f32 %v348_v17, %v342_v18 }
  0x97   : > { %v356_v22 = vadd.f32 %v355_v19, %v349_v20 }
  0x99   : > { %v363_v23 = vadd.f32 %v361_v21, %v356_v22 }
  0x9b   : > { %469 = vrot.lane.b32.xlu1 %v363_v23, %s3795_s14  ;;  %365 = vrot.lane.b32.xlu2 %v363_v23, %s3796_s16  ;;  %s3807_s14 = smov 119   ;;  %s3808_s16 = smov 117  }
  0xf5   : > { %v366_v24 = vpop.permute.xlu2 %365 }
  0xf6   : > { %v3943_v25 = vsel %vm368_vm0, 0.0, %v366_v24  ;;  %v6409_v24 = vmov 7  }
  0xf7   : > { %382 = vperm.xlu0 %3546, %v3943_v25   ;;  %377 = vperm.xlu2 %3545, %v3943_v25   ;;  %v3955_v26 = vmul.f32 0.0, %v3943_v25 }
  0xf8   : > { %372 = vperm.xlu1 %3544, %v3943_v25  }
  0xff   : > { %3548 = vset.pattern.permute.xlu0 %v6413_v4  ;;  %3547 = vset.pattern.permute.xlu2 %v6411_v1 }
 0x100   : > { %3549 = vset.pattern.permute.xlu1 %v6407_v2  ;;  %528 = vperm.xlu0 %3548, %v3943_v25  }
 0x101   : > { %523 = vperm.xlu2 %3547, %v3943_v25   ;;  %533 = vperm.xlu1 %3549, %v3943_v25  }
 0x108   : > { %419 = vrot.lane.b32.xlu0 %v3955_v26, %s3797_s17 }
 0x109   : > { %422 = vrot.lane.b32.xlu1 %v3955_v26, %s3798_s21  ;;  %3550 = vset.pattern.permute.xlu0 %v6411_v1 }
 0x10a   : > { %3551 = vset.pattern.permute.xlu1 %v6413_v4  ;;  %3552 = vset.pattern.permute.xlu2 %v6407_v2 }
 0x10d   : > { %v470_v27 = vpop.permute.xlu1 %469 }
 0x10e   : > { %v3964_v28 = vsub.f32 %v363_v23, %v470_v27 }
 0x110   : > { %6472 = vst [vmem:[#allocation5_spill] sm:$0xff] %v3964_v28  ;;  %474 = vrot.lane.b32.xlu2 %v3964_v28, %s3799_s22  ;;  %446 = vrot.lane.b32.xlu0 %v3955_v26, %s3800_s23  ;;  %s3809_s22 = smov 115  }
 0x111   : > { %440 = vrot.lane.b32.xlu1 %v3955_v26, %s3801_s24 }
 0x118   : > { %650 = vrot.lane.b32.xlu2 %v3964_v28, %s3802_s25  ;;  %455 = vrot.lane.b32.xlu0 %v3955_v26, %s6405_s26  ;;  %s3810_s25 = smov 12   ;;  %s3811_s26 = smov 21  }
 0x119   : > { %449 = vrot.lane.b32.xlu1 %v3955_v26, %s3804_s27 }
 0x120   : > { %826 = vrot.lane.b32.xlu2 %v3964_v28, %s3805_s28  ;;  %s6500_s28 = smov 24  }
 0x128   : > { %1002 = vrot.lane.b32.xlu2 %v3964_v28, %s3806_s29  ;;  %s3817_s29 = smov 113  }
 0x130   : > { %1178 = vrot.lane.b32.xlu2 %v3964_v28, %s3807_s14  ;;  %s3818_s14 = smov 111  }
 0x138   : > { %1354 = vrot.lane.b32.xlu2 %v3964_v28, %s3808_s16  ;;  %s3819_s16 = smov 109  }
 0x140   : > { %1530 = vrot.lane.b32.xlu2 %v3964_v28, %s3809_s22  ;;  %s3820_s22 = smov 105  }
 0x148   : > { %443 = vrot.lane.b32.xlu2 %v3955_v26, %s3810_s25 }
 0x150   : > { %452 = vrot.lane.b32.xlu2 %v3955_v26, %s3811_s26 }
 0x151   : > { %v3985_v29 = vpop.permute.xlu2 %377 }
 0x152   : > { %v380_v30 = vmul.f32 %v3985_v29, %v3943_v25 }
 0x154   : > { %387 = vrot.lane.b32.xlu1 %v380_v30, %s3797_s17 }
 0x15b   : > { %v3990_v31 = vpop.permute.xlu2 %523 }
 0x15c   : > { %6473 = vst [vmem:[#allocation6_spill] sm:$0xff] %v3990_v31 }
 0x169   : > { %v3992_v32 = vpop.permute.xlu0 %382 }
 0x16a   : > { %v385_v33 = vmul.f32 %v3992_v32, %v3943_v25  ;;  %v475_v34 = vpop.permute.xlu2 %474  ;;  %v4031_v46 = vpop.permute.xlu1 %372 }
 0x16b   : > { %v3997_v35 = vsel %vm368_vm0, 0.06666667, %v475_v34  ;;  %v375_v6 = vmul.f32 %v4031_v46, %v3943_v25 }
 0x16c   : > { %391 = vrot.lane.b32.xlu2 %v385_v33, %s3798_s21  ;;  %485 = vperm.xlu1 %3551, %v3997_v35   ;;  %v519_v51 = vadd.f32 %v3997_v35, %v3943_v25 }
 0x16d   : > { %480 = vperm.xlu0 %3550, %v3997_v35  }
 0x172   : > { %v651_v36 = vpop.permute.xlu2 %650  ;;  %v4050_v52 = vpop.permute.xlu0 %528 }
 0x173   : > { %v4003_v37 = vsel %vm368_vm0, 0.06666667, %v651_v36  ;;  %v4040_v49 = vpop.permute.xlu1 %533  ;;  %v531_v53 = vmul.f32 %v4050_v52, %v3997_v35 }
 0x174   : > { %490 = vperm.xlu2 %3552, %v3997_v35   ;;  %661 = vperm.xlu1 %3551, %v4003_v37   ;;  %v536_v50 = vmul.f32 %v4040_v49, %v3997_v35  ;;  %v695_v55 = vadd.f32 %v4003_v37, %v519_v51 }
 0x175   : > { %656 = vperm.xlu0 %3550, %v4003_v37  }
 0x17a   : > { %v827_v38 = vpop.permute.xlu2 %826  ;;  %v420_v62 = vpop.permute.xlu0 %419 }
 0x17b   : > { %v4009_v39 = vsel %vm368_vm0, 0.06666667, %v827_v38  ;;  %v423_v54 = vpop.permute.xlu1 %422  ;;  %v425_v16 = vsel %vm394_vm1, %v3955_v26, %v420_v62 }
 0x17c   : > { %666 = vperm.xlu2 %3552, %v4003_v37   ;;  %837 = vperm.xlu1 %3551, %v4009_v39   ;;  %v871_v57 = vadd.f32 %v4009_v39, %v695_v55  ;;  %v4096_v17 = vsel %vm396_vm2, %v425_v16, %v423_v54 }
 0x17d   : > { %832 = vperm.xlu0 %3550, %v4009_v39  }
 0x182   : > { %v1003_v40 = vpop.permute.xlu2 %1002  ;;  %v4074_v9 = vpop.permute.xlu0 %446 }
 0x183   : > { %v4015_v41 = vsel %vm368_vm0, 0.06666667, %v1003_v40  ;;  %v4060_v58 = vpop.permute.xlu1 %440 }
 0x184   : > { %842 = vperm.xlu2 %3552, %v4009_v39   ;;  %1013 = vperm.xlu1 %3551, %v4015_v41   ;;  %v1047_v59 = vadd.f32 %v4015_v41, %v871_v57 }
 0x185   : > { %1008 = vperm.xlu0 %3550, %v4015_v41  }
 0x18a   : > { %v1179_v42 = vpop.permute.xlu2 %1178  ;;  %v4090_v15 = vpop.permute.xlu0 %455 }
 0x18b   : > { %v4021_v43 = vsel %vm368_vm0, 0.06666667, %v1179_v42  ;;  %v4065_v61 = vpop.permute.xlu1 %449  ;;  %6479 = vst [vmem:[#allocation12_spill] sm:$0xff] %v4090_v15 }
 0x18c   : > { %1018 = vperm.xlu2 %3552, %v4015_v41   ;;  %1189 = vperm.xlu1 %3551, %v4021_v43   ;;  %6477 = vst [vmem:[#allocation10_spill] sm:$0xff] %v4065_v61  ;;  %v1223_v63 = vadd.f32 %v4021_v43, %v1047_v59 }
 0x18d   : > { %1184 = vperm.xlu0 %3550, %v4021_v43  }
 0x192   : > { %v1355_v44 = vpop.permute.xlu2 %1354 }
 0x193   : > { %v4027_v45 = vsel %vm368_vm0, 0.06666667, %v1355_v44 }
 0x194   : > { %6474 = vst [vmem:[#allocation7_spill] sm:$0xff] %v4027_v45  ;;  %1194 = vperm.xlu2 %3552, %v4021_v43   ;;  %1365 = vperm.xlu1 %3551, %v4027_v45   ;;  %v4072_v8 = vadd.f32 %v4027_v45, %v1223_v63 }
 0x195   : > { %1360 = vperm.xlu0 %3550, %v4027_v45  }
 0x196   : > { %6478 = vst [vmem:[#allocation11_spill] sm:$0xff] %v4072_v8 }
 0x19a   : > { %v1531_v47 = vpop.permute.xlu2 %1530 }
 0x19b   : > { %v4035_v48 = vsel %vm368_vm0, 0.06666667, %v1531_v47 }
 0x19c   : > { %6475 = vst [vmem:[#allocation8_spill] sm:$0xff] %v4035_v48  ;;  %1370 = vperm.xlu2 %3552, %v4027_v45   ;;  %1541 = vperm.xlu1 %3551, %v4035_v48  }
 0x19d   : > { %1536 = vperm.xlu0 %3550, %v4035_v48  }
 0x1a2   : > { %v4057_v56 = vpop.permute.xlu2 %443 }
 0x1a4   : > { %1546 = vperm.xlu2 %3552, %v4035_v48   ;;  %542 = vrot.lane.b32.xlu1 %v536_v50, %s3798_s21 }
 0x1a5   : > { %3554 = vset.pattern.permute.xlu0 %v6413_v4  ;;  %3555 = vset.pattern.permute.xlu1 %v6407_v2 }
 0x1a6   : > { %704 = vperm.xlu0 %3554, %v519_v51  }
 0x1aa   : > { %v4063_v60 = vpop.permute.xlu2 %452 }
 0x1ab   : > { %6476 = vst [vmem:[#allocation9_spill] sm:$0xff] %v4063_v60 }
 0x1ac   : > { %538 = vrot.lane.b32.xlu2 %v531_v53, %s3797_s17  ;;  %709 = vperm.xlu1 %3555, %v519_v51  }
 0x1ad   : > { %3553 = vset.pattern.permute.xlu2 %v6411_v1 }
 0x1ae   : > { %880 = vperm.xlu0 %3554, %v695_v55  }
 0x1b4   : > { %699 = vperm.xlu2 %3553, %v519_v51   ;;  %885 = vperm.xlu1 %3555, %v695_v55  }
 0x1b6   : > { %1056 = vperm.xlu0 %3554, %v871_v57  }
 0x1bc   : > { %875 = vperm.xlu2 %3553, %v695_v55   ;;  %1061 = vperm.xlu1 %3555, %v871_v57  }
 0x1be   : > { %1232 = vperm.xlu0 %3554, %v1047_v59  }
 0x1c4   : > { %1051 = vperm.xlu2 %3553, %v871_v57   ;;  %1237 = vperm.xlu1 %3555, %v1047_v59  }
 0x1c6   : > { %1408 = vperm.xlu0 %3554, %v1223_v63   ;;  %v392_v0 = vpop.permute.xlu2 %391  ;;  %v388_v3 = vpop.permute.xlu1 %387 }
 0x1c7   : > { %v395_v7 = vsel %vm394_vm1, %v375_v6, %v388_v3 }
 0x1c8   : > { %v397_v10 = vsel %vm396_vm2, %v395_v7, %v392_v0 }
 0x1c9   : > { %v4080_v12 = vmul.f32 0.5, %v397_v10 }
 0x1cb   : > { %v4084_v13 = vmul.f32 0.0, %v4080_v12  ;;  %v4100_v18 = vadd.f32 %v4096_v17, %v4080_v12 }
 0x1cc   : > { %1227 = vperm.xlu2 %3553, %v1047_v59   ;;  %1413 = vperm.xlu1 %3555, %v1223_v63  }
 0x1ce   : > { %1584 = vperm.xlu0 %3554, %v4072_v8   ;;  %v4078_v11 = vpop.permute.xlu2 %490 }
 0x1cf   : > { %v493_v23 = vmul.f32 %v4078_v11, %v3997_v35 }
 0x1d4   : > { %1403 = vperm.xlu2 %3553, %v1223_v63   ;;  %1589 = vperm.xlu1 %3555, %v4072_v8  }
 0x1d6   : > { %434 = vrot.lane.b32.xlu0 %v4084_v13, %s3804_s27  ;;  %v4088_v14 = vpop.permute.xlu2 %666 }
 0x1d7   : > { %3558 = vset.pattern.permute.xlu0 %v6407_v2  ;;  %v669_v33 = vmul.f32 %v4088_v14, %v4003_v37 }
 0x1dc   : > { %1579 = vperm.xlu2 %3553, %v4072_v8   ;;  %3556 = vset.pattern.permute.xlu1 %v6411_v1  ;;  %v6423_v1 = vmov 5   ;;  %v6430_v8 = vmov 8  }
 0x1de   : > { %575 = vperm.xlu0 %3558, %v4100_v18   ;;  %v4105_v19 = vpop.permute.xlu2 %842  ;;  %v4107_v20 = vpop.permute.xlu1 %485 }
 0x1df   : > { %v488_v21 = vmul.f32 %v4107_v20, %v3997_v35  ;;  %v4111_v22 = vpop.permute.xlu0 %480  ;;  %v845_v42 = vmul.f32 %v4105_v19, %v4009_v39 }
 0x1e0   : > { %6480 = vst [vmem:[#allocation13_spill] sm:$0xff] %v4111_v22 }
 0x1e1   : > { %495 = vrot.lane.b32.xlu1 %v488_v21, %s3797_s17 }
 0x1e4   : > { %499 = vrot.lane.b32.xlu2 %v493_v23, %s3798_s21 }
 0x1e5   : > { %3557 = vset.pattern.permute.xlu2 %v6413_v4  ;;  %v6425_v4 = vmov 6  }
 0x1e6   : > { %3563 = vset.pattern.permute.xlu0 %v6409_v24  ;;  %v4119_v25 = vpop.permute.xlu2 %1018  ;;  %v4121_v26 = vpop.permute.xlu1 %661 }
 0x1e7   : > { %v664_v27 = vmul.f32 %v4121_v26, %v4003_v37  ;;  %600 = vperm.xlu0 %3563, %v4100_v18   ;;  %v4126_v30 = vpop.permute.xlu0 %656  ;;  %v1021_v53 = vmul.f32 %v4119_v25, %v4015_v41 }
 0x1e8   : > { %6481 = vst [vmem:[#allocation14_spill] sm:$0xff] %v4126_v30 }
 0x1e9   : > { %671 = vrot.lane.b32.xlu1 %v664_v27, %s3797_s17 }
 0x1ec   : > { %675 = vrot.lane.b32.xlu2 %v669_v33, %s3798_s21 }
 0x1ee   : > { %v4132_v34 = vpop.permute.xlu2 %1194  ;;  %v4134_v36 = vpop.permute.xlu1 %837 }
 0x1ef   : > { %v840_v38 = vmul.f32 %v4134_v36, %v4009_v39  ;;  %v4138_v40 = vpop.permute.xlu0 %832  ;;  %3567 = vset.pattern.permute.xlu0 %v6407_v2  ;;  %v1197_v62 = vmul.f32 %v4132_v34, %v4021_v43 }
 0x1f0   : > { %6482 = vst [vmem:[#allocation15_spill] sm:$0xff] %v4138_v40 }
 0x1f1   : > { %847 = vrot.lane.b32.xlu1 %v840_v38, %s3797_s17 }
 0x1f4   : > { %851 = vrot.lane.b32.xlu2 %v845_v42, %s3798_s21 }
 0x1f6   : > { %v4145_v44 = vpop.permute.xlu2 %1370  ;;  %v4147_v47 = vpop.permute.xlu1 %1013 }
 0x1f7   : > { %v1016_v50 = vmul.f32 %v4147_v47, %v4015_v41  ;;  %v4151_v51 = vpop.permute.xlu0 %1008  ;;  %v1373_v7 = vmul.f32 %v4145_v44, %v4027_v45 }
 0x1f9   : > { %1023 = vrot.lane.b32.xlu1 %v1016_v50, %s3797_s17 }
 0x1fc   : > { %1027 = vrot.lane.b32.xlu2 %v1021_v53, %s3798_s21 }
 0x1fe   : > { %v4157_v54 = vpop.permute.xlu2 %1546  ;;  %v4159_v55 = vpop.permute.xlu1 %1189 }
 0x1ff   : > { %6483 = vst [vmem:[#allocation16_spill] sm:$0xff] %v4157_v54  ;;  %v1192_v57 = vmul.f32 %v4159_v55, %v4021_v43  ;;  %v4163_v59 = vpop.permute.xlu0 %1184  ;;  %v1549_v27 = vmul.f32 %v4157_v54, %v4035_v48  ;;  %v6496_v54 = vmov 0  }
 0x201   : > { %1199 = vrot.lane.b32.xlu1 %v1192_v57, %s3797_s17 }
 0x204   : > { %1203 = vrot.lane.b32.xlu2 %v1197_v62, %s3798_s21 }
 0x206   : > { %v4169_v63 = vpop.permute.xlu2 %538  ;;  %v4171_v0 = vpop.permute.xlu1 %1365 }
 0x207   : > { %6484 = vst [vmem:[#allocation17_spill] sm:$0xff] %v4171_v0  ;;  %v1368_v3 = vmul.f32 %v4171_v0, %v4027_v45  ;;  %v4175_v6 = vpop.permute.xlu0 %1360 }
 0x208   : > { %6485 = vst [vmem:[#allocation18_spill] sm:$0xff] %v4175_v6 }
 0x209   : > { %1375 = vrot.lane.b32.xlu1 %v1368_v3, %s3797_s17  ;;  %v401_v3 = vmul.f32 %v4080_v12, %v3992_v32 }
 0x20c   : > { %1379 = vrot.lane.b32.xlu2 %v1373_v7, %s3798_s21 }
 0x20e   : > { %v4181_v10 = vpop.permute.xlu2 %699  ;;  %v4183_v16 = vpop.permute.xlu1 %1541 }
 0x20f   : > { %6486 = vst [vmem:[#allocation19_spill] sm:$0xff] %v4183_v16  ;;  %v1544_v21 = vmul.f32 %v4183_v16, %v4035_v48  ;;  %v4187_v23 = vpop.permute.xlu0 %1536 }
 0x210   : > { %6487 = vst [vmem:[#allocation20_spill] sm:$0xff] %v4187_v23 }
 0x211   : > { %1551 = vrot.lane.b32.xlu1 %v1544_v21, %s3797_s17 }
 0x214   : > { %1555 = vrot.lane.b32.xlu2 %v1549_v27, %s3798_s21  ;;  %v400_v27 = vmul.f32 %v4080_v12, %v3985_v29  ;;  %v6418_v29 = vmov 4  }
 0x216   : > { %v4193_v33 = vpop.permute.xlu2 %875  ;;  %v4195_v38 = vpop.permute.xlu1 %542 }
 0x217   : > { %6488 = vst [vmem:[#allocation21_spill] sm:$0xff] %v4193_v33 }
 0x218   : > { %v4197_v42 = vpop.permute.xlu0 %704 }
 0x219   : > { %v707_v50 = vmul.f32 %v4197_v42, %v4003_v37 }
 0x21c   : > { %714 = vrot.lane.b32.xlu2 %v707_v50, %s3797_s17 }
 0x21e   : > { %v4202_v53 = vpop.permute.xlu2 %1051  ;;  %v4204_v57 = vpop.permute.xlu1 %709 }
 0x21f   : > { %6489 = vst [vmem:[#allocation22_spill] sm:$0xff] %v4202_v53  ;;  %v712_v62 = vmul.f32 %v4204_v57, %v4003_v37 }
 0x220   : > { %v4235_v2 = vpop.permute.xlu0 %880 }
 0x221   : > { %718 = vrot.lane.b32.xlu1 %v712_v62, %s3798_s21  ;;  %v883_v28 = vmul.f32 %v4235_v2, %v4009_v39 }
 0x224   : > { %407 = vrot.lane.b32.xlu2 %v401_v3, %s3804_s27 }
 0x226   : > { %v4212_v7 = vpop.permute.xlu2 %1227  ;;  %v4214_v21 = vpop.permute.xlu1 %885 }
 0x227   : > { %6490 = vst [vmem:[#allocation23_spill] sm:$0xff] %v4212_v7  ;;  %v888_v7 = vmul.f32 %v4214_v21, %v4009_v39 }
 0x229   : > { %403 = vrot.lane.b32.xlu1 %v400_v27, %s3801_s24 }
 0x22c   : > { %431 = vrot.lane.b32.xlu2 %v4084_v13, %s3801_s24 }
 0x22e   : > { %v4221_v50 = vpop.permute.xlu2 %1403  ;;  %v4223_v62 = vpop.permute.xlu1 %1061 }
 0x22f   : > { %6491 = vst [vmem:[#allocation24_spill] sm:$0xff] %v4221_v50  ;;  %v483_v50 = vmul.f32 %v4111_v22, %v3997_v35 }
 0x231   : > { %565 = vperm.xlu1 %3556, %v4100_v18  }
 0x234   : > { %570 = vperm.xlu2 %3557, %v4100_v18  }
 0x236   : > { %v4227_v32 = vpop.permute.xlu2 %1579  ;;  %v4229_v3 = vpop.permute.xlu1 %1237 }
 0x237   : > { %6492 = vst [vmem:[#allocation25_spill] sm:$0xff] %v4227_v32  ;;  %v4243_v32 = vpop.permute.xlu0 %1056 }
 0x239   : > { %3559 = vset.pattern.permute.xlu1 %v6415_v5 }
 0x23a   : > { %580 = vperm.xlu1 %3559, %v4100_v18  }
 0x23c   : > { %3560 = vset.pattern.permute.xlu2 %v6418_v29 }
 0x23d   : > { %585 = vperm.xlu2 %3560, %v4100_v18  }
 0x23e   : > { %v500_v27 = vpop.permute.xlu2 %499  ;;  %v4237_v24 = vpop.permute.xlu1 %1413 }
 0x23f   : > { %6493 = vst [vmem:[#allocation26_spill] sm:$0xff] %v4237_v24  ;;  %v4263_v16 = vpop.permute.xlu0 %1232 }
 0x242   : > { %3561 = vset.pattern.permute.xlu1 %v6423_v1 }
 0x243   : > { %590 = vperm.xlu1 %3561, %v4100_v18  }
 0x245   : > { %3562 = vset.pattern.permute.xlu2 %v6425_v4  ;;  %v6495_v4 = vmov 1  }
 0x246   : > { %v676_v5 = vpop.permute.xlu2 %675  ;;  %595 = vperm.xlu2 %3562, %v4100_v18   ;;  %v4245_v29 = vpop.permute.xlu1 %1589 }
 0x247   : > { %6494 = vst [vmem:[#allocation27_spill] sm:$0xff] %v4245_v29 }
 0x24b   : > { %3564 = vset.pattern.permute.xlu1 %v6430_v8  ;;  %v1059_v8 = vmul.f32 %v4243_v32, %v4015_v41 }
 0x24c   : > { %605 = vperm.xlu1 %3564, %v4100_v18  }
 0x24e   : > { %v4251_v1 = vpop.permute.xlu2 %851  ;;  %890 = vrot.lane.b32.xlu2 %v883_v28, %s3797_s17 }
 0x24f   : > { %3566 = vset.pattern.permute.xlu2 %v6495_v4 }
 0x253   : > { %v496_v53 = vpop.permute.xlu1 %495 }
 0x254   : > { %v502_v33 = vsel %vm394_vm1, %v483_v50, %v496_v53  ;;  %894 = vrot.lane.b32.xlu1 %v888_v7, %s3798_s21  ;;  %v659_v53 = vmul.f32 %v4126_v30, %v4003_v37  ;;  %v526_v7 = vmul.f32 %v3990_v31, %v3997_v35 }
 0x255   : > { %v503_v28 = vsel %vm396_vm2, %v502_v33, %v500_v27  ;;  %3565 = vset.pattern.permute.xlu1 %v6496_v54  ;;  %v1064_v33 = vmul.f32 %v4223_v62, %v4015_v41 }
 0x256   : > { %v4267_v4 = vmul.f32 0.5, %v503_v28  ;;  %v4269_v15 = vpop.permute.xlu2 %1027  ;;  %1066 = vrot.lane.b32.xlu2 %v1059_v8, %s3797_s17  ;;  %v545_v8 = vsel %vm394_vm1, %v526_v7, %v4169_v63  ;;  %v4299_v63 = vpop.permute.xlu0 %1408 }
 0x257   : > { %v546_v30 = vsel %vm396_vm2, %v545_v8, %v4195_v38  ;;  %v1240_v38 = vmul.f32 %v4229_v3, %v4021_v43 }
 0x258   : > { %6497 = vst [vmem:[#allocation28_spill] sm:$0xff] %v4267_v4  ;;  %v506_v22 = vmul.f32 %v4267_v4, %v4107_v20  ;;  %v520_v50 = vadd.f32 %v4267_v4, %v4100_v18  ;;  %v1235_v20 = vmul.f32 %v4263_v16, %v4021_v43 }
 0x25a   : > { %509 = vrot.lane.b32.xlu0 %v506_v22, %s3801_s24  ;;  %v4292_v31 = vadd.f32 %v546_v30, %v520_v50  ;;  %v1411_v30 = vmul.f32 %v4299_v63, %v4027_v45 }
 0x25b   : > { %v672_v27 = vpop.permute.xlu1 %671 }
 0x25c   : > { %v678_v28 = vsel %vm394_vm1, %v659_v53, %v672_v27  ;;  %1070 = vrot.lane.b32.xlu1 %v1064_v33, %s3798_s21  ;;  %6498 = vst [vmem:[#allocation29_spill] sm:$0xff] %v4292_v31  ;;  %v551_v53 = vmul.f32 %v4040_v49, %v4267_v4  ;;  %v1416_v49 = vmul.f32 %v4237_v24, %v4027_v45 }
 0x25d   : > { %v679_v54 = vsel %vm396_vm2, %v678_v28, %v676_v5  ;;  %v550_v28 = vmul.f32 %v4050_v52, %v4267_v4 }
 0x25e   : > { %v4294_v18 = vmul.f32 0.5, %v679_v54  ;;  %v4296_v22 = vpop.permute.xlu2 %1203  ;;  %1242 = vrot.lane.b32.xlu2 %v1235_v20, %s3797_s17  ;;  %v4314_v33 = vpop.permute.xlu0 %1584  ;;  %v1592_v20 = vmul.f32 %v4245_v29, %v4035_v48 }
 0x25f   : > { %v1587_v50 = vmul.f32 %v4314_v33, %v4035_v48 }
 0x260   : > { %v696_v7 = vadd.f32 %v4294_v18, %v4292_v31 }
 0x262   : > { %557 = vrot.lane.b32.xlu0 %v551_v53, %s3804_s27 }
 0x263   : > { %v848_v5 = vpop.permute.xlu1 %847 }
 0x264   : > { %1246 = vrot.lane.b32.xlu1 %v1240_v38, %s3798_s21 }
 0x266   : > { %v4311_v54 = vpop.permute.xlu2 %1379  ;;  %1418 = vrot.lane.b32.xlu2 %v1411_v30, %s3797_s17  ;;  %v4329_v53 = vpop.permute.xlu0 %434 }
 0x267   : > { %6499 = vst [vmem:[#allocation30_spill] sm:$0xff] %v4329_v53 }
 0x26b   : > { %v1024_v27 = vpop.permute.xlu1 %1023 }
 0x26c   : > { %1422 = vrot.lane.b32.xlu1 %v1416_v49, %s3798_s21  ;;  %v507_v49 = vmul.f32 %v4267_v4, %v4078_v11  ;;  %v702_v4 = vmul.f32 %v4181_v10, %v4003_v37 }
 0x26e   : > { %v4321_v8 = vpop.permute.xlu2 %1555  ;;  %1594 = vrot.lane.b32.xlu2 %v1587_v50, %s3797_s17  ;;  %v576_v29 = vpop.permute.xlu0 %575 }
 0x273   : > { %v4332_v30 = vpop.permute.xlu1 %1199 }
 0x274   : > { %1598 = vrot.lane.b32.xlu1 %v1592_v20, %s3798_s21  ;;  %v578_v20 = vmul.f32 %v576_v29, %v3997_v35 }
 0x276   : > { %v715_v38 = vpop.permute.xlu2 %714  ;;  %553 = vrot.lane.b32.xlu2 %v550_v28, %s3801_s24  ;;  %v835_v28 = vmul.f32 %v4138_v40, %v4009_v39 }
 0x278   : > { %v854_v11 = vsel %vm394_vm1, %v835_v28, %v848_v5 }
 0x279   : > { %v855_v29 = vsel %vm396_vm2, %v854_v11, %v4251_v1  ;;  %v601_v1 = vpop.permute.xlu0 %600  ;;  %v727_v11 = vmul.f32 %v4204_v57, %v4294_v18  ;;  %v1011_v57 = vmul.f32 %v4151_v51, %v4015_v41 }
 0x27a   : > { %v4358_v0 = vmul.f32 0.5, %v855_v29 }
 0x27b   : > { %v4339_v24 = vpop.permute.xlu1 %1375 }
 0x27c   : > { %513 = vrot.lane.b32.xlu1 %v507_v49, %s3804_s27 }
 0x27e   : > { %v4337_v50 = vpop.permute.xlu2 %407 }
 0x283   : > { %v4345_v31 = vpop.permute.xlu1 %1551 }
 0x284   : > { %614 = vrot.lane.b32.xlu1 %v578_v20, %s3798_s21  ;;  %v721_v20 = vsel %vm394_vm1, %v702_v4, %v715_v38  ;;  %v603_v4 = vmul.f32 %v601_v1, %v3997_v35 }
 0x286   : > { %v4343_v52 = vpop.permute.xlu2 %431 }
 0x28e   : > { %v571_v60 = vpop.permute.xlu2 %570 }
 0x28f   : > { %v573_v49 = vmul.f32 %v571_v60, %v3997_v35 }
 0x291   : > { %610 = vrot.lane.b32.xlu2 %v573_v49, %s3797_s17 }
 0x293   : > { %v719_v53 = vpop.permute.xlu1 %718 }
 0x294   : > { %v722_v61 = vsel %vm396_vm2, %v721_v20, %v719_v53 }
 0x295   : > { %v4360_v40 = vadd.f32 %v722_v61, %v696_v7  ;;  %v682_v61 = vmul.f32 %v4294_v18, %v4121_v26  ;;  %v858_v26 = vmul.f32 %v4358_v0, %v4134_v36  ;;  %v903_v36 = vmul.f32 %v4214_v21, %v4358_v0 }
 0x296   : > { %v683_v21 = vmul.f32 %v4294_v18, %v4088_v14 }
 0x297   : > { %v586_v5 = vpop.permute.xlu2 %585  ;;  %v4364_v60 = vadd.f32 %v4358_v0, %v4360_v40 }
 0x298   : > { %v588_v28 = vmul.f32 %v586_v5, %v3997_v35 }
 0x29a   : > { %622 = vrot.lane.b32.xlu0 %v588_v28, %s3810_s25 }
 0x29b   : > { %v4368_v49 = vpop.permute.xlu1 %403 }
 0x2a0   : > { %v596_v29 = vpop.permute.xlu2 %595 }
 0x2a1   : > { %v598_v20 = vmul.f32 %v596_v29, %v3997_v35 }
 0x2a2   : > { %634 = vrot.lane.b32.xlu0 %v603_v4, %s3811_s26  ;;  %v726_v4 = vmul.f32 %v4197_v42, %v4294_v18  ;;  %v902_v42 = vmul.f32 %v4235_v2, %v4358_v0 }
 0x2a3   : > { %v4372_v53 = vpop.permute.xlu1 %565 }
 0x2a8   : > { %v4391_v1 = vpop.permute.xlu2 %890 }
 0x2aa   : > { %685 = vrot.lane.b32.xlu0 %v682_v61, %s3801_s24  ;;  %v1030_v61 = vsel %vm394_vm1, %v1011_v57, %v1024_v27 }
 0x2ac   : > { %v581_v7 = vpop.permute.xlu1 %580 }
 0x2ad   : > { %v583_v38 = vmul.f32 %v581_v7, %v3997_v35 }
 0x2af   : > { %618 = vrot.lane.b32.xlu2 %v583_v38, %s3801_s24 }
 0x2b2   : > { %733 = vrot.lane.b32.xlu0 %v727_v11, %s3804_s27  ;;  %v1031_v11 = vsel %vm396_vm2, %v1030_v61, %v4269_v15 }
 0x2b3   : > { %v4404_v29 = vmul.f32 0.5, %v1031_v11 }
 0x2b5   : > { %v591_v5 = vpop.permute.xlu1 %590  ;;  %v1034_v15 = vmul.f32 %v4404_v29, %v4147_v47  ;;  %v859_v47 = vmul.f32 %v4358_v0, %v4105_v19  ;;  %v1079_v57 = vmul.f32 %v4223_v62, %v4404_v29 }
 0x2b6   : > { %v593_v28 = vmul.f32 %v591_v5, %v3997_v35  ;;  %v1187_v5 = vmul.f32 %v4163_v59, %v4021_v43 }
 0x2b7   : > { %630 = vrot.lane.b32.xlu2 %v598_v20, %s3804_s27  ;;  %v4410_v20 = vpop.permute.xlu2 %1066 }
 0x2b8   : > { %626 = vrot.lane.b32.xlu1 %v593_v28, %s3800_s23  ;;  %v1206_v2 = vsel %vm394_vm1, %v1187_v5, %v4332_v30  ;;  %v1078_v28 = vmul.f32 %v4243_v32, %v4404_v29 }
 0x2ba   : > { %861 = vrot.lane.b32.xlu0 %v858_v26, %s3801_s24  ;;  %v1207_v26 = vsel %vm396_vm2, %v1206_v2, %v4296_v22  ;;  %v6503_v2 = vld [vmem:[#allocation17_spill] sm:$0xff] }
 0x2bb   : > { %v4436_v30 = vmul.f32 0.5, %v1207_v26 }
 0x2bd   : > { %v1254_v19 = vmul.f32 %v4263_v16, %v4436_v30 }
 0x2be   : > { %v606_v7 = vpop.permute.xlu1 %605 }
 0x2bf   : > { %v608_v38 = vmul.f32 %v606_v7, %v3997_v35  ;;  %729 = vrot.lane.b32.xlu2 %v726_v4, %s3801_s24  ;;  %v1363_v4 = vmul.f32 %v4175_v6, %v4027_v45  ;;  %v4438_v61 = vpop.permute.xlu2 %1242  ;;  %v1035_v7 = vmul.f32 %v4404_v29, %v4119_v25 }
 0x2c1   : > { %638 = vrot.lane.b32.xlu1 %v608_v38, %s6500_s28  ;;  %v1382_v32 = vsel %vm394_vm1, %v1363_v4, %v4339_v24  ;;  %v1210_v38 = vmul.f32 %v4436_v30, %v4159_v55  ;;  %v6508_v4 = vld [vmem:[#allocation28_spill] sm:$0xff] }
 0x2c2   : > { %909 = vrot.lane.b32.xlu0 %v903_v36, %s3804_s27  ;;  %v1383_v62 = vsel %vm396_vm2, %v1382_v32, %v4311_v54  ;;  %v1539_v36 = vmul.f32 %v4187_v23, %v4035_v48 }
 0x2c3   : > { %v4457_v24 = vmul.f32 0.5, %v1383_v62 }
 0x2c4   : > { %v1558_v16 = vsel %vm394_vm1, %v1539_v36, %v4345_v31  ;;  %v1255_v31 = vmul.f32 %v4229_v3, %v4436_v30 }
 0x2c5   : > { %6501 = vst [vmem:[#allocation31_spill] sm:$0xff] %v4457_v24  ;;  %v1430_v25 = vmul.f32 %v4299_v63, %v4457_v24  ;;  %v1559_v55 = vsel %vm396_vm2, %v1558_v16, %v4321_v8 }
 0x2c6   : > { %v4408_v27 = vpop.permute.xlu1 %894 }
 0x2c7   : > { %905 = vrot.lane.b32.xlu2 %v902_v42, %s3801_s24  ;;  %v4463_v54 = vpop.permute.xlu2 %1418  ;;  %v1211_v42 = vmul.f32 %v4436_v30, %v4132_v34  ;;  %v458_v34 = vsel %vm410_vm3, %v4096_v17, %v4060_v58  ;;  %v1387_v58 = vmul.f32 %v4457_v24, %v4145_v44  ;;  %v6505_v44 = vld [vmem:[#allocation30_spill] sm:$0xff] }
 0x2c9   : > { %689 = vrot.lane.b32.xlu1 %v683_v21, %s3804_s27  ;;  %v399_v21 = vmul.f32 %v4080_v12, %v4031_v46  ;;  %v460_v46 = vsel %vm459_vm4, %v458_v34, %v4057_v56  ;;  %v437_v56 = vsel %vm410_vm3, %v4084_v13, %v4343_v52  ;;  %v6507_v52 = vld [vmem:[#allocation13_spill] sm:$0xff] }
 0x2ca   : > { %1037 = vrot.lane.b32.xlu0 %v1034_v15, %s3801_s24  ;;  %v4478_v15 = vmul.f32 0.5, %v1559_v55  ;;  %v462_v17 = vsel %vm461_vm6, %v460_v46, %v4074_v9  ;;  %v6506_v9 = vld [vmem:[#allocation9_spill] sm:$0xff]  ;;  %v505_v32 = vmul.f32 %v6508_v4, %v6507_v52  ;;  %v6511_v55 = vld [vmem:[#allocation16_spill] sm:$0xff]  ;;  %v6520_v52 = vmov 5  }
 0x2cb   : > { %v411_v63 = vsel %vm410_vm3, %v399_v21, %v4368_v49  ;;  %v6512_v21 = vld [vmem:[#allocation6_spill] sm:$0xff] }
 0x2cc   : > { %6502 = vst [vmem:[#allocation32_spill] sm:$0xff] %v4478_v15  ;;  %v413_v12 = vsel %vm412_vm5, %v411_v63, %v4337_v50  ;;  %v1606_v8 = vmul.f32 %v4314_v33, %v4478_v15  ;;  %v510_v49 = vpop.permute.xlu0 %509  ;;  %v6504_v33 = vld [vmem:[#allocation10_spill] sm:$0xff] }
 0x2cd   : > { %v414_v50 = vmul.f32 0.33333334, %v413_v12  ;;  %v463_v26 = vsel %vm412_vm5, %v462_v17, %v6504_v33  ;;  %v6513_v12 = vld [vmem:[#allocation26_spill] sm:$0xff]  ;;  %v6516_v33 = vmov 6  }
 0x2ce   : > { %v4427_v14 = vpop.permute.xlu1 %1070 }
 0x2cf   : > { %1081 = vrot.lane.b32.xlu2 %v1078_v28, %s3801_s24  ;;  %v4491_v3 = vpop.permute.xlu2 %1594  ;;  %v1386_v28 = vmul.f32 %v4457_v24, %v6503_v2  ;;  %v6515_v2 = vld [vmem:[#allocation19_spill] sm:$0xff] }
 0x2d1   : > { %865 = vrot.lane.b32.xlu1 %v859_v47, %s3804_s27  ;;  %v438_v47 = vsel %vm412_vm5, %v437_v56, %v6505_v44 }
 0x2d2   : > { %1085 = vrot.lane.b32.xlu0 %v1079_v57, %s3804_s27  ;;  %v465_v57 = vsel %vm464_vm7, %v463_v26, %v6506_v9  ;;  %v439_v13 = vadd.f32 %v438_v47, %v414_v50  ;;  %v6514_v50 = vmov 4   ;;  %v6517_v26 = vld [vmem:[#allocation27_spill] sm:$0xff]  ;;  %v6518_v9 = vmov 3  }
 0x2d3   : > { %v1607_v44 = vmul.f32 %v6517_v26, %v4478_v15 }
 0x2d4   : > { %v558_v63 = vpop.permute.xlu0 %557 }
 0x2d6   : > { %v4448_v22 = vpop.permute.xlu1 %1246 }
 0x2d7   : > { %1257 = vrot.lane.b32.xlu2 %v1254_v19, %s3801_s24  ;;  %v516_v19 = vsel %vm410_vm3, %v505_v32, %v510_v49  ;;  %v554_v36 = vpop.permute.xlu2 %553 }
 0x2d9   : > { %1041 = vrot.lane.b32.xlu1 %v1035_v7, %s3804_s27  ;;  %v6509_v7 = vld [vmem:[#allocation12_spill] sm:$0xff] }
 0x2da   : > { %1213 = vrot.lane.b32.xlu0 %v1210_v38, %s3801_s24  ;;  %v467_v38 = vsel %vm466_vm8, %v465_v57, %v6509_v7  ;;  %v6519_v57 = vmov 1  }
 0x2db   : > { %v468_v34 = vadd.f32 %v467_v38, %v439_v13 }
 0x2de   : > { %v4469_v11 = vpop.permute.xlu1 %1422 }
 0x2df   : > { %1433 = vrot.lane.b32.xlu2 %v1430_v25, %s3801_s24  ;;  %v6510_v25 = vld [vmem:[#allocation29_spill] sm:$0xff] }
 0x2e1   : > { %1217 = vrot.lane.b32.xlu1 %v1211_v42, %s3804_s27  ;;  %v1563_v42 = vmul.f32 %v4478_v15, %v6511_v55  ;;  %v6524_v55 = vld [vmem:[#allocation21_spill] sm:$0xff] }
 0x2e2   : > { %1261 = vrot.lane.b32.xlu0 %v1255_v31, %s3804_s27  ;;  %v549_v31 = vmul.f32 %v6512_v21, %v6508_v4  ;;  %v6525_v21 = vmov 0  }
 0x2e4   : > { %v560_v49 = vsel %vm410_vm3, %v549_v31, %v554_v36  ;;  %v6523_v36 = vmov 2  }
 0x2e5   : > { %v561_v17 = vsel %vm412_vm5, %v560_v49, %v558_v63 }
 0x2e6   : > { %v4495_v5 = vpop.permute.xlu1 %1598 }
 0x2e7   : > { %1609 = vrot.lane.b32.xlu2 %v1606_v8, %s3801_s24  ;;  %v1431_v8 = vmul.f32 %v6513_v12, %v4457_v24 }
 0x2e9   : > { %1393 = vrot.lane.b32.xlu1 %v1387_v58, %s3804_s27 }
 0x2ea   : > { %1389 = vrot.lane.b32.xlu0 %v1386_v28, %s3801_s24  ;;  %v1562_v28 = vmul.f32 %v4478_v15, %v6515_v2 }
 0x2eb   : > { %v611_v47 = vpop.permute.xlu2 %610 }
 0x2ee   : > { %v514_v62 = vpop.permute.xlu1 %513 }
 0x2ef   : > { %v517_v16 = vsel %vm412_vm5, %v516_v19, %v514_v62  ;;  %746 = vperm.xlu2 %3566, %v6510_v25   ;;  %v6521_v19 = vmov 7   ;;  %v6522_v62 = vmov 8  }
 0x2f0   : > { %v518_v46 = vmul.f32 0.33333334, %v517_v16 }
 0x2f1   : > { %1569 = vrot.lane.b32.xlu1 %v1563_v42, %s3804_s27  ;;  %v878_v42 = vmul.f32 %v6524_v55, %v4009_v39 }
 0x2f2   : > { %v548_v58 = vadd.f32 %v518_v46, %v468_v34  ;;  %1437 = vrot.lane.b32.xlu0 %v1431_v8, %s3804_s27 }
 0x2f4   : > { %v4532_v56 = vadd.f32 %v561_v17, %v548_v58 }
 0x2f6   : > { %v615_v34 = vpop.permute.xlu1 %614 }
 0x2f7   : > { %3569 = vset.pattern.permute.xlu2 %v6514_v50 }
 0x2f8   : > { %761 = vperm.xlu2 %3569, %v6510_v25  }
 0x2f9   : > { %741 = vperm.xlu1 %3565, %v6510_v25  }
 0x2fa   : > { %1565 = vrot.lane.b32.xlu0 %v1562_v28, %s3801_s24 }
 0x300   : > { %3571 = vset.pattern.permute.xlu2 %v6516_v33 }
 0x301   : > { %771 = vperm.xlu2 %3571, %v6510_v25   ;;  %3568 = vset.pattern.permute.xlu1 %v6518_v9 }
 0x302   : > { %756 = vperm.xlu1 %3568, %v6510_v25   ;;  %1613 = vrot.lane.b32.xlu0 %v1607_v44, %s3804_s27 }
 0x309   : > { %3575 = vset.pattern.permute.xlu2 %v6519_v57  ;;  %v619_v13 = vpop.permute.xlu2 %618 }
 0x30a   : > { %922 = vperm.xlu2 %3575, %v4360_v40   ;;  %3570 = vset.pattern.permute.xlu1 %v6520_v52 }
 0x30b   : > { %751 = vperm.xlu0 %3567, %v6510_v25   ;;  %766 = vperm.xlu1 %3570, %v6510_v25  }
 0x30c   : > { %v623_v4 = vpop.permute.xlu0 %622 }
 0x311   : > { %v631_v32 = vpop.permute.xlu2 %630 }
 0x312   : > { %3578 = vset.pattern.permute.xlu2 %v6514_v50 }
 0x313   : > { %3572 = vset.pattern.permute.xlu0 %v6521_v19  ;;  %937 = vperm.xlu2 %3578, %v4360_v40  }
 0x314   : > { %3573 = vset.pattern.permute.xlu1 %v6522_v62  ;;  %776 = vperm.xlu0 %3572, %v6510_v25   ;;  %v635_v7 = vpop.permute.xlu0 %634 }
 0x315   : > { %781 = vperm.xlu1 %3573, %v6510_v25   ;;  %v897_v25 = vsel %vm394_vm1, %v878_v42, %v4391_v1 }
 0x316   : > { %v898_v31 = vsel %vm396_vm2, %v897_v25, %v4408_v27 }
 0x317   : > { %v4575_v46 = vadd.f32 %v898_v31, %v4364_v60  ;;  %v568_v60 = vmul.f32 %v4372_v53, %v3997_v35 }
 0x319   : > { %v4558_v38 = vpop.permute.xlu2 %729  ;;  %v641_v49 = vsel %vm394_vm1, %v568_v60, %v611_v47  ;;  %v6527_v47 = vld [vmem:[#allocation22_spill] sm:$0xff] }
 0x31a   : > { %v642_v58 = vsel %vm396_vm2, %v641_v49, %v615_v34 }
 0x31b   : > { %3580 = vset.pattern.permute.xlu2 %v6516_v33  ;;  %v643_v17 = vsel %vm410_vm3, %v642_v58, %v619_v13  ;;  %v1054_v13 = vmul.f32 %v6527_v47, %v4015_v41  ;;  %v1048_v58 = vadd.f32 %v4404_v29, %v4575_v46 }
 0x31c   : > { %3576 = vset.pattern.permute.xlu0 %v6523_v36  ;;  %947 = vperm.xlu2 %3580, %v4360_v40   ;;  %v686_v16 = vpop.permute.xlu0 %685  ;;  %v644_v35 = vsel %vm459_vm4, %v643_v17, %v623_v4  ;;  %v6528_v4 = vld [vmem:[#allocation14_spill] sm:$0xff] }
 0x31d   : > { %3574 = vset.pattern.permute.xlu1 %v6525_v21  ;;  %927 = vperm.xlu0 %3576, %v4360_v40   ;;  %v681_v42 = vmul.f32 %v4294_v18, %v6528_v4  ;;  %v1073_v31 = vsel %vm394_vm1, %v1054_v13, %v4410_v20 }
 0x31e   : > { %917 = vperm.xlu1 %3574, %v4360_v40  }
 0x31f   : > { %v692_v60 = vsel %vm410_vm3, %v681_v42, %v686_v16 }
 0x321   : > { %v4572_v63 = vpop.permute.xlu2 %905 }
 0x324   : > { %3584 = vset.pattern.permute.xlu2 %v6519_v57  ;;  %v734_v12 = vpop.permute.xlu0 %733 }
 0x325   : > { %3581 = vset.pattern.permute.xlu0 %v6521_v19  ;;  %1098 = vperm.xlu2 %3584, %v4575_v46  }
 0x326   : > { %3577 = vset.pattern.permute.xlu1 %v6518_v9  ;;  %952 = vperm.xlu0 %3581, %v4360_v40  }
 0x327   : > { %932 = vperm.xlu1 %3577, %v4360_v40  }
 0x329   : > { %v4583_v1 = vpop.permute.xlu2 %1081 }
 0x32a   : > { %v627_v27 = vpop.permute.xlu1 %626 }
 0x32b   : > { %v645_v53 = vsel %vm461_vm6, %v644_v35, %v627_v27  ;;  %v1074_v27 = vsel %vm396_vm2, %v1073_v31, %v4427_v14 }
 0x32c   : > { %v4585_v8 = vpop.permute.xlu0 %861  ;;  %v646_v44 = vsel %vm412_vm5, %v645_v53, %v631_v32  ;;  %v4632_v53 = vadd.f32 %v1074_v27, %v1048_v58 }
 0x32d   : > { %3587 = vset.pattern.permute.xlu2 %v6514_v50  ;;  %v647_v25 = vsel %vm464_vm7, %v646_v44, %v635_v7  ;;  %v6532_v44 = vld [vmem:[#allocation23_spill] sm:$0xff] }
 0x32e   : > { %3585 = vset.pattern.permute.xlu0 %v6523_v36  ;;  %1113 = vperm.xlu2 %3587, %v4575_v46   ;;  %v1230_v13 = vmul.f32 %v6532_v44, %v4021_v43 }
 0x32f   : > { %3579 = vset.pattern.permute.xlu1 %v6520_v52  ;;  %1103 = vperm.xlu0 %3585, %v4575_v46  }
 0x330   : > { %942 = vperm.xlu1 %3579, %v4360_v40  }
 0x331   : > { %v4598_v2 = vpop.permute.xlu2 %1257 }
 0x332   : > { %6526 = vst [vmem:[#allocation17_spill] sm:$0xff] %v4598_v2 }
 0x333   : > { %v639_v28 = vpop.permute.xlu1 %638 }
 0x334   : > { %v4602_v26 = vpop.permute.xlu0 %909  ;;  %v648_v34 = vsel %vm466_vm8, %v647_v25, %v639_v28  ;;  %v1249_v25 = vsel %vm394_vm1, %v1230_v13, %v4438_v61 }
 0x335   : > { %v649_v20 = vadd.f32 %v648_v34, %v4532_v56  ;;  %v1250_v31 = vsel %vm396_vm2, %v1249_v25, %v4448_v22  ;;  %v1224_v34 = vadd.f32 %v4436_v30, %v4632_v53 }
 0x336   : > { %3589 = vset.pattern.permute.xlu2 %v6516_v33 }
 0x337   : > { %3590 = vset.pattern.permute.xlu0 %v6521_v19  ;;  %1123 = vperm.xlu2 %3589, %v4575_v46   ;;  %v4671_v27 = vadd.f32 %v1250_v31, %v1224_v34 }
 0x338   : > { %3582 = vset.pattern.permute.xlu1 %v6522_v62  ;;  %1128 = vperm.xlu0 %3590, %v4575_v46  }
 0x339   : > { %957 = vperm.xlu1 %3582, %v4360_v40   ;;  %v4616_v32 = vpop.permute.xlu2 %1433  ;;  %v725_v40 = vmul.f32 %v4181_v10, %v4294_v18 }
 0x33a   : > { %6529 = vst [vmem:[#allocation10_spill] sm:$0xff] %v4616_v32 }
 0x33b   : > { %v690_v49 = vpop.permute.xlu1 %689  ;;  %v736_v14 = vsel %vm410_vm3, %v725_v40, %v4558_v38 }
 0x33c   : > { %v693_v7 = vsel %vm412_vm5, %v692_v60, %v690_v49  ;;  %v4627_v17 = vpop.permute.xlu0 %1037  ;;  %v737_v28 = vsel %vm412_vm5, %v736_v14, %v734_v12  ;;  %v6534_v49 = vld [vmem:[#allocation24_spill] sm:$0xff] }
 0x33d   : > { %v694_v35 = vmul.f32 0.33333334, %v693_v7  ;;  %v1406_v58 = vmul.f32 %v6534_v49, %v4027_v45 }
 0x33f   : > { %v724_v16 = vadd.f32 %v694_v35, %v649_v20  ;;  %3593 = vset.pattern.permute.xlu2 %v6519_v57  ;;  %v1425_v7 = vsel %vm394_vm1, %v1406_v58, %v4463_v54  ;;  %v1400_v20 = vadd.f32 %v4457_v24, %v4671_v27 }
 0x340   : > { %3594 = vset.pattern.permute.xlu0 %v6523_v36  ;;  %1274 = vperm.xlu2 %3593, %v4632_v53   ;;  %v1426_v40 = vsel %vm396_vm2, %v1425_v7, %v4469_v11 }
 0x341   : > { %3583 = vset.pattern.permute.xlu1 %v6525_v21  ;;  %1279 = vperm.xlu0 %3594, %v4632_v53   ;;  %v4642_v10 = vpop.permute.xlu2 %1609  ;;  %v4644_v18 = vadd.f32 %v737_v28, %v724_v16  ;;  %v4691_v35 = vadd.f32 %v1426_v40, %v1400_v20 }
 0x342   : > { %6530 = vst [vmem:[#allocation30_spill] sm:$0xff] %v4642_v10  ;;  %1093 = vperm.xlu1 %3583, %v4575_v46  }
 0x343   : > { %v4647_v56 = vpop.permute.xlu1 %865 }
 0x344   : > { %v4649_v38 = vpop.permute.xlu0 %1085 }
 0x345   : > { %6531 = vst [vmem:[#allocation9_spill] sm:$0xff] %v4649_v38 }
 0x348   : > { %3596 = vset.pattern.permute.xlu2 %v6514_v50 }
 0x349   : > { %3599 = vset.pattern.permute.xlu0 %v6521_v19  ;;  %1289 = vperm.xlu2 %3596, %v4632_v53   ;;  %v4654_v12 = vpop.permute.xlu2 %746 }
 0x34a   : > { %3586 = vset.pattern.permute.xlu1 %v6518_v9  ;;  %1304 = vperm.xlu0 %3599, %v4632_v53  }
 0x34b   : > { %1108 = vperm.xlu1 %3586, %v4575_v46   ;;  %v4661_v4 = vpop.permute.xlu1 %1041 }
 0x34c   : > { %v4663_v42 = vpop.permute.xlu0 %1213 }
 0x34d   : > { %6533 = vst [vmem:[#allocation13_spill] sm:$0xff] %v4663_v42 }
 0x351   : > { %3598 = vset.pattern.permute.xlu2 %v6516_v33 }
 0x352   : > { %3603 = vset.pattern.permute.xlu0 %v6523_v36  ;;  %1299 = vperm.xlu2 %3598, %v4632_v53   ;;  %v762_v60 = vpop.permute.xlu2 %761 }
 0x353   : > { %3588 = vset.pattern.permute.xlu1 %v6520_v52  ;;  %1455 = vperm.xlu0 %3603, %v4671_v27   ;;  %v4680_v61 = vpop.permute.xlu1 %1217  ;;  %v764_v34 = vmul.f32 %v762_v60, %v4003_v37 }
 0x354   : > { %6535 = vst [vmem:[#allocation28_spill] sm:$0xff] %v4680_v61  ;;  %1118 = vperm.xlu1 %3588, %v4575_v46   ;;  %v4683_v22 = vpop.permute.xlu0 %1261 }
 0x355   : > { %6536 = vst [vmem:[#allocation12_spill] sm:$0xff] %v4683_v22 }
 0x35a   : > { %3602 = vset.pattern.permute.xlu2 %v6519_v57 }
 0x35b   : > { %1631 = vperm.xlu0 %3603, %v4691_v35   ;;  %1450 = vperm.xlu2 %3602, %v4671_v27   ;;  %v4696_v14 = vpop.permute.xlu2 %771  ;;  %v4698_v16 = vpop.permute.xlu1 %1393 }
 0x35c   : > { %6537 = vst [vmem:[#allocation29_spill] sm:$0xff] %v4698_v16  ;;  %3591 = vset.pattern.permute.xlu1 %v6522_v62  ;;  %v4701_v54 = vpop.permute.xlu0 %1389 }
 0x35d   : > { %6538 = vst [vmem:[#allocation16_spill] sm:$0xff] %v4701_v54  ;;  %1133 = vperm.xlu1 %3591, %v4575_v46  }
 0x363   : > { %3611 = vset.pattern.permute.xlu0 %v6521_v19  ;;  %3605 = vset.pattern.permute.xlu2 %v6514_v50  ;;  %v4706_v11 = vpop.permute.xlu1 %1569 }
 0x364   : > { %6539 = vst [vmem:[#allocation6_spill] sm:$0xff] %v4706_v11  ;;  %1480 = vperm.xlu0 %3611, %v4671_v27   ;;  %1465 = vperm.xlu2 %3605, %v4671_v27   ;;  %v4710_v28 = vpop.permute.xlu2 %922  ;;  %v4712_v13 = vpop.permute.xlu0 %1437 }
 0x365   : > { %6540 = vst [vmem:[#allocation26_spill] sm:$0xff] %v4712_v13  ;;  %3592 = vset.pattern.permute.xlu1 %v6525_v21 }
 0x366   : > { %1269 = vperm.xlu1 %3592, %v4632_v53  }
 0x36b   : > { %v4716_v25 = vpop.permute.xlu1 %741 }
 0x36c   : > { %1656 = vperm.xlu0 %3611, %v4691_v35   ;;  %3607 = vset.pattern.permute.xlu2 %v6516_v33  ;;  %v4720_v46 = vpop.permute.xlu0 %1565 }
 0x36d   : > { %6541 = vst [vmem:[#allocation19_spill] sm:$0xff] %v4720_v46  ;;  %1475 = vperm.xlu2 %3607, %v4671_v27   ;;  %v938_v31 = vpop.permute.xlu2 %937 }
 0x36e   : > { %3595 = vset.pattern.permute.xlu1 %v6518_v9  ;;  %v940_v46 = vmul.f32 %v938_v31, %v4009_v39 }
 0x36f   : > { %1284 = vperm.xlu1 %3595, %v4632_v53  }
 0x374   : > { %798 = vrot.lane.b32.xlu0 %v764_v34, %s3810_s25  ;;  %v757_v58 = vpop.permute.xlu1 %756  ;;  %v4727_v7 = vpop.permute.xlu0 %1613 }
 0x375   : > { %6542 = vst [vmem:[#allocation27_spill] sm:$0xff] %v4727_v7  ;;  %3610 = vset.pattern.permute.xlu2 %v6519_v57  ;;  %3617 = vset.pattern.permute.xlu0 %v6525_v21 }
 0x376   : > { %1626 = vperm.xlu2 %3610, %v4691_v35   ;;  %v4732_v40 = vpop.permute.xlu2 %947 }
 0x377   : > { %3597 = vset.pattern.permute.xlu1 %v6520_v52 }
 0x378   : > { %1294 = vperm.xlu1 %3597, %v4632_v53  }
 0x37d   : > { %v4736_v20 = vpop.permute.xlu0 %751  ;;  %v4738_v60 = vpop.permute.xlu1 %766 }
 0x37e   : > { %3613 = vset.pattern.permute.xlu2 %v6514_v50 }
 0x37f   : > { %1641 = vperm.xlu2 %3613, %v4691_v35   ;;  %v4742_v34 = vpop.permute.xlu2 %1098 }
 0x380   : > { %3600 = vset.pattern.permute.xlu1 %v6522_v62 }
 0x381   : > { %1309 = vperm.xlu1 %3600, %v4632_v53  }
 0x386   : > { %v777_v7 = vpop.permute.xlu0 %776 }
 0x387   : > { %v779_v10 = vmul.f32 %v777_v7, %v4003_v37  ;;  %v4747_v11 = vpop.permute.xlu1 %781  ;;  %3615 = vset.pattern.permute.xlu2 %v6516_v33  ;;  %v6543_v7 = vld [vmem:[#allocation5_spill] sm:$0xff] }
 0x388   : > { %1651 = vperm.xlu2 %3615, %v4691_v35   ;;  %v1114_v13 = vpop.permute.xlu2 %1113 }
 0x389   : > { %3601 = vset.pattern.permute.xlu1 %v6525_v21  ;;  %810 = vrot.lane.b32.xlu0 %v779_v10, %s3811_s26  ;;  %v749_v10 = vmul.f32 %v4654_v12, %v4003_v37  ;;  %v1116_v12 = vmul.f32 %v1114_v13, %v4015_v41 }
 0x38a   : > { %1445 = vperm.xlu1 %3601, %v4671_v27  }
 0x38f   : > { %v4755_v32 = vpop.permute.xlu0 %927 }
 0x390   : > { %v4757_v53 = vpop.permute.xlu1 %917  ;;  %1706 = vrot.lane.b32.xlu2 %v6543_v7, %s3817_s29  ;;  %s3821_s29 = smov 107  }
 0x391   : > { %974 = vrot.lane.b32.xlu0 %v940_v46, %s3810_s25  ;;  %v4761_v23 = vpop.permute.xlu2 %1123  ;;  %3619 = vset.pattern.permute.xlu2 %v6523_v36  ;;  %v759_v46 = vmul.f32 %v757_v58, %v4003_v37 }
 0x392   : > { %3604 = vset.pattern.permute.xlu1 %v6518_v9 }
 0x393   : > { %1460 = vperm.xlu1 %3604, %v4671_v27  }
 0x398   : > { %v953_v31 = vpop.permute.xlu0 %952  ;;  %786 = vrot.lane.b32.xlu2 %v749_v10, %s3797_s17 }
 0x399   : > { %v955_v49 = vmul.f32 %v953_v31, %v4009_v39  ;;  %v933_v16 = vpop.permute.xlu1 %932 }
 0x39a   : > { %v4770_v22 = vpop.permute.xlu2 %1274  ;;  %v935_v24 = vmul.f32 %v933_v16, %v4009_v39 }
 0x39b   : > { %3606 = vset.pattern.permute.xlu1 %v6520_v52  ;;  %986 = vrot.lane.b32.xlu0 %v955_v49, %s3811_s26  ;;  %v774_v49 = vmul.f32 %v4696_v14, %v4003_v37 }
 0x39c   : > { %1470 = vperm.xlu1 %3606, %v4671_v27  }
 0x3a0   : > { %794 = vrot.lane.b32.xlu2 %v759_v46, %s3801_s24 }
 0x3a1   : > { %v4778_v54 = vpop.permute.xlu0 %1103 }
 0x3a2   : > { %v4780_v10 = vpop.permute.xlu1 %942 }
 0x3a3   : > { %1150 = vrot.lane.b32.xlu0 %v1116_v12, %s3810_s25  ;;  %v1290_v31 = vpop.permute.xlu2 %1289  ;;  %v925_v12 = vmul.f32 %v4710_v28, %v4009_v39 }
 0x3a4   : > { %3608 = vset.pattern.permute.xlu1 %v6522_v62 }
 0x3a5   : > { %1485 = vperm.xlu1 %3608, %v4671_v27   ;;  %v1292_v27 = vmul.f32 %v1290_v31, %v4021_v43 }
 0x3a8   : > { %806 = vrot.lane.b32.xlu2 %v774_v49, %s3804_s27 }
 0x3aa   : > { %v1129_v58 = vpop.permute.xlu0 %1128 }
 0x3ab   : > { %v1131_v46 = vmul.f32 %v1129_v58, %v4015_v41  ;;  %v4789_v13 = vpop.permute.xlu1 %957 }
 0x3ac   : > { %v4791_v2 = vpop.permute.xlu2 %1299 }
 0x3ad   : > { %3609 = vset.pattern.permute.xlu1 %v6525_v21  ;;  %1162 = vrot.lane.b32.xlu0 %v1131_v46, %s3811_s26 }
 0x3ae   : > { %1621 = vperm.xlu1 %3609, %v4691_v35  }
 0x3b0   : > { %962 = vrot.lane.b32.xlu2 %v925_v12, %s3797_s17  ;;  %v950_v12 = vmul.f32 %v4732_v40, %v4009_v39 }
 0x3b3   : > { %v4800_v14 = vpop.permute.xlu0 %1279 }
 0x3b4   : > { %v4802_v49 = vpop.permute.xlu1 %1093 }
 0x3b5   : > { %1326 = vrot.lane.b32.xlu0 %v1292_v27, %s3810_s25  ;;  %v4805_v58 = vpop.permute.xlu2 %1450 }
 0x3b6   : > { %3612 = vset.pattern.permute.xlu1 %v6518_v9 }
 0x3b7   : > { %1636 = vperm.xlu1 %3612, %v4691_v35  }
 0x3b8   : > { %970 = vrot.lane.b32.xlu2 %v935_v24, %s3801_s24  ;;  %v1101_v24 = vmul.f32 %v4742_v34, %v4015_v41  ;;  %v1126_v34 = vmul.f32 %v4761_v23, %v4015_v41  ;;  %v784_v23 = vmul.f32 %v4747_v11, %v4003_v37 }
 0x3bc   : > { %v1305_v28 = vpop.permute.xlu0 %1304 }
 0x3bd   : > { %v1307_v46 = vmul.f32 %v1305_v28, %v4021_v43  ;;  %v1109_v31 = vpop.permute.xlu1 %1108 }
 0x3be   : > { %v1466_v6 = vpop.permute.xlu2 %1465 }
 0x3bf   : > { %3614 = vset.pattern.permute.xlu1 %v6520_v52  ;;  %1338 = vrot.lane.b32.xlu0 %v1307_v46, %s3811_s26  ;;  %v1468_v16 = vmul.f32 %v1466_v6, %v4027_v45  ;;  %v754_v6 = vmul.f32 %v4736_v20, %v4003_v37 }
 0x3c0   : > { %1646 = vperm.xlu1 %3614, %v4691_v35   ;;  %982 = vrot.lane.b32.xlu2 %v950_v12, %s3804_s27  ;;  %v1111_v12 = vmul.f32 %v1109_v31, %v4015_v41 }
 0x3c5   : > { %v4819_v27 = vpop.permute.xlu0 %1455 }
 0x3c6   : > { %v1119_v28 = vpop.permute.xlu1 %1118 }
 0x3c7   : > { %1502 = vrot.lane.b32.xlu0 %v1468_v16, %s3810_s25  ;;  %v1476_v40 = vpop.permute.xlu2 %1475 }
 0x3c8   : > { %3616 = vset.pattern.permute.xlu1 %v6522_v62  ;;  %1138 = vrot.lane.b32.xlu2 %v1101_v24, %s3797_s17  ;;  %v769_v24 = vmul.f32 %v4738_v60, %v4003_v37 }
 0x3c9   : > { %1661 = vperm.xlu1 %3616, %v4691_v35  }
 0x3cd   : > { %v4827_v46 = vpop.permute.xlu0 %1631 }
 0x3cf   : > { %v1134_v44 = vpop.permute.xlu1 %1133 }
 0x3d0   : > { %v1627_v61 = vpop.permute.xlu2 %1626  ;;  %1146 = vrot.lane.b32.xlu2 %v1111_v12, %s3801_s24  ;;  %v1277_v12 = vmul.f32 %v4770_v22, %v4021_v43 }
 0x3d1   : > { %790 = vrot.lane.b32.xlu1 %v754_v6, %s3798_s21 }
 0x3d2   : > { %3618 = vset.pattern.permute.xlu1 %v6519_v57 }
 0x3d6   : > { %v1481_v16 = vpop.permute.xlu0 %1480 }
 0x3d7   : > { %v1483_v31 = vmul.f32 %v1481_v16, %v4027_v45 }
 0x3d8   : > { %v4840_v42 = vpop.permute.xlu1 %1269  ;;  %1158 = vrot.lane.b32.xlu2 %v1126_v34, %s3804_s27 }
 0x3d9   : > { %802 = vrot.lane.b32.xlu1 %v769_v24, %s3800_s23  ;;  %1514 = vrot.lane.b32.xlu0 %v1483_v31, %s3811_s26  ;;  %v1642_v20 = vpop.permute.xlu2 %1641  ;;  %v930_v31 = vmul.f32 %v4755_v32, %v4009_v39 }
 0x3da   : > { %v1644_v6 = vmul.f32 %v1642_v20, %v4035_v48 }
 0x3de   : > { %v1657_v16 = vpop.permute.xlu0 %1656 }
 0x3df   : > { %v1659_v22 = vmul.f32 %v1657_v16, %v4035_v48  ;;  %v1453_v16 = vmul.f32 %v4805_v58, %v4027_v45 }
 0x3e0   : > { %1314 = vrot.lane.b32.xlu2 %v1277_v12, %s3797_s17  ;;  %v1302_v12 = vmul.f32 %v4791_v2, %v4021_v43  ;;  %v960_v2 = vmul.f32 %v4789_v13, %v4009_v39  ;;  %v1121_v13 = vmul.f32 %v1119_v28, %v4015_v41  ;;  %v1282_v28 = vmul.f32 %v4800_v14, %v4021_v43 }
 0x3e1   : > { %v1285_v60 = vpop.permute.xlu1 %1284  ;;  %814 = vrot.lane.b32.xlu1 %v784_v23, %s6500_s28  ;;  %1678 = vrot.lane.b32.xlu0 %v1644_v6, %s3810_s25  ;;  %v945_v23 = vmul.f32 %v4780_v10, %v4009_v39 }
 0x3e2   : > { %v1652_v34 = vpop.permute.xlu2 %1651  ;;  %v1287_v24 = vmul.f32 %v1285_v60, %v4021_v43 }
 0x3e8   : > { %1322 = vrot.lane.b32.xlu2 %v1287_v24, %s3801_s24 }
 0x3e9   : > { %966 = vrot.lane.b32.xlu1 %v930_v31, %s3798_s21  ;;  %1690 = vrot.lane.b32.xlu0 %v1659_v22, %s3811_s26  ;;  %v1106_v31 = vmul.f32 %v4778_v54, %v4015_v41 }
 0x3ea   : > { %v1295_v11 = vpop.permute.xlu1 %1294  ;;  %v1707_v20 = vpop.permute.xlu2 %1706 }
 0x3eb   : > { %v4865_v6 = vsel %vm368_vm0, 0.06666667, %v1707_v20 }
 0x3f0   : > { %1334 = vrot.lane.b32.xlu2 %v1302_v12, %s3804_s27 }
 0x3f1   : > { %978 = vrot.lane.b32.xlu1 %v945_v23, %s3800_s23  ;;  %1712 = vperm.xlu0 %3617, %v4865_v6   ;;  %v1478_v23 = vmul.f32 %v1476_v40, %v4027_v45 }
 0x3f2   : > { %v787_v32 = vpop.permute.xlu2 %786 }
 0x3f3   : > { %v1310_v60 = vpop.permute.xlu1 %1309 }
 0x3f8   : > { %1490 = vrot.lane.b32.xlu2 %v1453_v16, %s3797_s17 }
 0x3f9   : > { %990 = vrot.lane.b32.xlu1 %v960_v2, %s6500_s28  ;;  %3621 = vset.pattern.permute.xlu0 %v6519_v57  ;;  %v1136_v2 = vmul.f32 %v1134_v44, %v4015_v41  ;;  %v1297_v44 = vmul.f32 %v1295_v11, %v4021_v43  ;;  %v1654_v11 = vmul.f32 %v1652_v34, %v4035_v48 }
 0x3fa   : > { %v795_v10 = vpop.permute.xlu2 %794 }
 0x3fc   : > { %v4877_v24 = vpop.permute.xlu1 %1445 }
 0x3fd   : > { %6544 = vst [vmem:[#allocation21_spill] sm:$0xff] %v4877_v24  ;;  %v6546_v24 = vld [vmem:[#allocation15_spill] sm:$0xff] }
 0x401   : > { %1142 = vrot.lane.b32.xlu1 %v1106_v31, %s3798_s21  ;;  %v1629_v31 = vmul.f32 %v1627_v61, %v4035_v48  ;;  %v1312_v61 = vmul.f32 %v1310_v60, %v4021_v43 }
 0x402   : > { %v807_v22 = vpop.permute.xlu2 %806 }
 0x405   : > { %v1461_v20 = vpop.permute.xlu1 %1460 }
 0x406   : > { %v1463_v58 = vmul.f32 %v1461_v20, %v4027_v45 }
 0x408   : > { %1498 = vrot.lane.b32.xlu2 %v1463_v58, %s3801_s24 }
 0x409   : > { %1154 = vrot.lane.b32.xlu1 %v1121_v13, %s3800_s23 }
 0x40a   : > { %v4886_v12 = vpop.permute.xlu2 %962 }
 0x40e   : > { %v1471_v16 = vpop.permute.xlu1 %1470 }
 0x40f   : > { %v1473_v60 = vmul.f32 %v1471_v16, %v4027_v45 }
 0x410   : > { %1510 = vrot.lane.b32.xlu2 %v1478_v23, %s3804_s27 }
 0x411   : > { %1166 = vrot.lane.b32.xlu1 %v1136_v2, %s6500_s28  ;;  %v1458_v2 = vmul.f32 %v4819_v27, %v4027_v45 }
 0x412   : > { %v4892_v54 = vpop.permute.xlu2 %970 }
 0x417   : > { %v1486_v20 = vpop.permute.xlu1 %1485 }
 0x418   : > { %1666 = vrot.lane.b32.xlu2 %v1629_v31, %s3797_s17  ;;  %v1488_v27 = vmul.f32 %v1486_v20, %v4027_v45  ;;  %v799_v20 = vpop.permute.xlu0 %798 }
 0x419   : > { %1318 = vrot.lane.b32.xlu1 %v1282_v28, %s3798_s21 }
 0x41a   : > { %v4899_v40 = vpop.permute.xlu2 %982 }
 0x420   : > { %v4902_v58 = vpop.permute.xlu1 %1621 }
 0x421   : > { %6545 = vst [vmem:[#allocation22_spill] sm:$0xff] %v4902_v58  ;;  %1330 = vrot.lane.b32.xlu1 %v1297_v44, %s3800_s23 }
 0x422   : > { %v4905_v13 = vpop.permute.xlu2 %1138 }
 0x429   : > { %v1637_v23 = vpop.permute.xlu1 %1636  ;;  %1342 = vrot.lane.b32.xlu1 %v1312_v61, %s6500_s28 }
 0x42a   : > { %v1639_v14 = vmul.f32 %v1637_v23, %v4035_v48  ;;  %v4913_v31 = vpop.permute.xlu2 %1146  ;;  %v744_v23 = vmul.f32 %v4716_v25, %v4003_v37 }
 0x42c   : > { %1674 = vrot.lane.b32.xlu2 %v1639_v14, %s3801_s24  ;;  %v817_v16 = vsel %vm394_vm1, %v744_v23, %v787_v32  ;;  %v857_v32 = vmul.f32 %v4358_v0, %v6546_v24  ;;  %v901_v24 = vmul.f32 %v6524_v55, %v4358_v0 }
 0x431   : > { %1494 = vrot.lane.b32.xlu1 %v1458_v2, %s3798_s21 }
 0x432   : > { %v1647_v28 = vpop.permute.xlu1 %1646  ;;  %v4920_v44 = vpop.permute.xlu2 %1158 }
 0x433   : > { %v1649_v23 = vmul.f32 %v1647_v28, %v4035_v48 }
 0x434   : > { %1686 = vrot.lane.b32.xlu2 %v1654_v11, %s3804_s27  ;;  %v1634_v11 = vmul.f32 %v4827_v46, %v4035_v48  ;;  %v868_v46 = vsel %vm410_vm3, %v857_v32, %v4585_v8  ;;  %v912_v8 = vsel %vm410_vm3, %v901_v24, %v4572_v63 }
 0x439   : > { %1506 = vrot.lane.b32.xlu1 %v1473_v60, %s3800_s23 }
 0x43a   : > { %v4927_v14 = vpop.permute.xlu2 %1314 }
 0x43b   : > { %v1662_v61 = vpop.permute.xlu1 %1661 }
 0x43c   : > { %1722 = vperm.xlu2 %3619, %v4865_v6  }
 0x441   : > { %1518 = vrot.lane.b32.xlu1 %v1488_v27, %s6500_s28 }
 0x442   : > { %v4938_v58 = vpop.permute.xlu2 %1322 }
 0x443   : > { %v791_v34 = vpop.permute.xlu1 %790 }
 0x444   : > { %3620 = vset.pattern.permute.xlu2 %v6525_v21  ;;  %v818_v2 = vsel %vm396_vm2, %v817_v16, %v791_v34  ;;  %v811_v16 = vpop.permute.xlu0 %810 }
 0x445   : > { %v819_v60 = vsel %vm410_vm3, %v818_v2, %v795_v10  ;;  %v869_v10 = vsel %vm412_vm5, %v868_v46, %v4647_v56  ;;  %v913_v56 = vsel %vm412_vm5, %v912_v8, %v4602_v26 }
 0x446   : > { %v820_v37 = vsel %vm459_vm4, %v819_v60, %v799_v20  ;;  %v870_v28 = vmul.f32 0.33333334, %v869_v10  ;;  %v1664_v20 = vmul.f32 %v1662_v61, %v4035_v48 }
 0x449   : > { %1670 = vrot.lane.b32.xlu1 %v1634_v11, %s3798_s21 }
 0x44b   : > { %v803_v27 = vpop.permute.xlu1 %802 }
 0x44c   : > { %v821_v25 = vsel %vm461_vm6, %v820_v37, %v803_v27  ;;  %v4959_v37 = vpop.permute.xlu2 %1334 }
 0x44d   : > { %v822_v34 = vsel %vm412_vm5, %v821_v25, %v807_v22  ;;  %6547 = vst [vmem:[#allocation14_spill] sm:$0xff] %v4959_v37 }
 0x44e   : > { %v823_v11 = vsel %vm464_vm7, %v822_v34, %v811_v16 }
 0x451   : > { %1682 = vrot.lane.b32.xlu1 %v1649_v23, %s3800_s23 }
 0x453   : > { %v815_v2 = vpop.permute.xlu1 %814 }
 0x454   : > { %v824_v60 = vsel %vm466_vm8, %v823_v11, %v815_v2  ;;  %v4967_v0 = vpop.permute.xlu2 %1490 }
 0x455   : > { %v825_v22 = vadd.f32 %v824_v60, %v4644_v18  ;;  %6548 = vst [vmem:[#allocation5_spill] sm:$0xff] %v4967_v0 }
 0x457   : > { %v900_v27 = vadd.f32 %v870_v28, %v825_v22  ;;  %v6557_v22 = vld [vmem:[#allocation11_spill] sm:$0xff] }
 0x458   : > { %v5000_v8 = vadd.f32 %v4035_v48, %v6557_v22 }
 0x459   : > { %1694 = vrot.lane.b32.xlu1 %v1664_v20, %s6500_s28  ;;  %v4962_v25 = vadd.f32 %v913_v56, %v900_v27 }
 0x45b   : > { %v4964_v32 = vpop.permute.xlu1 %966 }
 0x461   : > { %1717 = vperm.xlu1 %3618, %v4865_v6  }
 0x462   : > { %v4972_v63 = vpop.permute.xlu2 %1498 }
 0x463   : > { %v4969_v55 = vpop.permute.xlu1 %978  ;;  %6549 = vst [vmem:[#allocation15_spill] sm:$0xff] %v4972_v63 }
 0x469   : > { %3622 = vset.pattern.permute.xlu1 %v6523_v36 }
 0x46a   : > { %v4978_v61 = vpop.permute.xlu2 %1510 }
 0x46b   : > { %v4974_v18 = vpop.permute.xlu1 %990  ;;  %6550 = vst [vmem:[#allocation33_spill] sm:$0xff] %v4978_v61 }
 0x472   : > { %v4982_v34 = vpop.permute.xlu2 %1666 }
 0x473   : > { %v4976_v26 = vpop.permute.xlu1 %1142  ;;  %6551 = vst [vmem:[#allocation34_spill] sm:$0xff] %v4982_v34  ;;  %v5018_v34 = vpop.permute.xlu0 %974 }
 0x47b   : > { %v4980_v23 = vpop.permute.xlu1 %1154 }
 0x483   : > { %v4984_v46 = vpop.permute.xlu1 %1166 }
 0x484   : > { %6552 = vst [vmem:[#allocation35_spill] sm:$0xff] %v4984_v46 }
 0x486   : > { %v4986_v10 = vpop.permute.xlu2 %1674 }
 0x487   : > { %6553 = vst [vmem:[#allocation36_spill] sm:$0xff] %v4986_v10 }
 0x48b   : > { %v4988_v16 = vpop.permute.xlu1 %1318 }
 0x48e   : > { %v4990_v2 = vpop.permute.xlu2 %1686 }
 0x48f   : > { %6554 = vst [vmem:[#allocation37_spill] sm:$0xff] %v4990_v2 }
 0x493   : > { %v4992_v11 = vpop.permute.xlu1 %1330 }
 0x494   : > { %6555 = vst [vmem:[#allocation38_spill] sm:$0xff] %v4992_v11 }
 0x496   : > { %v1723_v60 = vpop.permute.xlu2 %1722 }
 0x497   : > { %v1725_v24 = vmul.f32 %v1723_v60, %v4865_v6 }
 0x499   : > { %1731 = vrot.lane.b32.xlu2 %v1725_v24, %s3798_s21 }
 0x49b   : > { %v4996_v28 = vpop.permute.xlu1 %1342 }
 0x49c   : > { %6556 = vst [vmem:[#allocation39_spill] sm:$0xff] %v4996_v28  ;;  %v5020_v28 = vpop.permute.xlu0 %986 }
 0x4a1   : > { %1755 = vperm.xlu2 %3620, %v5000_v8  }
 0x4a3   : > { %v5003_v20 = vpop.permute.xlu1 %1494 }
 0x4a4   : > { %6558 = vst [vmem:[#allocation11_spill] sm:$0xff] %v5003_v20  ;;  %v5022_v63 = vpop.permute.xlu0 %1150 }
 0x4a9   : > { %3624 = vset.pattern.permute.xlu2 %v6519_v57 }
 0x4ab   : > { %v5006_v27 = vpop.permute.xlu1 %1506 }
 0x4ac   : > { %6559 = vst [vmem:[#allocation40_spill] sm:$0xff] %v5006_v27  ;;  %v5024_v27 = vpop.permute.xlu0 %1162 }
 0x4b3   : > { %v5008_v56 = vpop.permute.xlu1 %1518 }
 0x4b4   : > { %6560 = vst [vmem:[#allocation41_spill] sm:$0xff] %v5008_v56  ;;  %v5026_v56 = vpop.permute.xlu0 %1326 }
 0x4b5   : > { %6564 = vst [vmem:[#allocation45_spill] sm:$0xff] %v5026_v56 }
 0x4bb   : > { %v5010_v2 = vpop.permute.xlu1 %1670 }
 0x4bc   : > { %6561 = vst [vmem:[#allocation42_spill] sm:$0xff] %v5010_v2  ;;  %v5028_v2 = vpop.permute.xlu0 %1338 }
 0x4bd   : > { %6565 = vst [vmem:[#allocation46_spill] sm:$0xff] %v5028_v2 }
 0x4c3   : > { %v5012_v10 = vpop.permute.xlu1 %1682 }
 0x4c4   : > { %6562 = vst [vmem:[#allocation43_spill] sm:$0xff] %v5012_v10  ;;  %v5030_v10 = vpop.permute.xlu0 %1502 }
 0x4c5   : > { %6566 = vst [vmem:[#allocation47_spill] sm:$0xff] %v5030_v10 }
 0x4cb   : > { %v5014_v24 = vpop.permute.xlu1 %1694 }
 0x4cc   : > { %6563 = vst [vmem:[#allocation44_spill] sm:$0xff] %v5014_v24  ;;  %v5032_v24 = vpop.permute.xlu0 %1514 }
 0x4cd   : > { %6567 = vst [vmem:[#allocation48_spill] sm:$0xff] %v5032_v24 }
 0x4d3   : > { %v1718_v61 = vpop.permute.xlu1 %1717 }
 0x4d4   : > { %v1720_v22 = vmul.f32 %v1718_v61, %v4865_v6  ;;  %v5034_v20 = vpop.permute.xlu0 %1678 }
 0x4d5   : > { %6568 = vst [vmem:[#allocation49_spill] sm:$0xff] %v5034_v20 }
 0x4d6   : > { %1727 = vrot.lane.b32.xlu1 %v1720_v22, %s3797_s17 }
 0x4dc   : > { %v5036_v37 = vpop.permute.xlu0 %1690 }
 0x4dd   : > { %6569 = vst [vmem:[#allocation50_spill] sm:$0xff] %v5036_v37 }
 0x4e4   : > { %v5038_v22 = vpop.permute.xlu0 %1712 }
 0x4e5   : > { %6570 = vst [vmem:[#allocation51_spill] sm:$0xff] %v5038_v22  ;;  %v1715_v0 = vmul.f32 %v5038_v22, %v4865_v6 }
 0x4f3   : > { %v1732_v45 = vpop.permute.xlu2 %1731 }
 0x548   : > { %v1728_v11 = vpop.permute.xlu1 %1727 }
 0x549   : > { %v1734_v46 = vsel %vm394_vm1, %v1715_v0, %v1728_v11 }
 0x54a   : > { %v1735_v56 = vsel %vm396_vm2, %v1734_v46, %v1732_v45 }
 0x54b   : > { %v5044_v2 = vmul.f32 0.5, %v1735_v56  ;;  %v6573_v56 = vld [vmem:[#allocation25_spill] sm:$0xff] }
 0x54d   : > { %v1739_v10 = vmul.f32 %v5044_v2, %v1723_v60  ;;  %v1738_v24 = vmul.f32 %v5044_v2, %v1718_v61 }
 0x54f   : > { %1745 = vrot.lane.b32.xlu1 %v1739_v10, %s3804_s27  ;;  %1741 = vrot.lane.b32.xlu0 %v1738_v24, %s3801_s24  ;;  %v1582_v24 = vmul.f32 %v6573_v56, %v4035_v48 }
 0x551   : > { %v1601_v37 = vsel %vm394_vm1, %v1582_v24, %v4491_v3  ;;  %v5094_v3 = vpop.permute.xlu2 %1755 }
 0x557   : > { %1765 = vperm.xlu1 %3622, %v5000_v8   ;;  %1760 = vperm.xlu0 %3621, %v5000_v8  }
 0x55f   : > { %3623 = vset.pattern.permute.xlu1 %v6525_v21  ;;  %3625 = vset.pattern.permute.xlu0 %v6523_v36 }
 0x5c1   : > { %v5054_v0 = vpop.permute.xlu1 %1745  ;;  %v5056_v45 = vpop.permute.xlu0 %1741 }
 0x5c2   : > { %6571 = vst [vmem:[#allocation52_spill] sm:$0xff] %v5054_v0  ;;  %v1602_v0 = vsel %vm396_vm2, %v1601_v37, %v4495_v5 }
 0x5c3   : > { %6572 = vst [vmem:[#allocation53_spill] sm:$0xff] %v5056_v45 }
 0x5c9   : > { %v1766_v46 = vpop.permute.xlu1 %1765  ;;  %v1761_v11 = vpop.permute.xlu0 %1760 }
 0x5ca   : > { %v1768_v61 = vmul.f32 %v1766_v46, %v4865_v6  ;;  %v1783_v10 = vmul.f32 %v1766_v46, %v5044_v2  ;;  %v1763_v60 = vmul.f32 %v1761_v11, %v4865_v6  ;;  %v1576_v46 = vadd.f32 %v4478_v15, %v4691_v35 }
 0x5cb   : > { %v1782_v22 = vmul.f32 %v1761_v11, %v5044_v2 }
 0x5cc   : > { %1774 = vrot.lane.b32.xlu1 %v1768_v61, %s3798_s21  ;;  %1789 = vrot.lane.b32.xlu0 %v1783_v10, %s3804_s27  ;;  %v5072_v45 = vadd.f32 %v1602_v0, %v1576_v46 }
 0x5cd   : > { %1770 = vrot.lane.b32.xlu2 %v1763_v60, %s3797_s17 }
 0x5d4   : > { %1797 = vperm.xlu1 %3623, %v5072_v45   ;;  %1807 = vperm.xlu0 %3625, %v5072_v45  }
 0x5d5   : > { %1785 = vrot.lane.b32.xlu2 %v1782_v22, %s3801_s24 }
 0x5dc   : > { %3626 = vset.pattern.permute.xlu1 %v6518_v9  ;;  %3630 = vset.pattern.permute.xlu0 %v6521_v19 }
 0x5dd   : > { %1802 = vperm.xlu2 %3624, %v5072_v45   ;;  %1812 = vperm.xlu1 %3626, %v5072_v45  }
 0x5de   : > { %1832 = vperm.xlu0 %3630, %v5072_v45  }
 0x5e5   : > { %3627 = vset.pattern.permute.xlu2 %v6514_v50  ;;  %3628 = vset.pattern.permute.xlu1 %v6520_v52 }
 0x5e6   : > { %1817 = vperm.xlu2 %3627, %v5072_v45   ;;  %1822 = vperm.xlu1 %3628, %v5072_v45  }
 0x5e7   : > { %3632 = vset.pattern.permute.xlu0 %v6525_v21 }
 0x5ee   : > { %3629 = vset.pattern.permute.xlu2 %v6516_v33  ;;  %3631 = vset.pattern.permute.xlu1 %v6522_v62 }
 0x5ef   : > { %1827 = vperm.xlu2 %3629, %v5072_v45   ;;  %1837 = vperm.xlu1 %3631, %v5072_v45  }
 0x5f7   : > { %3633 = vset.pattern.permute.xlu1 %v6519_v57  ;;  %3634 = vset.pattern.permute.xlu2 %v6523_v36 }
 0x627   : > { %v5096_v5 = vpop.permute.xlu2 %1770 }
 0x62f   : > { %v5098_v35 = vpop.permute.xlu2 %1785 }
 0x630   : > { %6574 = vst [vmem:[#allocation54_spill] sm:$0xff] %v5098_v35 }
 0x637   : > { %v1803_v37 = vpop.permute.xlu2 %1802 }
 0x638   : > { %v1805_v22 = vmul.f32 %v1803_v37, %v4865_v6 }
 0x63a   : > { %1842 = vrot.lane.b32.xlu2 %v1805_v22, %s3797_s17 }
 0x63e   : > { %v5102_v0 = vpop.permute.xlu1 %1774  ;;  %v5104_v11 = vpop.permute.xlu0 %1789 }
 0x63f   : > { %6575 = vst [vmem:[#allocation55_spill] sm:$0xff] %v5104_v11 }
 0x640   : > { %v1818_v61 = vpop.permute.xlu2 %1817 }
 0x641   : > { %v1820_v10 = vmul.f32 %v1818_v61, %v4865_v6 }
 0x643   : > { %1854 = vrot.lane.b32.xlu0 %v1820_v10, %s3810_s25 }
 0x646   : > { %v5108_v60 = vpop.permute.xlu1 %1797  ;;  %v1808_v24 = vpop.permute.xlu0 %1807 }
 0x647   : > { %6576 = vst [vmem:[#allocation56_spill] sm:$0xff] %v5108_v60  ;;  %v1810_v46 = vmul.f32 %v1808_v24, %v4865_v6 }
 0x649   : > { %1846 = vrot.lane.b32.xlu1 %v1810_v46, %s3798_s21  ;;  %v1828_v61 = vpop.permute.xlu2 %1827 }
 0x64a   : > { %v1830_v10 = vmul.f32 %v1828_v61, %v4865_v6 }
 0x64f   : > { %v1813_v35 = vpop.permute.xlu1 %1812 }
 0x650   : > { %v1815_v37 = vmul.f32 %v1813_v35, %v4865_v6  ;;  %v1833_v22 = vpop.permute.xlu0 %1832 }
 0x651   : > { %v1835_v56 = vmul.f32 %v1833_v22, %v4865_v6 }
 0x652   : > { %1850 = vrot.lane.b32.xlu2 %v1815_v37, %s3801_s24 }
 0x653   : > { %1866 = vrot.lane.b32.xlu0 %v1835_v56, %s3811_s26 }
 0x658   : > { %v1823_v11 = vpop.permute.xlu1 %1822 }
 0x659   : > { %v1825_v20 = vmul.f32 %v1823_v11, %v4865_v6 }
 0x65a   : > { %1862 = vrot.lane.b32.xlu2 %v1830_v10, %s3804_s27 }
 0x65b   : > { %1858 = vrot.lane.b32.xlu1 %v1825_v20, %s3800_s23 }
 0x661   : > { %v1838_v24 = vpop.permute.xlu1 %1837 }
 0x662   : > { %v1840_v35 = vmul.f32 %v1838_v24, %v4865_v6  ;;  %1882 = vrot.lane.b32.xlu2 %v6543_v7, %s3818_s14  ;;  %s3822_s14 = smov 101  }
 0x664   : > { %1870 = vrot.lane.b32.xlu1 %v1840_v35, %s6500_s28  ;;  %v5146_v35 = vadd.f32 %v4865_v6, %v5000_v8 }
 0x694   : > { %v5123_v46 = vpop.permute.xlu2 %1842 }
 0x695   : > { %6577 = vst [vmem:[#allocation57_spill] sm:$0xff] %v5123_v46 }
 0x6ac   : > { %v5125_v56 = vpop.permute.xlu2 %1850 }
 0x6ad   : > { %6578 = vst [vmem:[#allocation58_spill] sm:$0xff] %v5125_v56 }
 0x6b4   : > { %v5127_v37 = vpop.permute.xlu2 %1862 }
 0x6b5   : > { %6579 = vst [vmem:[#allocation59_spill] sm:$0xff] %v5127_v37 }
 0x6bb   : > { %v5138_v20 = vpop.permute.xlu1 %1846 }
 0x6bc   : > { %v1883_v22 = vpop.permute.xlu2 %1882  ;;  %6580 = vst [vmem:[#allocation60_spill] sm:$0xff] %v5138_v20  ;;  %v5154_v20 = vpop.permute.xlu0 %1854 }
 0x6bd   : > { %v5130_v11 = vsel %vm368_vm0, 0.06666667, %v1883_v22 }
 0x6be   : > { %1898 = vperm.xlu2 %3634, %v5130_v11   ;;  %1893 = vperm.xlu1 %3633, %v5130_v11  }
 0x6bf   : > { %1888 = vperm.xlu0 %3632, %v5130_v11  }
 0x6c6   : > { %3635 = vset.pattern.permute.xlu2 %v6525_v21  ;;  %3637 = vset.pattern.permute.xlu1 %v6523_v36 }
 0x6c7   : > { %3636 = vset.pattern.permute.xlu0 %v6519_v57 }
 0x6cd   : > { %v5142_v24 = vpop.permute.xlu1 %1858 }
 0x6ce   : > { %6581 = vst [vmem:[#allocation61_spill] sm:$0xff] %v5142_v24 }
 0x6d6   : > { %v5149_v22 = vpop.permute.xlu1 %1870 }
 0x6d7   : > { %6582 = vst [vmem:[#allocation62_spill] sm:$0xff] %v5149_v22 }
 0x718   : > { %v1899_v61 = vpop.permute.xlu2 %1898 }
 0x719   : > { %v1901_v10 = vmul.f32 %v1899_v61, %v5130_v11 }
 0x71b   : > { %1907 = vrot.lane.b32.xlu2 %v1901_v10, %s3798_s21  ;;  %v5156_v10 = vpop.permute.xlu0 %1866 }
 0x71c   : > { %6583 = vst [vmem:[#allocation63_spill] sm:$0xff] %v5156_v10 }
 0x723   : > { %1931 = vperm.xlu2 %3635, %v5146_v35  }
 0x72b   : > { %3639 = vset.pattern.permute.xlu2 %v6519_v57 }
 0x730   : > { %v1894_v37 = vpop.permute.xlu1 %1893 }
 0x731   : > { %v1896_v56 = vmul.f32 %v1894_v37, %v5130_v11  ;;  %v5158_v24 = vpop.permute.xlu0 %1888 }
 0x732   : > { %v1891_v8 = vmul.f32 %v5158_v24, %v5130_v11 }
 0x733   : > { %1903 = vrot.lane.b32.xlu1 %v1896_v56, %s3797_s17 }
 0x775   : > { %v1908_v60 = vpop.permute.xlu2 %1907 }
 0x7a5   : > { %v1904_v46 = vpop.permute.xlu1 %1903 }
 0x7a6   : > { %v1910_v22 = vsel %vm394_vm1, %v1891_v8, %v1904_v46  ;;  %v1758_v8 = vmul.f32 %v5094_v3, %v4865_v6 }
 0x7a7   : > { %v1911_v15 = vsel %vm396_vm2, %v1910_v22, %v1908_v60 }
 0x7a8   : > { %v5164_v48 = vmul.f32 0.5, %v1911_v15 }
 0x7aa   : > { %v1915_v38 = vmul.f32 %v5164_v48, %v1899_v61  ;;  %v1914_v56 = vmul.f32 %v5164_v48, %v1894_v37 }
 0x7ac   : > { %1921 = vrot.lane.b32.xlu1 %v1915_v38, %s3804_s27  ;;  %1917 = vrot.lane.b32.xlu0 %v1914_v56, %s3801_s24  ;;  %v1777_v56 = vsel %vm394_vm1, %v1758_v8, %v5096_v5 }
 0x7ad   : > { %v1778_v10 = vsel %vm396_vm2, %v1777_v56, %v5102_v0 }
 0x7b4   : > { %1941 = vperm.xlu1 %3637, %v5146_v35   ;;  %1936 = vperm.xlu0 %3636, %v5146_v35  }
 0x7bc   : > { %3638 = vset.pattern.permute.xlu1 %v6525_v21  ;;  %3640 = vset.pattern.permute.xlu0 %v6523_v36 }
 0x81e   : > { %v5174_v46 = vpop.permute.xlu1 %1921  ;;  %v5176_v15 = vpop.permute.xlu0 %1917 }
 0x81f   : > { %6584 = vst [vmem:[#allocation64_spill] sm:$0xff] %v5174_v46 }
 0x820   : > { %6585 = vst [vmem:[#allocation65_spill] sm:$0xff] %v5176_v15 }
 0x826   : > { %v1942_v60 = vpop.permute.xlu1 %1941  ;;  %v1937_v61 = vpop.permute.xlu0 %1936 }
 0x827   : > { %v1944_v37 = vmul.f32 %v1942_v60, %v5130_v11  ;;  %v1959_v38 = vmul.f32 %v1942_v60, %v5164_v48  ;;  %v1939_v22 = vmul.f32 %v1937_v61, %v5130_v11  ;;  %v1752_v60 = vadd.f32 %v5044_v2, %v5072_v45  ;;  %v5214_v45 = vpop.permute.xlu2 %1931 }
 0x828   : > { %v1958_v15 = vmul.f32 %v1937_v61, %v5164_v48 }
 0x829   : > { %1950 = vrot.lane.b32.xlu1 %v1944_v37, %s3798_s21  ;;  %1965 = vrot.lane.b32.xlu0 %v1959_v38, %s3804_s27  ;;  %v5192_v46 = vadd.f32 %v1778_v10, %v1752_v60 }
 0x82a   : > { %1946 = vrot.lane.b32.xlu2 %v1939_v22, %s3797_s17 }
 0x82b   : > { %6586 = vst [vmem:[#allocation66_spill] sm:$0xff] %v5192_v46 }
 0x831   : > { %1973 = vperm.xlu1 %3638, %v5192_v46   ;;  %1983 = vperm.xlu0 %3640, %v5192_v46  }
 0x832   : > { %1961 = vrot.lane.b32.xlu2 %v1958_v15, %s3801_s24 }
 0x839   : > { %3641 = vset.pattern.permute.xlu1 %v6518_v9  ;;  %3645 = vset.pattern.permute.xlu0 %v6521_v19 }
 0x83a   : > { %1978 = vperm.xlu2 %3639, %v5192_v46   ;;  %1988 = vperm.xlu1 %3641, %v5192_v46  }
 0x83b   : > { %2008 = vperm.xlu0 %3645, %v5192_v46  }
 0x842   : > { %3642 = vset.pattern.permute.xlu2 %v6514_v50  ;;  %3643 = vset.pattern.permute.xlu1 %v6520_v52 }
 0x843   : > { %1993 = vperm.xlu2 %3642, %v5192_v46   ;;  %1998 = vperm.xlu1 %3643, %v5192_v46  }
 0x844   : > { %3647 = vset.pattern.permute.xlu0 %v6525_v21 }
 0x84b   : > { %3644 = vset.pattern.permute.xlu2 %v6516_v33  ;;  %3646 = vset.pattern.permute.xlu1 %v6522_v62 }
 0x84c   : > { %2003 = vperm.xlu2 %3644, %v5192_v46   ;;  %2013 = vperm.xlu1 %3646, %v5192_v46  }
 0x854   : > { %3648 = vset.pattern.permute.xlu1 %v6519_v57  ;;  %3649 = vset.pattern.permute.xlu2 %v6523_v36 }
 0x884   : > { %v5216_v5 = vpop.permute.xlu2 %1946 }
 0x885   : > { %6587 = vst [vmem:[#allocation67_spill] sm:$0xff] %v5216_v5 }
 0x88c   : > { %v5218_v0 = vpop.permute.xlu2 %1961 }
 0x88d   : > { %6588 = vst [vmem:[#allocation68_spill] sm:$0xff] %v5218_v0 }
 0x894   : > { %v1979_v10 = vpop.permute.xlu2 %1978 }
 0x895   : > { %v1981_v15 = vmul.f32 %v1979_v10, %v5130_v11 }
 0x897   : > { %2018 = vrot.lane.b32.xlu2 %v1981_v15, %s3797_s17 }
 0x89b   : > { %v5222_v61 = vpop.permute.xlu1 %1950  ;;  %v5224_v37 = vpop.permute.xlu0 %1965 }
 0x89c   : > { %6589 = vst [vmem:[#allocation69_spill] sm:$0xff] %v5222_v61 }
 0x89d   : > { %6590 = vst [vmem:[#allocation70_spill] sm:$0xff] %v5224_v37  ;;  %v1994_v38 = vpop.permute.xlu2 %1993 }
 0x89e   : > { %v1996_v22 = vmul.f32 %v1994_v38, %v5130_v11 }
 0x8a0   : > { %2030 = vrot.lane.b32.xlu0 %v1996_v22, %s3810_s25 }
 0x8a3   : > { %v5228_v8 = vpop.permute.xlu1 %1973  ;;  %v1984_v56 = vpop.permute.xlu0 %1983 }
 0x8a4   : > { %v1986_v60 = vmul.f32 %v1984_v56, %v5130_v11 }
 0x8a6   : > { %2022 = vrot.lane.b32.xlu1 %v1986_v60, %s3798_s21  ;;  %v2004_v38 = vpop.permute.xlu2 %2003 }
 0x8a7   : > { %v2006_v22 = vmul.f32 %v2004_v38, %v5130_v11 }
 0x8ac   : > { %v1989_v62 = vpop.permute.xlu1 %1988 }
 0x8ad   : > { %v1991_v10 = vmul.f32 %v1989_v62, %v5130_v11  ;;  %v2009_v15 = vpop.permute.xlu0 %2008 }
 0x8ae   : > { %v2011_v19 = vmul.f32 %v2009_v15, %v5130_v11 }
 0x8af   : > { %2026 = vrot.lane.b32.xlu2 %v1991_v10, %s3801_s24 }
 0x8b0   : > { %2042 = vrot.lane.b32.xlu0 %v2011_v19, %s3811_s26 }
 0x8b5   : > { %v1999_v33 = vpop.permute.xlu1 %1998 }
 0x8b6   : > { %v2001_v50 = vmul.f32 %v1999_v33, %v5130_v11 }
 0x8b7   : > { %2038 = vrot.lane.b32.xlu2 %v2006_v22, %s3804_s27 }
 0x8b8   : > { %2034 = vrot.lane.b32.xlu1 %v2001_v50, %s3800_s23 }
 0x8be   : > { %v2014_v56 = vpop.permute.xlu1 %2013 }
 0x8bf   : > { %v2016_v62 = vmul.f32 %v2014_v56, %v5130_v11  ;;  %2058 = vrot.lane.b32.xlu2 %v6543_v7, %s3819_s16  ;;  %s3823_s16 = smov 103  }
 0x8c1   : > { %2046 = vrot.lane.b32.xlu1 %v2016_v62, %s6500_s28  ;;  %v5265_v62 = vadd.f32 %v5130_v11, %v5146_v35 }
 0x8c3   : > { %6591 = vst [vmem:[#allocation71_spill] sm:$0xff] %v5265_v62 }
 0x8f1   : > { %v5243_v60 = vpop.permute.xlu2 %2018 }
 0x909   : > { %v5245_v19 = vpop.permute.xlu2 %2026 }
 0x911   : > { %v5247_v10 = vpop.permute.xlu2 %2038 }
 0x918   : > { %v5257_v50 = vpop.permute.xlu1 %2022 }
 0x919   : > { %v2059_v15 = vpop.permute.xlu2 %2058 }
 0x91a   : > { %v5250_v33 = vsel %vm368_vm0, 0.06666667, %v2059_v15 }
 0x91b   : > { %2074 = vperm.xlu2 %3649, %v5250_v33   ;;  %2069 = vperm.xlu1 %3648, %v5250_v33  }
 0x91c   : > { %2064 = vperm.xlu0 %3647, %v5250_v33  }
 0x923   : > { %3650 = vset.pattern.permute.xlu2 %v6525_v21 }
 0x924   : > { %3655 = vset.pattern.permute.xlu0 %v6523_v36 }
 0x92a   : > { %v5261_v56 = vpop.permute.xlu1 %2034 }
 0x933   : > { %v5268_v15 = vpop.permute.xlu1 %2046 }
 0x934   : > { %6592 = vst [vmem:[#allocation72_spill] sm:$0xff] %v5268_v15 }
 0x975   : > { %v2075_v38 = vpop.permute.xlu2 %2074 }
 0x976   : > { %v2077_v22 = vmul.f32 %v2075_v38, %v5250_v33 }
 0x978   : > { %2083 = vrot.lane.b32.xlu2 %v2077_v22, %s3798_s21  ;;  %v5276_v22 = vpop.permute.xlu0 %2030 }
 0x980   : > { %2107 = vperm.xlu2 %3650, %v5265_v62   ;;  %v5278_v61 = vpop.permute.xlu0 %2042 }
 0x981   : > { %6593 = vst [vmem:[#allocation73_spill] sm:$0xff] %v5278_v61 }
 0x988   : > { %3651 = vset.pattern.permute.xlu2 %v6519_v57 }
 0x989   : > { %2112 = vperm.xlu2 %3651, %v5265_v62  }
 0x98d   : > { %v2070_v52 = vpop.permute.xlu1 %2069 }
 0x98e   : > { %v2072_v46 = vmul.f32 %v2070_v52, %v5250_v33  ;;  %v5282_v9 = vpop.permute.xlu0 %2064 }
 0x98f   : > { %v2067_v21 = vmul.f32 %v5282_v9, %v5250_v33 }
 0x990   : > { %2079 = vrot.lane.b32.xlu1 %v2072_v46, %s3797_s17 }
 0x991   : > { %3652 = vset.pattern.permute.xlu2 %v6523_v36 }
 0x992   : > { %2117 = vperm.xlu2 %3652, %v5265_v62  }
 0x9d2   : > { %v2084_v35 = vpop.permute.xlu2 %2083 }
 0x9da   : > { %v5280_v5 = vpop.permute.xlu2 %2107 }
 0x9e3   : > { %v2113_v62 = vpop.permute.xlu2 %2112 }
 0xa02   : > { %v2080_v57 = vpop.permute.xlu1 %2079 }
 0xa03   : > { %v2086_v15 = vsel %vm394_vm1, %v2067_v21, %v2080_v57  ;;  %v2118_v57 = vpop.permute.xlu2 %2117  ;;  %v2115_v21 = vmul.f32 %v2113_v62, %v5250_v33 }
 0xa04   : > { %v2087_v46 = vsel %vm396_vm2, %v2086_v15, %v2084_v35  ;;  %v1096_v35 = vmul.f32 %v4802_v49, %v4015_v41 }
 0xa05   : > { %v5288_v36 = vmul.f32 0.5, %v2087_v46 }
 0xa07   : > { %v2134_v37 = vmul.f32 %v2113_v62, %v5288_v36  ;;  %v2091_v0 = vmul.f32 %v5288_v36, %v2075_v38  ;;  %v2090_v61 = vmul.f32 %v5288_v36, %v2070_v52  ;;  %v2120_v52 = vmul.f32 %v2118_v57, %v5250_v33 }
 0xa09   : > { %2137 = vrot.lane.b32.xlu2 %v2134_v37, %s3801_s24  ;;  %2097 = vrot.lane.b32.xlu1 %v2091_v0, %s3804_s27  ;;  %v2135_v0 = vmul.f32 %v2118_v57, %v5288_v36 }
 0xa0a   : > { %2093 = vrot.lane.b32.xlu0 %v2090_v61, %s3801_s24  ;;  %v920_v61 = vmul.f32 %v4757_v53, %v4009_v39  ;;  %v1169_v39 = vsel %vm394_vm1, %v1096_v35, %v4905_v13  ;;  %v6602_v35 = vld [vmem:[#allocation5_spill] sm:$0xff] }
 0xa0c   : > { %v993_v37 = vsel %vm394_vm1, %v920_v61, %v4886_v12  ;;  %v1170_v12 = vsel %vm396_vm2, %v1169_v39, %v4976_v26  ;;  %v6600_v61 = vld [vmem:[#allocation21_spill] sm:$0xff]  ;;  %v6603_v39 = vld [vmem:[#allocation14_spill] sm:$0xff] }
 0xa0d   : > { %v994_v38 = vsel %vm396_vm2, %v993_v37, %v4964_v32  ;;  %v1171_v41 = vsel %vm410_vm3, %v1170_v12, %v4913_v31  ;;  %v6604_v12 = vld [vmem:[#allocation11_spill] sm:$0xff] }
 0xa0e   : > { %v995_v62 = vsel %vm410_vm3, %v994_v38, %v4892_v54  ;;  %v1033_v54 = vmul.f32 %v4404_v29, %v4151_v51  ;;  %v1272_v51 = vmul.f32 %v4840_v42, %v4021_v43  ;;  %v1209_v42 = vmul.f32 %v4436_v30, %v4163_v59  ;;  %v6598_v59 = vld [vmem:[#allocation45_spill] sm:$0xff]  ;;  %v6601_v38 = vld [vmem:[#allocation38_spill] sm:$0xff] }
 0xa0f   : > { %v996_v15 = vsel %vm459_vm4, %v995_v62, %v5018_v34 }
 0xa10   : > { %v997_v46 = vsel %vm461_vm6, %v996_v15, %v4969_v55  ;;  %v1044_v13 = vsel %vm410_vm3, %v1033_v54, %v4627_v17  ;;  %v1172_v55 = vsel %vm459_vm4, %v1171_v41, %v5022_v63  ;;  %v1077_v63 = vmul.f32 %v6527_v47, %v4404_v29  ;;  %v6596_v29 = vld [vmem:[#allocation13_spill] sm:$0xff] }
 0xa11   : > { %2410 = vrot.lane.b32.xlu1 %v6543_v7, %s3820_s22  ;;  %v998_v53 = vsel %vm412_vm5, %v997_v46, %v4899_v40  ;;  %v1045_v40 = vsel %vm412_vm5, %v1044_v13, %v4661_v4  ;;  %v1173_v31 = vsel %vm461_vm6, %v1172_v55, %v4980_v23  ;;  %v1220_v47 = vsel %vm410_vm3, %v1209_v42, %v6596_v29  ;;  %v6607_v13 = vld [vmem:[#allocation31_spill] sm:$0xff]  ;;  %v6616_v29 = vld [vmem:[#allocation40_spill] sm:$0xff]  ;;  %s3824_s22 = smov 99  }
 0xa12   : > { %2234 = vrot.lane.b32.xlu0 %v6543_v7, %s3821_s29  ;;  %v999_v32 = vsel %vm464_vm7, %v998_v53, %v5020_v28  ;;  %v1046_v34 = vmul.f32 0.33333334, %v1045_v40  ;;  %v1174_v17 = vsel %vm412_vm5, %v1173_v31, %v4920_v44  ;;  %v1088_v43 = vsel %vm410_vm3, %v1077_v63, %v4583_v1  ;;  %v6594_v44 = vld [vmem:[#allocation9_spill] sm:$0xff]  ;;  %v6597_v1 = vld [vmem:[#allocation28_spill] sm:$0xff] }
 0xa13   : > { %v1000_v49 = vsel %vm466_vm8, %v999_v32, %v4974_v18  ;;  %v1345_v18 = vsel %vm394_vm1, %v1272_v51, %v4927_v14  ;;  %v1089_v23 = vsel %vm412_vm5, %v1088_v43, %v6594_v44  ;;  %v6605_v32 = vld [vmem:[#allocation23_spill] sm:$0xff]  ;;  %v6608_v51 = vld [vmem:[#allocation17_spill] sm:$0xff]  ;;  %v6609_v31 = vld [vmem:[#allocation16_spill] sm:$0xff] }
 0xa14   : > { %v1001_v26 = vadd.f32 %v1000_v49, %v4962_v25  ;;  %v1346_v4 = vsel %vm396_vm2, %v1345_v18, %v4988_v16  ;;  %v1175_v25 = vsel %vm464_vm7, %v1174_v17, %v5024_v27  ;;  %v6595_v16 = vld [vmem:[#allocation35_spill] sm:$0xff]  ;;  %v1253_v41 = vmul.f32 %v6605_v32, %v4436_v30  ;;  %v6606_v49 = vld [vmem:[#allocation18_spill] sm:$0xff] }
 0xa15   : > { %v1347_v14 = vsel %vm410_vm3, %v1346_v4, %v4938_v58  ;;  %v1176_v57 = vsel %vm466_vm8, %v1175_v25, %v6595_v16  ;;  %v6599_v27 = vld [vmem:[#allocation7_spill] sm:$0xff]  ;;  %v1385_v40 = vmul.f32 %v6607_v13, %v6606_v49  ;;  %v6610_v18 = vld [vmem:[#allocation46_spill] sm:$0xff]  ;;  %v6627_v49 = vld [vmem:[#allocation48_spill] sm:$0xff] }
 0xa16   : > { %v1076_v28 = vadd.f32 %v1046_v34, %v1001_v26  ;;  %v1448_v37 = vmul.f32 %v6600_v61, %v6599_v27  ;;  %v1264_v26 = vsel %vm410_vm3, %v1253_v41, %v6608_v51  ;;  %v6611_v4 = vld [vmem:[#allocation15_spill] sm:$0xff]  ;;  %v6620_v61 = vld [vmem:[#allocation33_spill] sm:$0xff] }
 0xa17   : > { %v1396_v34 = vsel %vm410_vm3, %v1385_v40, %v6609_v31  ;;  %v6613_v30 = vld [vmem:[#allocation39_spill] sm:$0xff]  ;;  %v6630_v31 = vld [vmem:[#allocation36_spill] sm:$0xff] }
 0xa18   : > { %v1521_v46 = vsel %vm394_vm1, %v1448_v37, %v6602_v35  ;;  %v6626_v32 = vld [vmem:[#allocation19_spill] sm:$0xff] }
 0xa19   : > { %2762 = vrot.lane.b32.xlu1 %v6543_v7, %s3822_s14  ;;  %v1522_v54 = vsel %vm396_vm2, %v1521_v46, %v6604_v12  ;;  %v6625_v12 = vld [vmem:[#allocation10_spill] sm:$0xff]  ;;  %s3747_s14 = scalar_lea.hbm %s6404_s9, 2 }
 0xa1a   : > { %2586 = vrot.lane.b32.xlu0 %v6543_v7, %s3823_s16  ;;  %v1523_v63 = vsel %vm410_vm3, %v1522_v54, %v6611_v4  ;;  %s321_s16 = sand.u32 1, %s3781_s10  }
 0xa21   : > { %2126 = vrot.lane.b32.xlu1 %v2120_v52, %s3798_s21  ;;  %v1090_v52 = vadd.f32 %v1089_v23, %v1076_v28  ;;  %v6612_v28 = vld [vmem:[#allocation12_spill] sm:$0xff]  ;;  %v6615_v23 = vld [vmem:[#allocation47_spill] sm:$0xff] }
 0xa22   : > { %2122 = vrot.lane.b32.xlu0 %v2115_v21, %s3797_s17  ;;  %v1221_v21 = vsel %vm412_vm5, %v1220_v47, %v6597_v1  ;;  %v1265_v43 = vsel %vm412_vm5, %v1264_v26, %v6612_v28  ;;  %v1524_v16 = vsel %vm459_vm4, %v1523_v63, %v6615_v23  ;;  %v6618_v1 = vld [vmem:[#allocation22_spill] sm:$0xff] }
 0xa23   : > { %v1177_v58 = vadd.f32 %v1176_v57, %v1090_v52  ;;  %v1222_v15 = vmul.f32 0.33333334, %v1221_v21  ;;  %v1525_v47 = vsel %vm461_vm6, %v1524_v16, %v6616_v29  ;;  %v6617_v52 = vld [vmem:[#allocation8_spill] sm:$0xff]  ;;  %v6632_v63 = vld [vmem:[#allocation6_spill] sm:$0xff]  ;;  %v6636_v16 = vld [vmem:[#allocation43_spill] sm:$0xff] }
 0xa24   : > { %v1624_v21 = vmul.f32 %v6618_v1, %v6617_v52  ;;  %v1526_v37 = vsel %vm412_vm5, %v1525_v47, %v6620_v61  ;;  %v6637_v29 = vld [vmem:[#allocation51_spill] sm:$0xff]  ;;  %v6638_v52 = vld [vmem:[#allocation53_spill] sm:$0xff] }
 0xa25   : > { %v1252_v55 = vadd.f32 %v1222_v15, %v1177_v58  ;;  %v6621_v58 = vld [vmem:[#allocation24_spill] sm:$0xff]  ;;  %v1527_v40 = vsel %vm464_vm7, %v1526_v37, %v6627_v49  ;;  %v6646_v49 = vld [vmem:[#allocation61_spill] sm:$0xff] }
 0xa26   : > { %v6623_v15 = vld [vmem:[#allocation32_spill] sm:$0xff] }
 0xa27   : > { %v1266_v25 = vadd.f32 %v1265_v43, %v1252_v55  ;;  %v6628_v55 = vld [vmem:[#allocation26_spill] sm:$0xff]  ;;  %v6633_v43 = vld [vmem:[#allocation57_spill] sm:$0xff] }
 0xa2a   : > { %2141 = vrot.lane.b32.xlu0 %v2135_v0, %s3804_s27  ;;  %v1348_v0 = vsel %vm459_vm4, %v1347_v14, %v6598_v59  ;;  %v6614_v14 = vld [vmem:[#allocation29_spill] sm:$0xff] }
 0xa2b   : > { %v1349_v62 = vsel %vm461_vm6, %v1348_v0, %v6601_v38  ;;  %v1397_v44 = vsel %vm412_vm5, %v1396_v34, %v6614_v14  ;;  %v6619_v0 = vld [vmem:[#allocation34_spill] sm:$0xff]  ;;  %v1429_v38 = vmul.f32 %v6621_v58, %v6607_v13  ;;  %v6629_v13 = vld [vmem:[#allocation41_spill] sm:$0xff] }
 0xa2c   : > { %v1350_v53 = vsel %vm412_vm5, %v1349_v62, %v6603_v39  ;;  %v1398_v59 = vmul.f32 0.33333334, %v1397_v44  ;;  %v1697_v27 = vsel %vm394_vm1, %v1624_v21, %v6619_v0  ;;  %v6622_v62 = vld [vmem:[#allocation20_spill] sm:$0xff]  ;;  %v6624_v39 = vld [vmem:[#allocation42_spill] sm:$0xff]  ;;  %v1528_v26 = vsel %vm466_vm8, %v1527_v40, %v6629_v13  ;;  %v6641_v58 = vld [vmem:[#allocation37_spill] sm:$0xff] }
 0xa2d   : > { %v1351_v17 = vsel %vm464_vm7, %v1350_v53, %v6610_v18  ;;  %v1561_v35 = vmul.f32 %v6623_v15, %v6622_v62  ;;  %v1698_v53 = vsel %vm396_vm2, %v1697_v27, %v6624_v39  ;;  %v1440_v54 = vsel %vm410_vm3, %v1429_v38, %v6625_v12  ;;  %v6631_v18 = vld [vmem:[#allocation56_spill] sm:$0xff]  ;;  %v6639_v21 = vld [vmem:[#allocation58_spill] sm:$0xff]  ;;  %v6640_v27 = vld [vmem:[#allocation25_spill] sm:$0xff] }
 0xa2e   : > { %v1352_v42 = vsel %vm466_vm8, %v1351_v17, %v6613_v30  ;;  %v1441_v51 = vsel %vm412_vm5, %v1440_v54, %v6628_v55  ;;  %v1699_v34 = vsel %vm410_vm3, %v1698_v53, %v6630_v31  ;;  %v1800_v17 = vmul.f32 %v6631_v18, %v4865_v6  ;;  %v6635_v44 = vld [vmem:[#allocation60_spill] sm:$0xff]  ;;  %v6649_v18 = vld [vmem:[#allocation59_spill] sm:$0xff] }
 0xa2f   : > { %v1353_v57 = vadd.f32 %v1352_v42, %v1266_v25  ;;  %v1572_v41 = vsel %vm410_vm3, %v1561_v35, %v6626_v32  ;;  %v6634_v25 = vld [vmem:[#allocation49_spill] sm:$0xff]  ;;  %v1737_v6 = vmul.f32 %v5044_v2, %v6637_v29  ;;  %v1976_v0 = vmul.f32 %v5228_v8, %v5130_v11  ;;  %v6642_v35 = vld [vmem:[#allocation30_spill] sm:$0xff]  ;;  %v6643_v39 = vld [vmem:[#allocation52_spill] sm:$0xff] }
 0xa30   : > { %v1573_v28 = vsel %vm412_vm5, %v1572_v41, %v6632_v63  ;;  %v1873_v30 = vsel %vm394_vm1, %v1800_v17, %v6633_v43  ;;  %v1700_v14 = vsel %vm459_vm4, %v1699_v34, %v6634_v25  ;;  %v1605_v61 = vmul.f32 %v6640_v27, %v6623_v15  ;;  %v6644_v15 = vld [vmem:[#allocation27_spill] sm:$0xff]  ;;  %v6645_v32 = vld [vmem:[#allocation50_spill] sm:$0xff] }
 0xa31   : > { %v1428_v46 = vadd.f32 %v1398_v59, %v1353_v57  ;;  %v1874_v23 = vsel %vm396_vm2, %v1873_v30, %v6635_v44  ;;  %v1701_v57 = vsel %vm461_vm6, %v1700_v14, %v6636_v16  ;;  %v1574_v47 = vmul.f32 0.33333334, %v1573_v28  ;;  %v6650_v63 = vld [vmem:[#allocation54_spill] sm:$0xff]  ;;  %v6651_v28 = vld [vmem:[#allocation55_spill] sm:$0xff]  ;;  %v6652_v30 = vld [vmem:[#allocation64_spill] sm:$0xff] }
 0xa32   : > { %v1748_v1 = vsel %vm410_vm3, %v1737_v6, %v6638_v52  ;;  %v1875_v59 = vsel %vm410_vm3, %v1874_v23, %v6639_v21  ;;  %v1702_v38 = vsel %vm412_vm5, %v1701_v57, %v6641_v58  ;;  %v2049_v62 = vsel %vm394_vm1, %v1976_v0, %v5243_v60  ;;  %v6653_v25 = vld [vmem:[#allocation63_spill] sm:$0xff]  ;;  %v6654_v44 = vld [vmem:[#allocation62_spill] sm:$0xff] }
 0xa33   : > { %v1442_v4 = vadd.f32 %v1441_v51, %v1428_v46  ;;  %v1616_v46 = vsel %vm410_vm3, %v1605_v61, %v6642_v35  ;;  %v1749_v53 = vsel %vm412_vm5, %v1748_v1, %v6643_v39  ;;  %v1876_v12 = vsel %vm459_vm4, %v1875_v59, %v5154_v20  ;;  %v6647_v51 = vld [vmem:[#allocation44_spill] sm:$0xff]  ;;  %v6656_v1 = vld [vmem:[#allocation70_spill] sm:$0xff] }
 0xa34   : > { %v2050_v8 = vsel %vm396_vm2, %v2049_v62, %v5257_v50  ;;  %v1617_v54 = vsel %vm412_vm5, %v1616_v46, %v6644_v15  ;;  %v1703_v41 = vsel %vm464_vm7, %v1702_v38, %v6645_v32  ;;  %v1877_v60 = vsel %vm461_vm6, %v1876_v12, %v6646_v49 }
 0xa35   : > { %v1529_v42 = vadd.f32 %v1528_v26, %v1442_v4  ;;  %v1913_v40 = vmul.f32 %v5164_v48, %v5158_v24  ;;  %v1704_v13 = vsel %vm466_vm8, %v1703_v41, %v6647_v51  ;;  %v1750_v20 = vmul.f32 0.33333334, %v1749_v53  ;;  %v6648_v26 = vld [vmem:[#allocation65_spill] sm:$0xff] }
 0xa36   : > { %v1781_v50 = vmul.f32 %v5094_v3, %v5044_v2  ;;  %v2051_v34 = vsel %vm410_vm3, %v2050_v8, %v5245_v19  ;;  %v1878_v17 = vsel %vm412_vm5, %v1877_v60, %v6649_v18  ;;  %v1957_v29 = vmul.f32 %v5214_v45, %v5164_v48  ;;  %v6659_v8 = vld [vmem:[#allocation71_spill] sm:$0xff] }
 0xa37   : > { %v1604_v37 = vadd.f32 %v1574_v47, %v1529_v42  ;;  %v1924_v31 = vsel %vm410_vm3, %v1913_v40, %v6648_v26  ;;  %v2052_v2 = vsel %vm459_vm4, %v2051_v34, %v5276_v22  ;;  %v1879_v19 = vsel %vm464_vm7, %v1878_v17, %v6653_v25  ;;  %v6655_v22 = vld [vmem:[#allocation68_spill] sm:$0xff] }
 0xa38   : > { %v1792_v24 = vsel %vm410_vm3, %v1781_v50, %v6650_v63  ;;  %v1925_v42 = vsel %vm412_vm5, %v1924_v31, %v6652_v30  ;;  %v2053_v14 = vsel %vm461_vm6, %v2052_v2, %v5261_v56  ;;  %v1880_v23 = vsel %vm466_vm8, %v1879_v19, %v6654_v44  ;;  %v6657_v56 = vld [vmem:[#allocation73_spill] sm:$0xff] }
 0xa39   : > { %v1618_v55 = vadd.f32 %v1617_v54, %v1604_v37  ;;  %v1793_v43 = vsel %vm412_vm5, %v1792_v24, %v6651_v28  ;;  %v1926_v57 = vmul.f32 0.33333334, %v1925_v42  ;;  %v2054_v6 = vsel %vm412_vm5, %v2053_v14, %v5247_v10  ;;  %v6658_v37 = vld [vmem:[#allocation72_spill] sm:$0xff] }
 0xa3a   : > { %v1968_v52 = vsel %vm410_vm3, %v1957_v29, %v6655_v22  ;;  %v2055_v0 = vsel %vm464_vm7, %v2054_v6, %v6657_v56  ;;  %v2089_v61 = vmul.f32 %v5288_v36, %v5282_v9  ;;  %v2103_v15 = vadd.f32 %v5250_v33, %v6659_v8  ;;  %v6666_v8 = vld [vmem:[#allocation66_spill] sm:$0xff] }
 0xa3b   : > { %v1705_v4 = vadd.f32 %v1704_v13, %v1618_v55  ;;  %v1969_v21 = vsel %vm412_vm5, %v1968_v52, %v6656_v1  ;;  %v2056_v58 = vsel %vm466_vm8, %v2055_v0, %v6658_v37  ;;  %v6660_v60 = vmov 1  }
 0xa3c   : > { %v6661_v40 = vmov 2   ;;  %v2133_v50 = vmul.f32 %v5280_v5, %v5288_v36 }
 0xa3d   : > { %v1780_v3 = vadd.f32 %v1750_v20, %v1705_v4  ;;  %v6662_v4 = vmov 0  }
 0xa3f   : > { %v1794_v16 = vadd.f32 %v1793_v43, %v1780_v3 }
 0xa41   : > { %v1881_v47 = vadd.f32 %v1880_v23, %v1794_v16 }
 0xa43   : > { %v1956_v59 = vadd.f32 %v1926_v57, %v1881_v47 }
 0xa45   : > { %v1970_v10 = vadd.f32 %v1969_v21, %v1956_v59 }
 0xa47   : > { %v2057_v46 = vadd.f32 %v2056_v58, %v1970_v10 }
 0xa63   : > { %v2138_v20 = vpop.permute.xlu2 %2137 }
 0xa64   : > { %v2144_v26 = vsel %vm410_vm3, %v2133_v50, %v2138_v20 }
 0xa7b   : > { %v2098_v27 = vpop.permute.xlu1 %2097 }
 0xa7c   : > { %v2094_v38 = vpop.permute.xlu0 %2093 }
 0xa7d   : > { %v2100_v62 = vsel %vm410_vm3, %v2089_v61, %v2094_v38  ;;  %v1934_v38 = vmul.f32 %v5214_v45, %v5130_v11  ;;  %v2110_v45 = vmul.f32 %v5280_v5, %v5250_v33 }
 0xa7e   : > { %v2101_v35 = vsel %vm412_vm5, %v2100_v62, %v2098_v27  ;;  %v6663_v62 = vmov 3  }
 0xa7f   : > { %v2102_v39 = vmul.f32 0.33333334, %v2101_v35  ;;  %v6664_v35 = vld [vmem:[#allocation67_spill] sm:$0xff] }
 0xa81   : > { %v2132_v53 = vadd.f32 %v2102_v39, %v2057_v46  ;;  %v1953_v46 = vsel %vm394_vm1, %v1934_v38, %v6664_v35  ;;  %v6665_v39 = vld [vmem:[#allocation69_spill] sm:$0xff] }
 0xa83   : > { %v2411_v32 = vpop.permute.xlu1 %2410 }
 0xa84   : > { %v2235_v12 = vpop.permute.xlu0 %2234  ;;  %v5521_v49 = vsel %vm368_vm0, 0.06666667, %v2411_v32 }
 0xa85   : > { %v5512_v54 = vsel %vm368_vm0, 0.06666667, %v2235_v12 }
 0xa86   : > { %2250 = vperm.xlu2 %3652, %v5512_v54   ;;  %2245 = vperm.xlu1 %3648, %v5512_v54   ;;  %v5517_v9 = vadd.f32 %v5512_v54, %v2103_v15 }
 0xa88   : > { %2469 = vperm.xlu0 %3655, %v5517_v9   ;;  %v2455_v63 = vadd.f32 %v5521_v49, %v5517_v9 }
 0xa8b   : > { %v2763_v51 = vpop.permute.xlu1 %2762 }
 0xa8c   : > { %v2587_v41 = vpop.permute.xlu0 %2586  ;;  %v5532_v13 = vsel %vm368_vm0, 0.06666667, %v2763_v51 }
 0xa8d   : > { %v5542_v17 = vsel %vm368_vm0, 0.06666667, %v2587_v41 }
 0xa8e   : > { %3654 = vset.pattern.permute.xlu2 %v6660_v60  ;;  %3653 = vset.pattern.permute.xlu1 %v6661_v40  ;;  %v5557_v24 = vadd.f32 %v5542_v17, %v2455_v63 }
 0xa8f   : > { %2421 = vperm.xlu2 %3654, %v5521_v49   ;;  %2293 = vperm.xlu1 %3653, %v2103_v15  }
 0xa90   : > { %3656 = vset.pattern.permute.xlu0 %v6660_v60 }
 0xa91   : > { %2288 = vperm.xlu0 %3656, %v2103_v15  }
 0xa93   : > { %v2127_v43 = vpop.permute.xlu1 %2126 }
 0xa94   : > { %v5527_v55 = vpop.permute.xlu0 %2122 }
 0xa97   : > { %2426 = vperm.xlu1 %3653, %v5521_v49   ;;  %2464 = vperm.xlu2 %3654, %v5517_v9  }
 0xa99   : > { %2773 = vperm.xlu0 %3656, %v5532_v13  }
 0xa9c   : > { %v2142_v31 = vpop.permute.xlu0 %2141 }
 0xa9d   : > { %v2145_v34 = vsel %vm412_vm5, %v2144_v26, %v2142_v31  ;;  %v6667_v26 = vmov 5   ;;  %v6669_v31 = vmov 6  }
 0xa9e   : > { %v5539_v18 = vadd.f32 %v2145_v34, %v2132_v53  ;;  %v1954_v53 = vsel %vm396_vm2, %v1953_v46, %v6665_v39  ;;  %v6670_v34 = vmov 7  }
 0xa9f   : > { %3657 = vset.pattern.permute.xlu1 %v6660_v60  ;;  %3658 = vset.pattern.permute.xlu2 %v6661_v40 }
 0xaa0   : > { %2602 = vperm.xlu2 %3658, %v5542_v17   ;;  %2597 = vperm.xlu1 %3657, %v5542_v17  }
 0xaa1   : > { %3661 = vset.pattern.permute.xlu0 %v6662_v4 }
 0xaa2   : > { %2240 = vperm.xlu0 %3661, %v5512_v54  }
 0xaa8   : > { %2645 = vperm.xlu2 %3658, %v2455_v63   ;;  %2640 = vperm.xlu1 %3657, %v2455_v63  }
 0xaaa   : > { %2416 = vperm.xlu0 %3661, %v5521_v49  }
 0xab0   : > { %2938 = vrot.lane.b32.xlu2 %v6543_v7, %s3824_s22  ;;  %3659 = vset.pattern.permute.xlu1 %v6661_v40 }
 0xab1   : > { %2778 = vperm.xlu1 %3659, %v5532_v13  }
 0xab8   : > { %2821 = vperm.xlu2 %3658, %v5557_v24  }
 0xab9   : > { %3660 = vset.pattern.permute.xlu1 %v6660_v60 }
 0xaba   : > { %2816 = vperm.xlu1 %3660, %v5557_v24  }
 0xac0   : > { %3663 = vset.pattern.permute.xlu2 %v6660_v60 }
 0xac2   : > { %3662 = vset.pattern.permute.xlu1 %v6662_v4 }
 0xae0   : > { %v5564_v28 = vpop.permute.xlu2 %2250 }
 0xae1   : > { %v2253_v7 = vmul.f32 %v5564_v28, %v5512_v54 }
 0xae3   : > { %2259 = vrot.lane.b32.xlu2 %v2253_v7, %s3798_s21  ;;  %v6671_v7 = vmov 8  }
 0xae9   : > { %v5578_v25 = vpop.permute.xlu2 %2421 }
 0xaea   : > { %v2424_v57 = vmul.f32 %v5578_v25, %v5521_v49 }
 0xaf1   : > { %v5595_v29 = vpop.permute.xlu2 %2464 }
 0xaf2   : > { %v2467_v47 = vmul.f32 %v5595_v29, %v5521_v49 }
 0xaf8   : > { %v5569_v30 = vpop.permute.xlu1 %2245 }
 0xaf9   : > { %v2248_v42 = vmul.f32 %v5569_v30, %v5512_v54 }
 0xafa   : > { %v5573_v2 = vpop.permute.xlu0 %2469  ;;  %v5605_v22 = vpop.permute.xlu2 %2602 }
 0xafb   : > { %2255 = vrot.lane.b32.xlu1 %v2248_v42, %s3797_s17  ;;  %v2472_v52 = vmul.f32 %v5573_v2, %v5521_v49  ;;  %v2605_v1 = vmul.f32 %v5605_v22, %v5542_v17 }
 0xb01   : > { %v5576_v3 = vpop.permute.xlu1 %2293 }
 0xb02   : > { %v2296_v44 = vmul.f32 %v5576_v3, %v5512_v54  ;;  %v5621_v0 = vpop.permute.xlu2 %2645 }
 0xb03   : > { %2283 = vperm.xlu1 %3662, %v2103_v15   ;;  %v5580_v19 = vpop.permute.xlu0 %2288  ;;  %v2648_v61 = vmul.f32 %v5621_v0, %v5542_v17  ;;  %v1928_v15 = vadd.f32 %v5164_v48, %v6666_v8 }
 0xb04   : > { %v2291_v14 = vmul.f32 %v5580_v19, %v5512_v54 }
 0xb05   : > { %v5646_v11 = vadd.f32 %v1954_v53, %v1928_v15 }
 0xb06   : > { %2298 = vrot.lane.b32.xlu2 %v2291_v14, %s3797_s17 }
 0xb07   : > { %v2104_v51 = vadd.f32 %v5288_v36, %v5646_v11  ;;  %v6668_v36 = vmov 4  }
 0xb09   : > { %v5587_v23 = vpop.permute.xlu1 %2426 }
 0xb0a   : > { %v2429_v16 = vmul.f32 %v5587_v23, %v5521_v49  ;;  %v2939_v12 = vpop.permute.xlu2 %2938 }
 0xb0b   : > { %2302 = vrot.lane.b32.xlu1 %v2296_v44, %s3798_s21  ;;  %v5628_v37 = vpop.permute.xlu0 %2773  ;;  %v5655_v32 = vsel %vm368_vm0, 0.06666667, %v2939_v12 }
 0xb0c   : > { %2435 = vrot.lane.b32.xlu0 %v2429_v16, %s3798_s21  ;;  %v2776_v10 = vmul.f32 %v5628_v37, %v5532_v13 }
 0xb0e   : > { %2431 = vrot.lane.b32.xlu2 %v2424_v57, %s3797_s17 }
 0xb12   : > { %v5598_v6 = vpop.permute.xlu1 %2597  ;;  %v5663_v5 = vpop.permute.xlu2 %2821 }
 0xb13   : > { %2459 = vperm.xlu1 %3662, %v5517_v9   ;;  %v2600_v21 = vmul.f32 %v5598_v6, %v5542_v17  ;;  %v2129_v9 = vsel %vm394_vm1, %v2110_v45, %v5527_v55  ;;  %v2824_v55 = vmul.f32 %v5663_v5, %v5532_v13 }
 0xb14   : > { %2592 = vperm.xlu0 %3661, %v5542_v17   ;;  %v2130_v48 = vsel %vm396_vm2, %v2129_v9, %v2127_v43  ;;  %v5697_v14 = vpop.permute.xlu0 %2240 }
 0xb15   : > { %v5667_v50 = vadd.f32 %v2130_v48, %v2104_v51  ;;  %v2243_v57 = vmul.f32 %v5697_v14, %v5512_v54 }
 0xb16   : > { %2474 = vrot.lane.b32.xlu2 %v2467_v47, %s3797_s17 }
 0xb1a   : > { %v5615_v59 = vpop.permute.xlu1 %2640 }
 0xb1b   : > { %2478 = vrot.lane.b32.xlu1 %v2472_v52, %s3798_s21  ;;  %v2643_v56 = vmul.f32 %v5615_v59, %v5542_v17 }
 0xb1c   : > { %2611 = vrot.lane.b32.xlu0 %v2605_v1, %s3798_s21  ;;  %v5708_v1 = vpop.permute.xlu0 %2416 }
 0xb1d   : > { %v2419_v8 = vmul.f32 %v5708_v1, %v5521_v49 }
 0xb1e   : > { %2607 = vrot.lane.b32.xlu2 %v2600_v21, %s3797_s17 }
 0xb23   : > { %2635 = vperm.xlu1 %3662, %v2455_v63   ;;  %v5624_v27 = vpop.permute.xlu1 %2778 }
 0xb24   : > { %2768 = vperm.xlu0 %3661, %v5532_v13   ;;  %v2781_v58 = vmul.f32 %v5624_v27, %v5532_v13 }
 0xb26   : > { %2650 = vrot.lane.b32.xlu2 %v2643_v56, %s3797_s17 }
 0xb2b   : > { %2654 = vrot.lane.b32.xlu1 %v2648_v61, %s3798_s21 }
 0xb2c   : > { %2787 = vrot.lane.b32.xlu0 %v2781_v58, %s3798_s21  ;;  %v5657_v41 = vpop.permute.xlu1 %2816 }
 0xb2d   : > { %3666 = vset.pattern.permute.xlu0 %v6663_v62  ;;  %v2819_v20 = vmul.f32 %v5657_v41, %v5532_v13 }
 0xb2e   : > { %2783 = vrot.lane.b32.xlu2 %v2776_v10, %s3797_s17 }
 0xb33   : > { %2811 = vperm.xlu1 %3662, %v5557_v24  }
 0xb34   : > { %2164 = vperm.xlu0 %3666, %v5646_v11  }
 0xb36   : > { %2949 = vperm.xlu2 %3663, %v5655_v32  }
 0xb3b   : > { %2826 = vrot.lane.b32.xlu1 %v2819_v20, %s3797_s17 }
 0xb3c   : > { %3675 = vset.pattern.permute.xlu0 %v6667_v26  ;;  %3664 = vset.pattern.permute.xlu1 %v6660_v60 }
 0xb3d   : > { %2350 = vperm.xlu0 %3675, %v5667_v50   ;;  %v2260_v63 = vpop.permute.xlu2 %2259 }
 0xb3e   : > { %2830 = vrot.lane.b32.xlu2 %v2824_v55, %s3798_s21 }
 0xb3f   : > { %3665 = vset.pattern.permute.xlu2 %v6661_v40 }
 0xb43   : > { %2154 = vperm.xlu1 %3664, %v5646_v11  }
 0xb45   : > { %3676 = vset.pattern.permute.xlu0 %v6661_v40 }
 0xb46   : > { %2954 = vperm.xlu0 %3676, %v5655_v32   ;;  %2159 = vperm.xlu2 %3665, %v5646_v11  }
 0xb4b   : > { %3667 = vset.pattern.permute.xlu1 %v6668_v36 }
 0xb4c   : > { %2169 = vperm.xlu1 %3667, %v5646_v11  }
 0xb4e   : > { %3668 = vset.pattern.permute.xlu2 %v6667_v26 }
 0xb4f   : > { %2174 = vperm.xlu2 %3668, %v5646_v11  }
 0xb54   : > { %3669 = vset.pattern.permute.xlu1 %v6669_v31 }
 0xb55   : > { %2179 = vperm.xlu1 %3669, %v5646_v11  }
 0xb57   : > { %3670 = vset.pattern.permute.xlu2 %v6670_v34 }
 0xb58   : > { %2184 = vperm.xlu2 %3670, %v5646_v11  }
 0xb5d   : > { %3671 = vset.pattern.permute.xlu1 %v6671_v7 }
 0xb5e   : > { %2189 = vperm.xlu1 %3671, %v5646_v11  }
 0xb60   : > { %v2299_v43 = vpop.permute.xlu2 %2298  ;;  %3672 = vset.pattern.permute.xlu2 %v6661_v40 }
 0xb61   : > { %2335 = vperm.xlu2 %3672, %v5667_v50  }
 0xb66   : > { %3673 = vset.pattern.permute.xlu1 %v6663_v62 }
 0xb67   : > { %2340 = vperm.xlu1 %3673, %v5667_v50  }
 0xb68   : > { %v2432_v42 = vpop.permute.xlu2 %2431 }
 0xb69   : > { %3674 = vset.pattern.permute.xlu2 %v6668_v36  ;;  %v2438_v9 = vsel %vm394_vm1, %v2419_v8, %v2432_v42 }
 0xb6a   : > { %2345 = vperm.xlu2 %3674, %v5667_v50  }
 0xb6d   : > { %v2256_v44 = vpop.permute.xlu1 %2255 }
 0xb6e   : > { %v2262_v47 = vsel %vm394_vm1, %v2243_v57, %v2256_v44 }
 0xb6f   : > { %3677 = vset.pattern.permute.xlu1 %v6669_v31  ;;  %v2263_v21 = vsel %vm396_vm2, %v2262_v47, %v2260_v63 }
 0xb70   : > { %2355 = vperm.xlu1 %3677, %v5667_v50   ;;  %v2475_v16 = vpop.permute.xlu2 %2474  ;;  %v5712_v61 = vmul.f32 0.5, %v2263_v21 }
 0xb72   : > { %3678 = vset.pattern.permute.xlu2 %v6670_v34  ;;  %v2280_v10 = vadd.f32 %v5712_v61, %v5667_v50 }
 0xb73   : > { %2360 = vperm.xlu2 %3678, %v5667_v50  }
 0xb75   : > { %v5706_v52 = vpop.permute.xlu1 %2283 }
 0xb76   : > { %v2286_v58 = vmul.f32 %v5706_v52, %v5512_v54 }
 0xb78   : > { %v2608_v56 = vpop.permute.xlu2 %2607  ;;  %3679 = vset.pattern.permute.xlu1 %v6660_v60  ;;  %v2305_v35 = vsel %vm394_vm1, %v2286_v58, %v2299_v43 }
 0xb7b   : > { %3680 = vset.pattern.permute.xlu2 %v6671_v7 }
 0xb7c   : > { %2365 = vperm.xlu2 %3680, %v5667_v50  }
 0xb7d   : > { %v2303_v38 = vpop.permute.xlu1 %2302 }
 0xb7e   : > { %v2306_v46 = vsel %vm396_vm2, %v2305_v35, %v2303_v38  ;;  %v2436_v39 = vpop.permute.xlu0 %2435 }
 0xb7f   : > { %v5722_v53 = vadd.f32 %v2306_v46, %v2280_v10  ;;  %v2439_v48 = vsel %vm396_vm2, %v2438_v9, %v2436_v39 }
 0xb80   : > { %v2651_v12 = vpop.permute.xlu2 %2650  ;;  %v5741_v63 = vmul.f32 0.5, %v2439_v48 }
 0xb81   : > { %2511 = vperm.xlu0 %3676, %v5722_v53   ;;  %2506 = vperm.xlu1 %3679, %v5722_v53  }
 0xb82   : > { %v2456_v21 = vadd.f32 %v5741_v63, %v5722_v53 }
 0xb84   : > { %3682 = vset.pattern.permute.xlu2 %v6668_v36 }
 0xb85   : > { %v5729_v15 = vpop.permute.xlu1 %2459  ;;  %2521 = vperm.xlu2 %3682, %v5722_v53  }
 0xb86   : > { %v2593_v45 = vpop.permute.xlu0 %2592  ;;  %v2462_v20 = vmul.f32 %v5729_v15, %v5521_v49 }
 0xb87   : > { %v2595_v55 = vmul.f32 %v2593_v45, %v5542_v17 }
 0xb88   : > { %v2784_v51 = vpop.permute.xlu2 %2783  ;;  %v2481_v42 = vsel %vm394_vm1, %v2462_v20, %v2475_v16 }
 0xb89   : > { %3685 = vset.pattern.permute.xlu0 %v6670_v34  ;;  %3681 = vset.pattern.permute.xlu1 %v6663_v62  ;;  %v2614_v57 = vsel %vm394_vm1, %v2595_v55, %v2608_v56 }
 0xb8a   : > { %2536 = vperm.xlu0 %3685, %v5722_v53   ;;  %2516 = vperm.xlu1 %3681, %v5722_v53  }
 0xb8d   : > { %v2479_v43 = vpop.permute.xlu1 %2478  ;;  %3684 = vset.pattern.permute.xlu2 %v6669_v31 }
 0xb8e   : > { %v2482_v44 = vsel %vm396_vm2, %v2481_v42, %v2479_v43  ;;  %2531 = vperm.xlu2 %3684, %v5722_v53   ;;  %v2612_v47 = vpop.permute.xlu0 %2611 }
 0xb8f   : > { %v2615_v58 = vsel %vm396_vm2, %v2614_v57, %v2612_v47  ;;  %v5755_v35 = vadd.f32 %v2482_v44, %v2456_v21 }
 0xb90   : > { %v5751_v38 = vmul.f32 0.5, %v2615_v58  ;;  %v5753_v10 = vpop.permute.xlu2 %2949 }
 0xb92   : > { %3690 = vset.pattern.permute.xlu0 %v6668_v36  ;;  %3683 = vset.pattern.permute.xlu1 %v6667_v26  ;;  %v5762_v16 = vmul.f32 %v5751_v38, %v2593_v45  ;;  %v2632_v45 = vadd.f32 %v5751_v38, %v5755_v35 }
 0xb93   : > { %2526 = vperm.xlu1 %3683, %v5722_v53   ;;  %2697 = vperm.xlu0 %3690, %v5755_v35  }
 0xb94   : > { %6672 = vst [vmem:[#allocation9_spill] sm:$0xff] %v5762_v16 }
 0xb95   : > { %v5764_v56 = vpop.permute.xlu1 %2635 }
 0xb96   : > { %6673 = vst [vmem:[#allocation35_spill] sm:$0xff] %v5764_v56  ;;  %3687 = vset.pattern.permute.xlu2 %v6671_v7  ;;  %v2769_v46 = vpop.permute.xlu0 %2768  ;;  %v2638_v8 = vmul.f32 %v5764_v56, %v5542_v17 }
 0xb97   : > { %2541 = vperm.xlu2 %3687, %v5722_v53   ;;  %v2771_v9 = vmul.f32 %v2769_v46, %v5532_v13 }
 0xb98   : > { %v2831_v39 = vpop.permute.xlu2 %2830  ;;  %v2657_v20 = vsel %vm394_vm1, %v2638_v8, %v2651_v12 }
 0xb99   : > { %v2790_v43 = vsel %vm394_vm1, %v2771_v9, %v2784_v51 }
 0xb9b   : > { %3686 = vset.pattern.permute.xlu1 %v6660_v60 }
 0xb9c   : > { %2682 = vperm.xlu1 %3686, %v5755_v35  }
 0xb9d   : > { %v2655_v48 = vpop.permute.xlu1 %2654 }
 0xb9e   : > { %v2658_v55 = vsel %vm396_vm2, %v2657_v20, %v2655_v48  ;;  %v2788_v42 = vpop.permute.xlu0 %2787 }
 0xb9f   : > { %v5778_v44 = vadd.f32 %v2658_v55, %v2632_v45  ;;  %v2791_v57 = vsel %vm396_vm2, %v2790_v43, %v2788_v42  ;;  %3689 = vset.pattern.permute.xlu2 %v6663_v62  ;;  %v5816_v42 = vadd.f32 %v5532_v13, %v5557_v24 }
 0xba0   : > { %v5782_v47 = vmul.f32 0.5, %v2791_v57  ;;  %v2160_v21 = vpop.permute.xlu2 %2159  ;;  %2692 = vperm.xlu2 %3689, %v5755_v35   ;;  %v2952_v57 = vmul.f32 %v5753_v10, %v5655_v32 }
 0xba1   : > { %2873 = vperm.xlu0 %3690, %v5778_v44   ;;  %6676 = vst [vmem:[#allocation45_spill] sm:$0xff] %v5816_v42 }
 0xba2   : > { %v5787_v12 = vmul.f32 %v5782_v47, %v2769_v46  ;;  %v2808_v9 = vadd.f32 %v5782_v47, %v5778_v44 }
 0xba4   : > { %6674 = vst [vmem:[#allocation13_spill] sm:$0xff] %v5787_v12  ;;  %3688 = vset.pattern.permute.xlu1 %v6661_v40 }
 0xba5   : > { %v5790_v51 = vpop.permute.xlu1 %2811  ;;  %2687 = vperm.xlu1 %3688, %v5755_v35  }
 0xba6   : > { %6675 = vst [vmem:[#allocation28_spill] sm:$0xff] %v5790_v51  ;;  %v2814_v8 = vmul.f32 %v5790_v51, %v5532_v13  ;;  %v5812_v43 = vpop.permute.xlu0 %2164  ;;  %v2162_v51 = vmul.f32 %v2160_v21, %v5250_v33 }
 0xba8   : > { %3692 = vset.pattern.permute.xlu2 %v6669_v31 }
 0xba9   : > { %v2175_v58 = vpop.permute.xlu2 %2174  ;;  %2707 = vperm.xlu2 %3692, %v5755_v35   ;;  %3698 = vset.pattern.permute.xlu0 %v6660_v60 }
 0xbaa   : > { %2330 = vperm.xlu0 %3698, %v5667_v50   ;;  %v2177_v16 = vmul.f32 %v2175_v58, %v5250_v33 }
 0xbad   : > { %v2827_v46 = vpop.permute.xlu1 %2826  ;;  %3691 = vset.pattern.permute.xlu1 %v6667_v26 }
 0xbae   : > { %v2833_v48 = vsel %vm394_vm1, %v2814_v8, %v2827_v46  ;;  %2702 = vperm.xlu1 %3691, %v5755_v35  }
 0xbaf   : > { %v2834_v45 = vsel %vm396_vm2, %v2833_v48, %v2831_v39  ;;  %v2351_v8 = vpop.permute.xlu0 %2350 }
 0xbb0   : > { %v5805_v20 = vadd.f32 %v2834_v45, %v2808_v9 }
 0xbb1   : > { %3694 = vset.pattern.permute.xlu2 %v6660_v60 }
 0xbb2   : > { %v2185_v55 = vpop.permute.xlu2 %2184  ;;  %2858 = vperm.xlu2 %3694, %v5778_v44   ;;  %3034 = vperm.xlu0 %3698, %v5805_v20  }
 0xbb5   : > { %v5818_v39 = vpop.permute.xlu1 %2154 }
 0xbb6   : > { %3693 = vset.pattern.permute.xlu1 %v6670_v34 }
 0xbb7   : > { %2712 = vperm.xlu1 %3693, %v5755_v35  }
 0xbb8   : > { %v5841_v9 = vpop.permute.xlu0 %2954 }
 0xbba   : > { %3696 = vset.pattern.permute.xlu2 %v6661_v40  ;;  %2992 = vperm.xlu0 %3698, %v5816_v42  }
 0xbbb   : > { %v5822_v60 = vpop.permute.xlu2 %2335  ;;  %2863 = vperm.xlu2 %3696, %v5778_v44  }
 0xbbe   : > { %v5830_v24 = vpop.permute.xlu1 %2169 }
 0xbbf   : > { %3695 = vset.pattern.permute.xlu1 %v6671_v7 }
 0xbc0   : > { %2717 = vperm.xlu1 %3695, %v5755_v35  }
 0xbc2   : > { %3708 = vset.pattern.permute.xlu0 %v6669_v31 }
 0xbc3   : > { %2959 = vrot.lane.b32.xlu2 %v2952_v57, %s3797_s17  ;;  %3059 = vperm.xlu0 %3708, %v5805_v20   ;;  %v2957_v57 = vmul.f32 %v5841_v9, %v5655_v32 }
 0xbc4   : > { %v5834_v46 = vpop.permute.xlu2 %2345  ;;  %3699 = vset.pattern.permute.xlu2 %v6667_v26 }
 0xbc7   : > { %v5844_v48 = vpop.permute.xlu1 %2179 }
 0xbc8   : > { %3697 = vset.pattern.permute.xlu1 %v6663_v62 }
 0xbc9   : > { %2868 = vperm.xlu1 %3697, %v5778_v44  }
 0xbcb   : > { %2878 = vperm.xlu2 %3699, %v5778_v44   ;;  %3709 = vset.pattern.permute.xlu0 %v6662_v4 }
 0xbcc   : > { %2944 = vperm.xlu0 %3709, %v5655_v32  }
 0xbcd   : > { %v5846_v45 = vpop.permute.xlu2 %2360 }
 0xbd0   : > { %v2190_v56 = vpop.permute.xlu1 %2189 }
 0xbd1   : > { %2963 = vrot.lane.b32.xlu1 %v2957_v57, %s3798_s21 }
 0xbd2   : > { %3700 = vset.pattern.permute.xlu1 %v6669_v31 }
 0xbd3   : > { %3701 = vset.pattern.permute.xlu2 %v6670_v34 }
 0xbd4   : > { %2888 = vperm.xlu2 %3701, %v5778_v44   ;;  %2198 = vrot.lane.b32.xlu0 %v2162_v51, %s3798_s21  ;;  %v2187_v51 = vmul.f32 %v2185_v55, %v5250_v33 }
 0xbd6   : > { %v5856_v12 = vpop.permute.xlu2 %2365 }
 0xbd9   : > { %2883 = vperm.xlu1 %3700, %v5778_v44   ;;  %v2341_v21 = vpop.permute.xlu1 %2340 }
 0xbdc   : > { %3703 = vset.pattern.permute.xlu2 %v6661_v40  ;;  %2210 = vrot.lane.b32.xlu0 %v2177_v16, %s3800_s23  ;;  %v2192_v16 = vmul.f32 %v2190_v56, %v5250_v33 }
 0xbdd   : > { %3039 = vperm.xlu2 %3703, %v5805_v20  }
 0xbdf   : > { %v5863_v31 = vpop.permute.xlu2 %2521 }
 0xbe1   : > { %3702 = vset.pattern.permute.xlu1 %v6671_v7 }
 0xbe2   : > { %2893 = vperm.xlu1 %3702, %v5778_v44   ;;  %v2356_v57 = vpop.permute.xlu1 %2355 }
 0xbe4   : > { %2218 = vrot.lane.b32.xlu0 %v2187_v51, %s3811_s26 }
 0xbe5   : > { %3705 = vset.pattern.permute.xlu2 %v6668_v36  ;;  %v2343_v36 = vmul.f32 %v2341_v21, %v5512_v54 }
 0xbe6   : > { %3049 = vperm.xlu2 %3705, %v5805_v20  }
 0xbe8   : > { %v5871_v58 = vpop.permute.xlu2 %2531 }
 0xbea   : > { %3704 = vset.pattern.permute.xlu1 %v6663_v62 }
 0xbeb   : > { %3044 = vperm.xlu1 %3704, %v5805_v20  }
 0xbec   : > { %2222 = vrot.lane.b32.xlu0 %v2192_v16, %s6500_s28 }
 0xbee   : > { %3707 = vset.pattern.permute.xlu2 %v6661_v40  ;;  %v2353_v40 = vmul.f32 %v2351_v8, %v5512_v54  ;;  %v2358_v8 = vmul.f32 %v2356_v57, %v5512_v54  ;;  %v2167_v57 = vmul.f32 %v5812_v43, %v5250_v33 }
 0xbef   : > { %2997 = vperm.xlu2 %3707, %v5816_v42  }
 0xbf1   : > { %v5879_v55 = vpop.permute.xlu2 %2541 }
 0xbf3   : > { %v2507_v51 = vpop.permute.xlu1 %2506  ;;  %3706 = vset.pattern.permute.xlu1 %v6667_v26  ;;  %v2512_v62 = vpop.permute.xlu0 %2511  ;;  %v2157_v26 = vmul.f32 %v5818_v39, %v5250_v33 }
 0xbf4   : > { %2378 = vrot.lane.b32.xlu0 %v2343_v36, %s3801_s24  ;;  %3054 = vperm.xlu1 %3706, %v5805_v20   ;;  %v2509_v39 = vmul.f32 %v2507_v51, %v5521_v49 }
 0xbf7   : > { %3711 = vset.pattern.permute.xlu2 %v6671_v7 }
 0xbf8   : > { %3069 = vperm.xlu2 %3711, %v5805_v20  }
 0xbfa   : > { %v5888_v56 = vpop.permute.xlu2 %2692 }
 0xbfc   : > { %v5890_v16 = vpop.permute.xlu1 %2516  ;;  %2386 = vrot.lane.b32.xlu0 %v2353_v40, %s3800_s23  ;;  %3710 = vset.pattern.permute.xlu1 %v6670_v34  ;;  %v5898_v21 = vpop.permute.xlu0 %2536  ;;  %v2172_v34 = vmul.f32 %v5830_v24, %v5250_v33 }
 0xbfd   : > { %3064 = vperm.xlu1 %3710, %v5805_v20  }
 0xc00   : > { %2194 = vrot.lane.b32.xlu2 %v2157_v26, %s3797_s17 }
 0xc01   : > { %3713 = vset.pattern.permute.xlu2 %v6662_v4 }
 0xc03   : > { %v5902_v36 = vpop.permute.xlu2 %2707 }
 0xc04   : > { %2390 = vrot.lane.b32.xlu0 %v2358_v8, %s3804_s27 }
 0xc05   : > { %v5905_v40 = vpop.permute.xlu1 %2526  ;;  %3712 = vset.pattern.permute.xlu1 %v6662_v4  ;;  %v2698_v26 = vpop.permute.xlu0 %2697  ;;  %v2182_v4 = vmul.f32 %v5844_v48, %v5250_v33  ;;  %v2486_v48 = vmul.f32 %v5595_v29, %v5741_v63 }
 0xc06   : > { %2149 = vperm.xlu1 %3712, %v5646_v11   ;;  %v2514_v11 = vmul.f32 %v2512_v62, %v5521_v49 }
 0xc08   : > { %2206 = vrot.lane.b32.xlu2 %v2172_v34, %s3810_s25 }
 0xc0c   : > { %v5915_v42 = vpop.permute.xlu2 %2858  ;;  %2546 = vrot.lane.b32.xlu0 %v2509_v39, %s3797_s17  ;;  %v2266_v39 = vmul.f32 %v5712_v61, %v5569_v30  ;;  %v2267_v30 = vmul.f32 %v5712_v61, %v5564_v28 }
 0xc0e   : > { %v5920_v8 = vpop.permute.xlu1 %2682  ;;  %2202 = vrot.lane.b32.xlu1 %v2167_v57, %s3801_s24 }
 0xc10   : > { %2214 = vrot.lane.b32.xlu2 %v2182_v4, %s3804_s27  ;;  %v2487_v4 = vmul.f32 %v5573_v2, %v5741_v63  ;;  %v2618_v2 = vmul.f32 %v5751_v38, %v5598_v6  ;;  %v2619_v6 = vmul.f32 %v5751_v38, %v5605_v22  ;;  %v2363_v22 = vmul.f32 %v5846_v45, %v5512_v54 }
 0xc11   : > { %v2443_v45 = vmul.f32 %v5741_v63, %v5587_v23  ;;  %v2524_v23 = vmul.f32 %v5863_v31, %v5521_v49  ;;  %v2838_v31 = vmul.f32 %v5657_v41, %v5782_v47 }
 0xc13   : > { %v5925_v24 = vpop.permute.xlu0 %2873 }
 0xc14   : > { %2550 = vrot.lane.b32.xlu0 %v2514_v11, %s3798_s21  ;;  %v2338_v11 = vmul.f32 %v5822_v60, %v5512_v54  ;;  %v2310_v60 = vmul.f32 %v5580_v19, %v5712_v61 }
 0xc15   : > { %v5928_v43 = vpop.permute.xlu2 %2863 }
 0xc16   : > { %2325 = vperm.xlu1 %3712, %v5667_v50  }
 0xc17   : > { %v5931_v51 = vpop.permute.xlu1 %2687 }
 0xc1c   : > { %2489 = vrot.lane.b32.xlu0 %v2486_v48, %s3801_s24  ;;  %v2331_v34 = vpop.permute.xlu0 %2330 }
 0xc1d   : > { %v2333_v62 = vmul.f32 %v2331_v34, %v5512_v54  ;;  %v5939_v57 = vpop.permute.xlu2 %2959 }
 0xc1e   : > { %2269 = vrot.lane.b32.xlu1 %v2266_v39, %s3801_s24  ;;  %v2348_v39 = vmul.f32 %v5834_v46, %v5512_v54 }
 0xc1f   : > { %2370 = vrot.lane.b32.xlu2 %v2333_v62, %s3797_s17 }
 0xc20   : > { %v5943_v50 = vpop.permute.xlu1 %2702 }
 0xc24   : > { %2493 = vrot.lane.b32.xlu0 %v2487_v4, %s3804_s27  ;;  %v5948_v29 = vpop.permute.xlu0 %3034 }
 0xc25   : > { %v5954_v48 = vpop.permute.xlu2 %2878 }
 0xc26   : > { %2273 = vrot.lane.b32.xlu1 %v2267_v30, %s3804_s27  ;;  %v2311_v30 = vmul.f32 %v5576_v3, %v5712_v61 }
 0xc27   : > { %2374 = vrot.lane.b32.xlu2 %v2338_v11, %s3798_s21  ;;  %v2700_v11 = vmul.f32 %v2698_v26, %v5542_v17  ;;  %v2368_v26 = vmul.f32 %v5856_v12, %v5512_v54  ;;  %v2519_v12 = vmul.f32 %v5890_v16, %v5521_v49  ;;  %v2529_v16 = vmul.f32 %v5905_v40, %v5521_v49 }
 0xc28   : > { %v2539_v40 = vmul.f32 %v5898_v21, %v5521_v49  ;;  %v2685_v21 = vmul.f32 %v5920_v8, %v5542_v17  ;;  %v2690_v8 = vmul.f32 %v5931_v51, %v5542_v17  ;;  %v2662_v51 = vmul.f32 %v5615_v59, %v5751_v38 }
 0xc29   : > { %v5958_v34 = vpop.permute.xlu1 %2712  ;;  %v2663_v59 = vmul.f32 %v5621_v0, %v5751_v38 }
 0xc2c   : > { %2621 = vrot.lane.b32.xlu0 %v2618_v2, %s3801_s24  ;;  %v5965_v28 = vpop.permute.xlu0 %2992 }
 0xc2e   : > { %v5969_v62 = vpop.permute.xlu2 %2888  ;;  %2382 = vrot.lane.b32.xlu1 %v2348_v39, %s3810_s25  ;;  %v2442_v39 = vmul.f32 %v5741_v63, %v5578_v25 }
 0xc2f   : > { %2313 = vrot.lane.b32.xlu2 %v2310_v60, %s3801_s24 }
 0xc32   : > { %v5973_v4 = vpop.permute.xlu1 %2717 }
 0xc34   : > { %2625 = vrot.lane.b32.xlu0 %v2619_v6, %s3804_s27 }
 0xc35   : > { %v5978_v46 = vpop.permute.xlu0 %3059 }
 0xc36   : > { %2501 = vperm.xlu1 %3712, %v5722_v53  }
 0xc37   : > { %v5983_v19 = vpop.permute.xlu2 %3039  ;;  %2317 = vrot.lane.b32.xlu2 %v2311_v30, %s3804_s27  ;;  %v2861_v30 = vmul.f32 %v5915_v42, %v5532_v13  ;;  %v2866_v42 = vmul.f32 %v5928_v43, %v5532_v13  ;;  %v2534_v43 = vmul.f32 %v5871_v58, %v5521_v49 }
 0xc3b   : > { %v5987_v2 = vpop.permute.xlu1 %2868 }
 0xc3c   : > { %2734 = vrot.lane.b32.xlu0 %v2700_v11, %s3810_s25 }
 0xc3e   : > { %2394 = vrot.lane.b32.xlu1 %v2363_v22, %s3811_s26  ;;  %v5995_v3 = vpop.permute.xlu0 %2944 }
 0xc3f   : > { %2445 = vrot.lane.b32.xlu2 %v2442_v39, %s3801_s24 }
 0xc40   : > { %v5998_v53 = vpop.permute.xlu2 %3049 }
 0xc43   : > { %v2964_v60 = vpop.permute.xlu1 %2963 }
 0xc44   : > { %2853 = vperm.xlu0 %3709, %v5778_v44  }
 0xc46   : > { %2398 = vrot.lane.b32.xlu1 %v2368_v26, %s6500_s28  ;;  %v6006_v25 = vpop.permute.xlu0 %2198 }
 0xc47   : > { %2449 = vrot.lane.b32.xlu2 %v2443_v45, %s3804_s27 }
 0xc49   : > { %v6009_v6 = vpop.permute.xlu2 %2997 }
 0xc4b   : > { %v6013_v11 = vpop.permute.xlu1 %2883 }
 0xc4c   : > { %2898 = vrot.lane.b32.xlu0 %v2861_v30, %s3797_s17  ;;  %v2947_v30 = vmul.f32 %v5995_v3, %v5655_v32 }
 0xc4d   : > { %3714 = vset.pattern.permute.xlu0 %v6671_v7 }
 0xc4e   : > { %2554 = vrot.lane.b32.xlu1 %v2519_v12, %s3801_s24  ;;  %v6022_v44 = vpop.permute.xlu0 %2210  ;;  %v2966_v41 = vsel %vm394_vm1, %v2947_v30, %v5939_v57 }
 0xc4f   : > { %2558 = vrot.lane.b32.xlu2 %v2524_v23, %s3810_s25  ;;  %v2967_v58 = vsel %vm396_vm2, %v2966_v41, %v2964_v60  ;;  %v2544_v23 = vmul.f32 %v5879_v55, %v5521_v49  ;;  %v2695_v55 = vmul.f32 %v5888_v56, %v5542_v17  ;;  %v2705_v56 = vmul.f32 %v5943_v50, %v5542_v17 }
 0xc52   : > { %v6027_v22 = vpop.permute.xlu2 %3069 }
 0xc54   : > { %v6031_v39 = vpop.permute.xlu1 %2893  ;;  %2902 = vrot.lane.b32.xlu0 %v2866_v42, %s3798_s21  ;;  %v6059_v42 = vmul.f32 0.5, %v2967_v58 }
 0xc56   : > { %2562 = vrot.lane.b32.xlu1 %v2529_v16, %s3800_s23  ;;  %v6035_v7 = vpop.permute.xlu0 %2218 }
 0xc57   : > { %2677 = vperm.xlu2 %3713, %v5755_v35   ;;  %v2839_v35 = vmul.f32 %v5663_v5, %v5782_v47  ;;  %v2970_v5 = vmul.f32 %v6059_v42, %v5753_v10  ;;  %v2971_v10 = vmul.f32 %v6059_v42, %v5841_v9 }
 0xc5a   : > { %v2195_v26 = vpop.permute.xlu2 %2194 }
 0xc5c   : > { %2841 = vrot.lane.b32.xlu0 %v2838_v31, %s3801_s24 }
 0xc5d   : > { %v3045_v45 = vpop.permute.xlu1 %3044 }
 0xc5e   : > { %2566 = vrot.lane.b32.xlu1 %v2534_v43, %s3804_s27  ;;  %v2223_v12 = vpop.permute.xlu0 %2222  ;;  %v3047_v9 = vmul.f32 %v3045_v45, %v5655_v32 }
 0xc5f   : > { %2570 = vrot.lane.b32.xlu2 %v2539_v40, %s3811_s26 }
 0xc62   : > { %v2207_v57 = vpop.permute.xlu2 %2206 }
 0xc64   : > { %2845 = vrot.lane.b32.xlu0 %v2839_v35, %s3804_s27 }
 0xc66   : > { %2722 = vrot.lane.b32.xlu1 %v2685_v21, %s3797_s17  ;;  %v3055_v16 = vpop.permute.xlu1 %3054  ;;  %v2379_v31 = vpop.permute.xlu0 %2378 }
 0xc67   : > { %2574 = vrot.lane.b32.xlu2 %v2544_v23, %s6500_s28  ;;  %v2710_v23 = vmul.f32 %v5902_v36, %v5542_v17  ;;  %v2715_v36 = vmul.f32 %v5958_v34, %v5542_v17 }
 0xc6a   : > { %v2215_v40 = vpop.permute.xlu2 %2214 }
 0xc6c   : > { %2973 = vrot.lane.b32.xlu0 %v2970_v5, %s3801_s24 }
 0xc6e   : > { %2726 = vrot.lane.b32.xlu1 %v2690_v8, %s3798_s21  ;;  %v6071_v60 = vpop.permute.xlu0 %2386  ;;  %v3057_v8 = vmul.f32 %v3055_v16, %v5655_v32 }
 0xc6f   : > { %v6073_v43 = vpop.permute.xlu1 %3064  ;;  %2730 = vrot.lane.b32.xlu2 %v2695_v55, %s3801_s24 }
 0xc74   : > { %2977 = vrot.lane.b32.xlu0 %v2971_v10, %s3804_s27  ;;  %v2794_v10 = vmul.f32 %v5782_v47, %v5628_v37 }
 0xc76   : > { %2665 = vrot.lane.b32.xlu1 %v2662_v51, %s3801_s24  ;;  %v6084_v30 = vpop.permute.xlu0 %2390 }
 0xc77   : > { %2738 = vrot.lane.b32.xlu2 %v2705_v56, %s3800_s23 }
 0xc78   : > { %v2150_v41 = vpop.permute.xlu1 %2149 }
 0xc79   : > { %v2152_v35 = vmul.f32 %v2150_v41, %v5250_v33  ;;  %v2371_v58 = vpop.permute.xlu2 %2370 }
 0xc7b   : > { %v2225_v21 = vsel %vm394_vm1, %v2152_v35, %v2195_v26 }
 0xc7c   : > { %3082 = vrot.lane.b32.xlu0 %v3047_v9, %s3801_s24  ;;  %v2226_v50 = vsel %vm396_vm2, %v2225_v21, %v6006_v25 }
 0xc7e   : > { %2669 = vrot.lane.b32.xlu1 %v2663_v59, %s3804_s27  ;;  %v6098_v5 = vpop.permute.xlu0 %2546 }
 0xc7f   : > { %2742 = vrot.lane.b32.xlu2 %v2710_v23, %s3804_s27  ;;  %v2876_v23 = vmul.f32 %v5925_v24, %v5532_v13  ;;  %v2881_v24 = vmul.f32 %v5954_v48, %v5532_v13 }
 0xc80   : > { %v2203_v33 = vpop.permute.xlu1 %2202 }
 0xc81   : > { %v2227_v26 = vsel %vm410_vm3, %v2226_v50, %v2203_v33  ;;  %v2375_v45 = vpop.permute.xlu2 %2374 }
 0xc82   : > { %v2228_v0 = vsel %vm459_vm4, %v2227_v26, %v2207_v57 }
 0xc83   : > { %v2229_v25 = vsel %vm461_vm6, %v2228_v0, %v6022_v44  ;;  %v2309_v44 = vmul.f32 %v5706_v52, %v5712_v61  ;;  %v2485_v52 = vmul.f32 %v5729_v15, %v5741_v63  ;;  %v3072_v15 = vmul.f32 %v6027_v22, %v5655_v32 }
 0xc84   : > { %v2230_v55 = vsel %vm412_vm5, %v2229_v25, %v2215_v40  ;;  %3090 = vrot.lane.b32.xlu0 %v3057_v8, %s3800_s23  ;;  %v2441_v22 = vmul.f32 %v5741_v63, %v5708_v1 }
 0xc85   : > { %v2231_v51 = vsel %vm464_vm7, %v2230_v55, %v6035_v7  ;;  %v3062_v7 = vmul.f32 %v5978_v46, %v5655_v32  ;;  %v6677_v55 = vld [vmem:[#allocation9_spill] sm:$0xff] }
 0xc86   : > { %2746 = vrot.lane.b32.xlu1 %v2715_v36, %s3811_s26  ;;  %v6115_v16 = vpop.permute.xlu0 %2550  ;;  %v2232_v57 = vsel %vm466_vm8, %v2231_v51, %v2223_v12  ;;  %v2720_v12 = vmul.f32 %v5973_v4, %v5542_v17  ;;  %v2265_v4 = vmul.f32 %v5712_v61, %v5697_v14 }
 0xc87   : > { %2797 = vrot.lane.b32.xlu2 %v2794_v10, %s3801_s24  ;;  %v2233_v34 = vadd.f32 %v2232_v57, %v5539_v18 }
 0xc88   : > { %v2326_v40 = vpop.permute.xlu1 %2325 }
 0xc89   : > { %v2328_v56 = vmul.f32 %v2326_v40, %v5512_v54  ;;  %v2314_v37 = vpop.permute.xlu2 %2313  ;;  %v2795_v54 = vmul.f32 %v5782_v47, %v5624_v27  ;;  %v2891_v40 = vmul.f32 %v5969_v62, %v5532_v13 }
 0xc8a   : > { %v2320_v41 = vsel %vm410_vm3, %v2309_v44, %v2314_v37 }
 0xc8b   : > { %v2401_v35 = vsel %vm394_vm1, %v2328_v56, %v2371_v58 }
 0xc8c   : > { %3094 = vrot.lane.b32.xlu0 %v3062_v7, %s3804_s27  ;;  %v2402_v18 = vsel %vm396_vm2, %v2401_v35, %v2375_v45  ;;  %v2896_v35 = vmul.f32 %v6031_v39, %v5532_v13 }
 0xc8d   : > { %v2403_v9 = vsel %vm410_vm3, %v2402_v18, %v2379_v31  ;;  %v2871_v31 = vmul.f32 %v5987_v2, %v5532_v13 }
 0xc8e   : > { %2750 = vrot.lane.b32.xlu1 %v2720_v12, %s6500_s28  ;;  %v2490_v46 = vpop.permute.xlu0 %2489 }
 0xc8f   : > { %v2496_v58 = vsel %vm410_vm3, %v2485_v52, %v2490_v46  ;;  %2801 = vrot.lane.b32.xlu2 %v2795_v54, %s3804_s27  ;;  %v3052_v46 = vmul.f32 %v5998_v53, %v5655_v32  ;;  %v3015_v53 = vmul.f32 %v6009_v6, %v6059_v42 }
 0xc90   : > { %v2270_v21 = vpop.permute.xlu1 %2269 }
 0xc91   : > { %v2276_v59 = vsel %vm410_vm3, %v2265_v4, %v2270_v21  ;;  %v2318_v50 = vpop.permute.xlu2 %2317  ;;  %v3014_v4 = vmul.f32 %v5965_v28, %v6059_v42 }
 0xc92   : > { %v2321_v27 = vsel %vm412_vm5, %v2320_v41, %v2318_v50 }
 0xc94   : > { %3102 = vrot.lane.b32.xlu0 %v3072_v15, %s6500_s28 }
 0xc96   : > { %2906 = vrot.lane.b32.xlu1 %v2871_v31, %s3801_s24  ;;  %v2494_v14 = vpop.permute.xlu0 %2493 }
 0xc97   : > { %v2497_v61 = vsel %vm412_vm5, %v2496_v58, %v2494_v14  ;;  %2910 = vrot.lane.b32.xlu2 %v2876_v23, %s3810_s25 }
 0xc98   : > { %v2274_v33 = vpop.permute.xlu1 %2273 }
 0xc99   : > { %v2277_v26 = vsel %vm412_vm5, %v2276_v59, %v2274_v33  ;;  %v2446_v45 = vpop.permute.xlu2 %2445  ;;  %v3000_v33 = vmul.f32 %v6009_v6, %v5655_v32 }
 0xc9a   : > { %v2278_v2 = vmul.f32 0.33333334, %v2277_v26  ;;  %v2452_v8 = vsel %vm410_vm3, %v2441_v22, %v2446_v45  ;;  %v3067_v22 = vmul.f32 %v6073_v43, %v5655_v32 }
 0xc9c   : > { %v2308_v0 = vadd.f32 %v2278_v2, %v2233_v34  ;;  %v2886_v34 = vmul.f32 %v6013_v11, %v5532_v13  ;;  %v3037_v11 = vmul.f32 %v5948_v29, %v5655_v32  ;;  %v6678_v29 = vld [vmem:[#allocation45_spill] sm:$0xff] }
 0xc9e   : > { %2914 = vrot.lane.b32.xlu1 %v2881_v24, %s3800_s23  ;;  %v2622_v25 = vpop.permute.xlu0 %2621  ;;  %v2322_v36 = vadd.f32 %v2321_v27, %v2308_v0  ;;  %v2995_v27 = vmul.f32 %v5965_v28, %v5655_v32  ;;  %s3375_s23 = scalar_lea.hbm %s6404_s9, %s3896_s13 }
 0xc9f   : > { %v2628_v10 = vsel %vm410_vm3, %v6677_v55, %v2622_v25  ;;  %3029 = vperm.xlu2 %3713, %v5805_v20  }
 0xca0   : > { %v2383_v1 = vpop.permute.xlu1 %2382 }
 0xca1   : > { %v2404_v63 = vsel %vm459_vm4, %v2403_v9, %v2383_v1  ;;  %v2450_v51 = vpop.permute.xlu2 %2449 }
 0xca2   : > { %v2405_v57 = vsel %vm461_vm6, %v2404_v63, %v6071_v60  ;;  %v2453_v44 = vsel %vm412_vm5, %v2452_v8, %v2450_v51 }
 0xca3   : > { %v2406_v48 = vsel %vm412_vm5, %v2405_v57, %v6084_v30  ;;  %v2454_v39 = vmul.f32 0.33333334, %v2453_v44 }
 0xca6   : > { %2918 = vrot.lane.b32.xlu1 %v2886_v34, %s3804_s27  ;;  %v2626_v56 = vpop.permute.xlu0 %2625 }
 0xca7   : > { %v2629_v37 = vsel %vm412_vm5, %v2628_v10, %v2626_v56  ;;  %2922 = vrot.lane.b32.xlu2 %v2891_v40, %s3811_s26 }
 0xca8   : > { %v2502_v7 = vpop.permute.xlu1 %2501  ;;  %v2630_v0 = vmul.f32 0.33333334, %v2629_v37 }
 0xca9   : > { %v2504_v60 = vmul.f32 %v2502_v7, %v5521_v49  ;;  %v2559_v41 = vpop.permute.xlu2 %2558  ;;  %v6679_v7 = vld [vmem:[#allocation35_spill] sm:$0xff] }
 0xcab   : > { %v2577_v30 = vsel %vm394_vm1, %v2504_v60, %v6098_v5  ;;  %v3042_v5 = vmul.f32 %v5983_v19, %v5655_v32  ;;  %v2661_v60 = vmul.f32 %v6679_v7, %v5751_v38 }
 0xcac   : > { %v2578_v62 = vsel %vm396_vm2, %v2577_v30, %v6115_v16 }
 0xcae   : > { %3074 = vrot.lane.b32.xlu1 %v3037_v11, %s3797_s17  ;;  %v2735_v31 = vpop.permute.xlu0 %2734 }
 0xcaf   : > { %2926 = vrot.lane.b32.xlu2 %v2896_v35, %s6500_s28 }
 0xcb0   : > { %v2395_v12 = vpop.permute.xlu1 %2394 }
 0xcb1   : > { %v2407_v49 = vsel %vm464_vm7, %v2406_v48, %v2395_v12  ;;  %v2678_v18 = vpop.permute.xlu2 %2677 }
 0xcb2   : > { %v2680_v6 = vmul.f32 %v2678_v18, %v5542_v17 }
 0xcb6   : > { %3078 = vrot.lane.b32.xlu1 %v3042_v5, %s3798_s21  ;;  %v2854_v28 = vpop.permute.xlu0 %2853 }
 0xcb7   : > { %2987 = vperm.xlu2 %3713, %v6678_v29  }
 0xcb8   : > { %v2399_v52 = vpop.permute.xlu1 %2398 }
 0xcb9   : > { %v2408_v16 = vsel %vm466_vm8, %v2407_v49, %v2399_v52  ;;  %v2571_v54 = vpop.permute.xlu2 %2570  ;;  %v6680_v52 = vld [vmem:[#allocation13_spill] sm:$0xff] }
 0xcba   : > { %v2409_v9 = vadd.f32 %v2408_v16, %v2322_v36 }
 0xcbc   : > { %v2484_v58 = vadd.f32 %v2454_v39, %v2409_v9 }
 0xcbe   : > { %v2498_v21 = vadd.f32 %v2497_v61, %v2484_v58  ;;  %3086 = vrot.lane.b32.xlu1 %v3052_v46, %s3810_s25  ;;  %v2899_v1 = vpop.permute.xlu0 %2898  ;;  %v6681_v58 = vld [vmem:[#allocation28_spill] sm:$0xff] }
 0xcbf   : > { %3017 = vrot.lane.b32.xlu2 %v3014_v4, %s3801_s24  ;;  %v2837_v4 = vmul.f32 %v6681_v58, %v5782_v47  ;;  %s322_s24 = scalar_lea.vmem [#allocation2], %s321_s16 }
 0xcc0   : > { %v2555_v19 = vpop.permute.xlu1 %2554 }
 0xcc1   : > { %v2579_v59 = vsel %vm410_vm3, %v2578_v62, %v2555_v19  ;;  %v2575_v50 = vpop.permute.xlu2 %2574 }
 0xcc2   : > { %v2580_v15 = vsel %vm459_vm4, %v2579_v59, %v2559_v41 }
 0xcc6   : > { %3002 = vrot.lane.b32.xlu1 %v2995_v27, %s3797_s17  ;;  %v2903_v34 = vpop.permute.xlu0 %2902 }
 0xcc7   : > { %3021 = vrot.lane.b32.xlu2 %v3015_v53, %s3804_s27  ;;  %s3379_s27 = sshll.u32 %s3375_s23, 4  ;;  %s3380_s27 = int_to_ptr.hbm [resolvable:$true] %s3379_s27 }
 0xcc8   : > { %v2563_v23 = vpop.permute.xlu1 %2562  ;;  %s3741_s28 = sshra.s32 %s3380_s27, 4  ;;  %s3742_s28 = int_to_ptr.hbm [resolvable:$true] %s3741_s28 }
 0xcc9   : > { %v2581_v14 = vsel %vm461_vm6, %v2580_v15, %v2563_v23  ;;  %v2731_v61 = vpop.permute.xlu2 %2730  ;;  %s3743_s29 = scalar_lea.hbm %s3742_s28, 1  ;;  %p3748_p0 = scmp.lt.s32.totalorder %s3742_s28, %s6404_s9 }
 0xcca   : > { %p3744_p11 = scmp.ne.s32.totalorder %s3742_s28, %s3743_s29  ;;  %p3749_p1 = scmp.lt.s32.totalorder %s3747_s14, %s3743_s29 }
 0xccc   : > { %p3745_p12 = pnand %p3744_p11, %p3913_p5  ;;  %p3750_p2 = por %p3749_p1, %p3748_p0 }
 0xcce   : > { %3006 = vrot.lane.b32.xlu1 %v3000_v33, %s3798_s21  ;;  %v2842_v41 = vpop.permute.xlu0 %2841  ;;  %p3746_p13 = pneg %p3745_p12 }
 0xccf   : > { %3098 = vrot.lane.b32.xlu2 %v3067_v22, %s3811_s26  ;;  %s3377_s26 = sshll.u32 %s322_s24, 4  ;;  %s3378_s26 = int_to_ptr.vmem [resolvable:$true] %s3377_s26 }
 0xcd0   : > { %v2567_v26 = vpop.permute.xlu1 %2566  ;;  %p3751_p3 = pnand %p3750_p2, %p3746_p13 }
 0xcd1   : > { %v2582_v45 = vsel %vm412_vm5, %v2581_v14, %v2567_v26  ;;  %v2739_v2 = vpop.permute.xlu2 %2738 }
 0xcd2   : > { %v2583_v8 = vsel %vm464_vm7, %v2582_v45, %v2571_v54 }
 0xcd3   : > { %v2584_v24 = vsel %vm466_vm8, %v2583_v8, %v2575_v50  ;;  %v2848_v50 = vsel %vm410_vm3, %v2837_v4, %v2842_v41  ;;  %v3129_v4 = vld [vmem:[%s6398_s3 + $0x20] sm:$0x7f] }
 0xcd4   : > { %v2585_v25 = vadd.f32 %v2584_v24, %v2498_v21  ;;  %3439 = vmatpush.msk.msra.mxu0 %vm3134_vm9, %v3129_v4 }
 0xcd6   : > { %v2660_v36 = vadd.f32 %v2630_v0, %v2585_v25  ;;  %v2846_v49 = vpop.permute.xlu0 %2845 }
 0xcd7   : > { %v2849_v27 = vsel %vm412_vm5, %v2848_v50, %v2846_v49  ;;  %v3444_v50 = vld [vmem:[%s6398_s3 + $0x40] sm:$0xff] }
 0xcd8   : > { %v2723_v55 = vpop.permute.xlu1 %2722 }
 0xcd9   : > { %v2753_v43 = vsel %vm394_vm1, %v2680_v6, %v2723_v55  ;;  %v2743_v10 = vpop.permute.xlu2 %2742 }
 0xcde   : > { %v2974_v21 = vpop.permute.xlu0 %2973 }
 0xce0   : > { %v2727_v63 = vpop.permute.xlu1 %2726 }
 0xce1   : > { %v2754_v51 = vsel %vm396_vm2, %v2753_v43, %v2727_v63  ;;  %v2798_v57 = vpop.permute.xlu2 %2797 }
 0xce2   : > { %v2755_v44 = vsel %vm410_vm3, %v2754_v51, %v2731_v61  ;;  %v2804_v16 = vsel %vm410_vm3, %v6680_v52, %v2798_v57  ;;  %v2856_v61 = vmul.f32 %v2854_v28, %v5532_v13 }
 0xce3   : > { %v2756_v48 = vsel %vm459_vm4, %v2755_v44, %v2735_v31 }
 0xce4   : > { %v2757_v40 = vsel %vm461_vm6, %v2756_v48, %v2739_v2  ;;  %v2929_v22 = vsel %vm394_vm1, %v2856_v61, %v2899_v1  ;;  %v2969_v2 = vmul.f32 %v6059_v42, %v5995_v3  ;;  %v3125_v61 = vld [vmem:[%s6398_s3] sm:$0xff] }
 0xce5   : > { %v2758_v56 = vsel %vm412_vm5, %v2757_v40, %v2743_v10  ;;  %v2930_v26 = vsel %vm396_vm2, %v2929_v22, %v2903_v34  ;;  %v3449_v22 = vld [vmem:[%s6398_s3 + $0x58] sm:$0xff] }
 0xce6   : > { %v2978_v14 = vpop.permute.xlu0 %2977  ;;  %v2980_v0 = vsel %vm410_vm3, %v2969_v2, %v2974_v21  ;;  %v3128_v21 = vld [vmem:[%s6398_s3 + $0x18] sm:$0xff] }
 0xce7   : > { %v2981_v13 = vsel %vm412_vm5, %v2980_v0, %v2978_v14  ;;  %3150 = vmatpush.msra.mxu0 %v3128_v21  ;;  %v3457_v14 = vld [vmem:[%s6398_s3 + $0x88] sm:$0xff]  ;;  %v3455_v2 = vld [vmem:[%s6398_s3 + $0x78] sm:$0xff] }
 0xce8   : > { %v2666_v37 = vpop.permute.xlu1 %2665  ;;  %v2982_v43 = vmul.f32 0.33333334, %v2981_v13 }
 0xce9   : > { %v2802_v17 = vpop.permute.xlu2 %2801  ;;  %v2672_v30 = vsel %vm410_vm3, %v2661_v60, %v2666_v37 }
 0xcea   : > { %v2805_v54 = vsel %vm412_vm5, %v2804_v16, %v2802_v17 }
 0xceb   : > { %v2806_v19 = vmul.f32 0.33333334, %v2805_v54 }
 0xcee   : > { %v3083_v8 = vpop.permute.xlu0 %3082 }
 0xcf0   : > { %v2670_v11 = vpop.permute.xlu1 %2669 }
 0xcf1   : > { %v2673_v62 = vsel %vm412_vm5, %v2672_v30, %v2670_v11  ;;  %v2911_v35 = vpop.permute.xlu2 %2910 }
 0xcf2   : > { %v2674_v12 = vadd.f32 %v2673_v62, %v2660_v36 }
 0xcf6   : > { %v3091_v63 = vpop.permute.xlu0 %3090 }
 0xcf8   : > { %v2747_v18 = vpop.permute.xlu1 %2746 }
 0xcf9   : > { %v3030_v5 = vpop.permute.xlu2 %3029  ;;  %v2759_v39 = vsel %vm464_vm7, %v2758_v56, %v2747_v18 }
 0xcfa   : > { %v3032_v48 = vmul.f32 %v3030_v5, %v5655_v32 }
 0xcfe   : > { %v3095_v34 = vpop.permute.xlu0 %3094 }
 0xd00   : > { %v2751_v9 = vpop.permute.xlu1 %2750 }
 0xd01   : > { %v2760_v38 = vsel %vm466_vm8, %v2759_v39, %v2751_v9  ;;  %v2923_v46 = vpop.permute.xlu2 %2922 }
 0xd02   : > { %v2761_v59 = vadd.f32 %v2760_v38, %v2674_v12  ;;  %v2984_v38 = vadd.f32 %v6059_v42, %v5805_v20  ;;  %v3452_v20 = vld [vmem:[%s6398_s3 + $0x70] sm:$0x7f] }
 0xd03   : > { %3453 = vmatpush.msk.msra.mxu2 %vm3134_vm9, %v3452_v20 }
 0xd04   : > { %v2836_v15 = vadd.f32 %v2806_v19, %v2761_v59  ;;  %v3445_v19 = vld [vmem:[%s6398_s3 + $0x48] sm:$0x7f]  ;;  %v3127_v59 = vld [vmem:[%s6398_s3 + $0x10] sm:$0xff] }
 0xd05   : > { %3446 = vmatpush.msk.msra.mxu1 %vm3134_vm9, %v3445_v19  ;;  %3151 = vmatpush.msra.mxu0 %v3127_v59 }
 0xd06   : > { %v2850_v53 = vadd.f32 %v2849_v27, %v2836_v15  ;;  %v3103_v12 = vpop.permute.xlu0 %3102  ;;  %v3451_v15 = vld [vmem:[%s6398_s3 + $0x68] sm:$0xff]  ;;  %v3458_v27 = vld [vmem:[%s6398_s3 + $0x90] sm:$0xff] }
 0xd07   : > { %3183 = vmatpush.msra.mxu1 %v3444_v50  ;;  %3216 = vmatpush.msra.mxu2 %v3451_v15 }
 0xd08   : > { %v2907_v31 = vpop.permute.xlu1 %2906 }
 0xd09   : > { %v2927_v23 = vpop.permute.xlu2 %2926  ;;  %v2931_v47 = vsel %vm410_vm3, %v2930_v26, %v2907_v31  ;;  %v3450_v31 = vld [vmem:[%s6398_s3 + $0x60] sm:$0xff] }
 0xd0a   : > { %v2932_v24 = vsel %vm459_vm4, %v2931_v47, %v2911_v35  ;;  %3217 = vmatpush.msra.mxu2 %v3450_v31  ;;  %v3456_v26 = vld [vmem:[%s6398_s3 + $0x80] sm:$0xff]  ;;  %v3441_v47 = vld [vmem:[%s6398_s3 + $0x28] sm:$0xff] }
 0xd0b   : > { %v3327_v31 = vld [vmem:[%s6403_s8] sm:$0x1] }
 0xd0c   : > { %3218 = vmatpush.msra.mxu2 %v3449_v22 }
 0xd10   : > { %v2915_v33 = vpop.permute.xlu1 %2914 }
 0xd11   : > { %v2988_v45 = vpop.permute.xlu2 %2987  ;;  %v2933_v25 = vsel %vm461_vm6, %v2932_v24, %v2915_v33  ;;  %v3442_v33 = vld [vmem:[%s6398_s3 + $0x30] sm:$0xff] }
 0xd12   : > { %v3013_v37 = vmul.f32 %v2988_v45, %v6059_v42  ;;  %v2990_v54 = vmul.f32 %v2988_v45, %v5655_v32  ;;  %v3459_v42 = vld [vmem:[%s6398_s3 + $0x98] sm:$0x7f]  ;;  %v3448_v45 = vld [vmem:[%s6398_s3 + $0x50] sm:$0xff] }
 0xd13   : > { %3460 = vmatpush.msk.msra.mxu3 %vm3134_vm9, %v3459_v42  ;;  %3219 = vmatpush.msra.mxu2 %v3448_v45 }
 0xd15   : > { %3249 = vmatpush.msra.mxu3 %v3458_v27 }
 0xd17   : > { %3250 = vmatpush.msra.mxu3 %v3457_v14 }
 0xd18   : > { %v2919_v36 = vpop.permute.xlu1 %2918 }
 0xd19   : > { %v2934_v28 = vsel %vm412_vm5, %v2933_v25, %v2919_v36  ;;  %v3018_v3 = vpop.permute.xlu2 %3017  ;;  %3251 = vmatpush.msra.mxu3 %v3456_v26 }
 0xd1a   : > { %v2935_v6 = vsel %vm464_vm7, %v2934_v28, %v2923_v46  ;;  %v3024_v17 = vsel %vm410_vm3, %v3013_v37, %v3018_v3 }
 0xd1b   : > { %v2936_v55 = vsel %vm466_vm8, %v2935_v6, %v2927_v23  ;;  %v3126_v23 = vld [vmem:[%s6398_s3 + $0x8] sm:$0xff]  ;;  %3252 = vmatpush.msra.mxu3 %v3455_v2 }
 0xd1c   : > { %v2937_v10 = vadd.f32 %v2936_v55, %v2850_v53  ;;  %v3443_v53 = vld [vmem:[%s6398_s3 + $0x38] sm:$0xff]  ;;  %3152 = vmatpush.msra.mxu0 %v3126_v23 }
 0xd1d   : > { %3184 = vmatpush.msra.mxu1 %v3443_v53  ;;  %v3280_v55 = vld [vmem:[%s6400_s5 + $0x18] sm:$0xff] }
 0xd1e   : > { %v3012_v1 = vadd.f32 %v2982_v43, %v2937_v10  ;;  %3153 = vmatpush.msra.mxu0 %v3125_v61  ;;  %v3277_v43 = vld [vmem:[%s6400_s5] sm:$0xff] }
 0xd1f   : > { %3185 = vmatpush.msra.mxu1 %v3442_v33  ;;  %v3124_v10 = vld [vmem:[%s6399_s4] sm:$0x1] }
 0xd20   : > { %v3075_v51 = vpop.permute.xlu1 %3074  ;;  %3298 = vmatpush.msrb.mxu0 %v3280_v55 }
 0xd21   : > { %v3022_v44 = vpop.permute.xlu2 %3021  ;;  %v3105_v40 = vsel %vm394_vm1, %v3032_v48, %v3075_v51  ;;  %3186 = vmatpush.msra.mxu1 %v3441_v47 }
 0xd22   : > { %v3025_v41 = vsel %vm412_vm5, %v3024_v17, %v3022_v44 }
 0xd23   : > { %v3026_v49 = vadd.f32 %v3025_v41, %v3012_v1 }
 0xd28   : > { %v3079_v57 = vpop.permute.xlu1 %3078 }
 0xd29   : > { %v3106_v56 = vsel %vm396_vm2, %v3105_v40, %v3079_v57  ;;  %v3099_v62 = vpop.permute.xlu2 %3098 }
 0xd2a   : > { %v3107_v60 = vsel %vm410_vm3, %v3106_v56, %v3083_v8  ;;  %v2983_v8 = vadd.f32 %v5655_v32, %v6678_v29  ;;  %v3279_v32 = vld [vmem:[%s6400_s5 + $0x10] sm:$0xff]  ;;  %v3278_v29 = vld [vmem:[%s6400_s5 + $0x8] sm:$0xff]  ;;  %vm3328_vm3 = vcmask 130048  }
 0xd2b   : > { %3299 = vmatpush.msrb.mxu0 %v3279_v32 }
 0xd2d   : > { %3300 = vmatpush.msrb.mxu0 %v3278_v29 }
 0xd2f   : > { %3301 = vmatpush.msrb.mxu0 %v3277_v43 }
 0xd30   : > { %v3087_v7 = vpop.permute.xlu1 %3086 }
 0xd31   : > { %v3108_v30 = vsel %vm459_vm4, %v3107_v60, %v3087_v7 }
 0xd32   : > { %v3109_v11 = vsel %vm461_vm6, %v3108_v30, %v3091_v63 }
 0xd33   : > { %v3110_v35 = vsel %vm412_vm5, %v3109_v11, %v3095_v34  ;;  %vm3352_vm5 = vcmask 32768  }
 0xd34   : > { %v3111_v18 = vsel %vm464_vm7, %v3110_v35, %v3099_v62 }
 0xd35   : > { %v3112_v5 = vsel %vm466_vm8, %v3111_v18, %v3103_v12 }
 0xd36   : > { %v3113_v52 = vadd.f32 %v3112_v5, %v3026_v49  ;;  %v3326_v5 = vld [vmem:[%s6402_s7 + $0x8] sm:$0xff] }
 0xd37   : > { %3346 = vmatpush.msrb.mxu1 %v3326_v5 }
 0xd38   : > { %v3003_v16 = vpop.permute.xlu1 %3002  ;;  %3119 = vrot.lane.b32.xlu2 %v3113_v52, %s3810_s25  ;;  %v3325_v52 = vld [vmem:[%s6402_s7] sm:$0xff]  ;;  %s3367_s25 = scalar_lea.sflag [#allocation3], %s321_s16 }
 0xd39   : > { %v3009_v39 = vsel %vm394_vm1, %v2990_v54, %v3003_v16  ;;  %3347 = vmatpush.msrb.mxu1 %v3325_v52  ;;  %v3281_v16 = vld [vmem:[%s6401_s6] sm:$0x1] }
 0xd40   : > { %v3007_v9 = vpop.permute.xlu1 %3006 }
 0xd41   : > { %v3010_v46 = vsel %vm396_vm2, %v3009_v39, %v3007_v9 }
 0xd42   : > { %v3011_v58 = vadd.f32 %v3010_v46, %v2984_v38 }
 0xd44   : > { %3115 = vrot.lane.b32.xlu1 %v3011_v58, %s3797_s17 }
 0xd92   : > { %v3120_v0 = vpop.permute.xlu2 %3119 }
 0xdb6   : > { %v3116_v24 = vpop.permute.xlu1 %3115 }
 0xdb7   : > { %v3122_v25 = vsel %vm394_vm1, %v2983_v8, %v3116_v24 }
 0xdb8   : > { %v3123_v36 = vsel %vm459_vm4, %v3122_v25, %v3120_v0 }
 0xdb9   : > { %3440 = vmatmul.msk.f32.vlgmr.msra.gmra.mxu0 %vm3130_vm10, %v3123_v36  ;;  %v3165_v13 = vrot.slane %v3123_v36, 1  ;;  %v3198_v28 = vrot.slane %v3123_v36, 2  ;;  %v3231_v6 = vrot.slane %v3123_v36, 3 }
 0xdbb   : > { %3447 = vmatmul.msk.f32.vlgmr.msra.gmra.mxu1 %vm3130_vm10, %v3165_v13  ;;  %3454 = vmatmul.msk.f32.vlgmr.msra.gmra.mxu2 %vm3130_vm10, %v3198_v28 }
 0xdbc   : > { %3461 = vmatmul.msk.f32.vlgmr.msra.gmra.mxu3 %vm3130_vm10, %v3231_v6 }
 0xe36   : > { %v3155_v1 = vpop.f32.mrf.mxu0 }
 0xe37   : > { %v3158_v3 = vadd.f32 %v3155_v1, %v3124_v10 }
 0xe38   : > { %v3188_v63 = vpop.f32.mrf.mxu1 }
 0xe39   : > { %v3191_v51 = vadd.f32 %v3188_v63, %v3158_v3 }
 0xe3e   : > { %v3221_v57 = vpop.f32.mrf.mxu2 }
 0xe3f   : > { %v3224_v44 = vadd.f32 %v3221_v57, %v3191_v51  ;;  %v3254_v48 = vpop.f32.mrf.mxu3 }
 0xe41   : > { %v3257_v34 = vadd.f32 %v3254_v48, %v3224_v44 }
 0xe43   : > { %v3258_v40 = vsub.f32 0.0, %v3257_v34 }
 0xe45   : > { %v3259_v56 = vmul.f32 1.442695, %v3258_v40 }
 0xe47   : > { %3715 = vpow2.f32 %v3259_v56 }
 0xe4d   : > { %v3716_v37 = vpop.eup %3715 }
 0xe4e   : > { %v3261_v17 = vadd.f32 1.0, %v3716_v37 }
 0xe50   : > { %3717 = vrcp.f32 %v3261_v17  ;;  %v3273_v30 = vand.u32 2147483648, %v3261_v17  ;;  %v3271_v62 = vand.u32 2147483647, %v3261_v17  ;;  %vm3267_vm12 = vweird.f32 %v3261_v17 }
 0xe52   : > { %v3274_v12 = vor.u32 1.1754944e-38, %v3273_v30  ;;  %vm3272_vm15 = vcmp.eq.f32.partialorder %v3271_v62, 8.507059e+37 }
 0xe56   : > { %v3718_v7 = vpop.eup %3717 }
 0xe57   : > { %v3263_v60 = vmul.f32 %v3718_v7, %v3261_v17  ;;  %vm3268_vm11 = vweird.f32 %v3718_v7 }
 0xe58   : > { %vm3269_vm13 = vmor %vm3267_vm12, %vm3268_vm11 }
 0xe59   : > { %v3264_v41 = vsub.f32 1.0, %v3263_v60 }
 0xe5b   : > { %v3265_v11 = vmul.f32 %v3718_v7, %v3264_v41 }
 0xe5d   : > { %v3266_v35 = vadd.f32 %v3718_v7, %v3265_v11 }
 0xe5f   : > { %v3270_v49 = vsel %vm3269_vm13, %v3718_v7, %v3266_v35 }
 0xe60   : > { %v3275_v18 = vsel %vm3272_vm15, %v3274_v12, %v3270_v49 }
 0xe61   : > { %3462 = vmatmul.msk.f32.vlgmr.msrb.gmra.mxu0 %vm3282_vm14, %v3275_v18 }
 0xede   : > { %v3303_v54 = vpop.f32.mrf.mxu0 }
 0xedf   : > { %v3304_v39 = vadd.f32 %v3303_v54, %v3281_v16 }
 0xee1   : > { %v3306_v9 = vsub.f32 0.0, %v3304_v39 }
 0xee3   : > { %v3307_v38 = vmul.f32 1.442695, %v3306_v9 }
 0xee5   : > { %3719 = vpow2.f32 %v3307_v38 }
 0xeeb   : > { %v3720_v46 = vpop.eup %3719 }
 0xeec   : > { %v3309_v58 = vadd.f32 1.0, %v3720_v46 }
 0xeee   : > { %3721 = vrcp.f32 %v3309_v58  ;;  %v3321_v20 = vand.u32 2147483648, %v3309_v58  ;;  %v3319_v59 = vand.u32 2147483647, %v3309_v58  ;;  %vm3315_vm1 = vweird.f32 %v3309_v58 }
 0xef0   : > { %v3322_v15 = vor.u32 1.1754944e-38, %v3321_v20  ;;  %vm3320_vm4 = vcmp.eq.f32.partialorder %v3319_v59, 8.507059e+37 }
 0xef4   : > { %v3722_v4 = vpop.eup %3721 }
 0xef5   : > { %v3311_v21 = vmul.f32 %v3722_v4, %v3309_v58  ;;  %vm3316_vm0 = vweird.f32 %v3722_v4 }
 0xef6   : > { %vm3317_vm2 = vmor %vm3315_vm1, %vm3316_vm0 }
 0xef7   : > { %v3312_v19 = vsub.f32 1.0, %v3311_v21 }
 0xef9   : > { %v3313_v42 = vmul.f32 %v3722_v4, %v3312_v19 }
 0xefb   : > { %v3314_v50 = vadd.f32 %v3722_v4, %v3313_v42 }
 0xefd   : > { %v3318_v27 = vsel %vm3317_vm2, %v3722_v4, %v3314_v50 }
 0xefe   : > { %v3323_v53 = vsel %vm3320_vm4, %v3322_v15, %v3318_v27 }
 0xeff   : > { %3463 = vmatmul.msk.f32.vlgmr.msrb.gmra.mxu1 %vm3328_vm3, %v3323_v53 }
 0xf7c   : > { %v3349_v23 = vpop.f32.mrf.mxu1 }
 0xf7d   : > { %v3350_v14 = vadd.f32 %v3349_v23, %v3327_v31 }
 0xf7f   : > { %v3353_v61 = vsel %vm3352_vm5, %v3350_v14, -inf }
 0xf80   : > { %3354 = vmax.xlane.f32.xlu0 %v3353_v61 }
 0xff3   : > { %v3355_v33 = vpop.xlane.xlu0 %3354 }
 0xff4   : > { %v3356_v22 = vsub.f32 %v3350_v14, %v3355_v33 }
 0xff6   : > { %v3357_v26 = vmul.f32 1.442695, %v3356_v22 }
 0xff8   : > { %3723 = vpow2.f32 %v3357_v26 }
 0xffe   : > { %v3724_v47 = vpop.eup %3723 }
 0xfff   : > { %v3359_v45 = vsel %vm3352_vm5, %v3724_v47, 0.0 }
0x1000   : > { %3360 = vadd.xlane.f32.xlu1 %v3359_v45 }
0x1073   : > { %v3361_v2 = vpop.xlane.xlu1 %3360 }
0x1074   : > { %3725 = vlog2.f32 %v3361_v2 }
0x107a   : > { %v3726_v8 = vpop.eup %3725 }
0x107b   : > { %v3363_v24 = vmul.f32 0.6931472, %v3726_v8 }
0x107d   : > { %v3364_v0 = vsub.f32 %v3356_v22, %v3363_v24 }
0x107f   : > { %3365 = vst.msk [vmem:[%s322_s24] sm:$0x1] %vm3352_vm5, %v3364_v0 }
0x1080   : > { %3754 = shalt.err (!%p3751_p3)
}
0x1081   : > { %3466 = dma.vmem_to_hbm [thread:$0]  (%p3913_p5), %s3378_s26, 16, %s3380_s27, %s3367_s25  }
0x1082 PF: > { %p3472_p4 = scmp.ge.s32.totalorder %s3789_s12, 2  ;;  %s3391_s16 = sand.u32 1, %s3777_s30  }
0x1083   : > { %s3392_s23 = scalar_lea.sflag [#allocation3], %s3391_s16 }
0x1084   : > { %p3469_p7 = pnand %p3472_p4, %p3917_p6 }
0x1086   : > { %p3470_p8 = pneg %p3469_p7 }
0x1088   : > { %3772 = dma.done.wait (%p3470_p8), %s3392_s23, 16  }
0x1089   : > { %3774 = vsyncadd (%p3470_p8), %s3392_s23, 4294967280  ;;  %p19_p9 = scmp.ge.s32.totalorder %s3900_s15, 4   ;;  %s6682_s30 = smov %s3781_s10 }
0x108a   : > { %s6683_s10 = smov %s3785_s11  ;;  %s6684_s11 = smov %s3911_s18 }
0x108b   : > { %s6685_s12 = smov %s3900_s15  ;;  %21 = sbr.rel (!%p19_p9) target bundleno = 3 (0x3), region = 94 }
0x1090   :  { %3397 = vsyncpa [#allocation3], 1 }
0x1091   :  { %3399 = vsyncpa [#allocation3 + $0x1], 1 }

</bundles_post_ra>
